<compile_context>
chip_gen: v7x
topology: tpu7x:2x2x1
jax: 0.10.0
libtpu: 0.0.40
codegen_flags: <defaults>
</compile_context>

<pallas_src>
import functools

import jax
import jax.numpy as jnp
from jax.experimental import pallas as pl
from jax.experimental.pallas import tpu as pltpu

NUM_PREV = 2  # self.num_previous_sequences in the PyTorch module


# ---------------------------------------------------------------------------
# The single fused kernel
# ---------------------------------------------------------------------------
def _fused_rnn_kernel(*refs, n_conv, B, S, H):
    it = iter(refs)
    x_ref = next(it)          # (N, T, 1)   N = NUM_PREV*B, channels-last conv input
    aa_ref = next(it)         # (S*B, 1)    time-major flattened aa_string
    conv = [(next(it), next(it), next(it)) for _ in range(n_conv)]
    #                         # per layer: w (K, Cin, Cout), scale (1, Cout), shift (1, Cout)
    w2rows_ref = next(it)     # (N, 1, F_last)  lin2 weights broadcast per conv row
    shiftP_ref = next(it)     # (L2, H)     selector placing conv columns at hidden 1..H-1
    h0bias_ref = next(it)     # (1, H)      lin2 bias + prepended-constant contribution
    wih_ref = next(it)        # (1, 4H)     LSTM input weights, gate-concat (i|f|g|o)
    whh_ref = next(it)        # (H, 4H)     LSTM recurrent weights, gate-concat
    lstmb_ref = next(it)      # (1, 4H)     b_ih + b_hh
    lin1w_ref = next(it)      # (H, OUT)
    lin1b_ref = next(it)      # (1, OUT)
    o_ref = next(it)          # (S*B, OUT)  output (reshaped to (S, B, OUT) outside)
    hs_sc = next(it)          # (S*B, H)    VMEM scratch for LSTM hidden states

    # ---- conv stacks: both previous-sequence paths folded into the row dim ------
    # TODO(synk): Dropout2d and BatchNorm batch statistics apply only in training;
    #             this is the eval-mode forward (dropout = identity, BN folded).
    y = x_ref[...].astype(jnp.float32)                       # (N, Lin, Cin)
    for w_ref, sc_ref, sh_ref in conv:
        K, Cin, Cout = w_ref.shape
        Nr, Lin = y.shape[0], y.shape[1]
        L = Lin - K + 1
        w = w_ref[...].astype(jnp.float32)
        acc = jnp.zeros((Nr, L, Cout), jnp.float32)
        # Tiny channel counts: shifted broadcast-MACs on the VPU.
        for k in range(K):
            yk = y[:, k:k + L, :]                            # (N, L, Cin)
            for ci in range(Cin):
                acc = acc + yk[:, :, ci:ci + 1] * w[k, ci:ci + 1, :]
        y = jnp.maximum(acc * sc_ref[...] + sh_ref[...], 0.0)   # BN(eval) + ReLU

    # ---- lin2 over the filter axis (lane reduction), sum the two paths, shift ---
    part = jnp.sum(y * w2rows_ref[...], axis=-1)             # (N, L2)
    body = part[0:B, :]
    for n in range(1, NUM_PREV):
        body = body + part[n * B:(n + 1) * B, :]             # (B, L2)
    h0 = jnp.dot(body, shiftP_ref[...],
                 preferred_element_type=jnp.float32) + h0bias_ref[...]   # (B, H)

    # ---- LSTM: one (B,H)@(H,4H) matmul per step, input projection hoisted,
    #      h/c kept as register values, time loop fully unrolled (S is static) ----
    # TODO(synk): for long sequences switch the static unroll to lax.fori_loop.
    xg = aa_ref[...] * wih_ref[...] + lstmb_ref[...]         # (S*B, 4H) precomputed
    whh = whh_ref[...]
    h = h0
    c = h0                                                   # PyTorch uses conv_output for both
    for t in range(S):
        z = xg[t * B:(t + 1) * B, :] + jnp.dot(h, whh, preferred_element_type=jnp.float32)
        i_g = jax.nn.sigmoid(z[:, 0:H])
        f_g = jax.nn.sigmoid(z[:, H:2 * H])
        g_g = jnp.tanh(z[:, 2 * H:3 * H])
        o_g = jax.nn.sigmoid(z[:, 3 * H:4 * H])
        c = f_g * c + i_g * g_g
        h = o_g * jnp.tanh(c)
        hs_sc[t * B:(t + 1) * B, :] = h                      # buffered in VMEM

    # ---- lin1(tanh(.)) over the whole sequence, single output store -------------
    hh = jnp.tanh(hs_sc[...])                                # (S*B, H)
    yout = jnp.dot(hh, lin1w_ref[...], preferred_element_type=jnp.float32) + lin1b_ref[...]
    o_ref[...] = yout.astype(o_ref.dtype)


# ---------------------------------------------------------------------------
# Forward pass wrapper (layout plumbing only; all compute is inside the kernel)
# ---------------------------------------------------------------------------
def rnn_forward(params, inputs, aa_string, output_size):
    # inputs: (B, NUM_PREV, num_aas)   aa_string: (B, S)
    B, _, T = inputs.shape
    S = aa_string.shape[1]
    H = params["h0_bias"].shape[1]
    N = NUM_PREV * B

    x_prev = jnp.transpose(inputs, (1, 0, 2)).reshape(N, T)[:, :, None]   # (N, T, 1)
    w2rows = jnp.repeat(params["w2_mat"], B, axis=0)[:, None, :]          # (N, 1, F_last)
    aa2 = jnp.transpose(aa_string).reshape(S * B, 1)                      # (S*B, 1)

    conv_flat = []
    for (w, sc, sh) in params["conv"]:
        conv_flat += [w, sc, sh]

    kern = functools.partial(_fused_rnn_kernel, n_conv=len(params["conv"]),
                             B=B, S=S, H=H)
    out2d = pl.pallas_call(
        kern,
        out_shape=jax.ShapeDtypeStruct((S * B, output_size), jnp.float32),
        scratch_shapes=[pltpu.VMEM((S * B, H), jnp.float32)],
    )(x_prev, aa2, *conv_flat, w2rows, params["shiftP"], params["h0_bias"],
      params["lstm_wih"], params["lstm_whh"], params["lstm_b"],
      params["lin1_w"], params["lin1_b"])
    return out2d.reshape(S, B, output_size)


# ---------------------------------------------------------------------------
# Plain-JAX reference of the original (eval-mode) forward, for validation
# ---------------------------------------------------------------------------
def rnn_forward_ref(params, inputs, aa_string, output_size):
    B, _, T = inputs.shape
    S = aa_string.shape[1]
    outs = []
    for n in range(NUM_PREV):
        x = inputs[:, n, :][:, :, None].astype(jnp.float32)            # (B, T, 1)
        for (w, scale, shift) in params["conv"]:
            K, Cin, Cout = w.shape
            L = x.shape[1] - K + 1
            acc = jnp.zeros((B, L, Cout), jnp.float32)
            for k in range(K):
                acc = acc + jnp.einsum("blc,co->blo", x[:, k:k + L, :], w[k])
            x = jnp.maximum(acc * scale + shift, 0.0)
        to_add = jnp.full((B, 1, x.shape[2]), float(-NUM_PREV + n), x.dtype)
        outs.append(jnp.concatenate([to_add, x], axis=1))               # (B, H, nf)
    conv_output = jnp.concatenate(outs, axis=2)                         # (B, H, F)
    h0 = conv_output @ params["lin2_w"] + params["lin2_b"]              # (B, H)

    H = h0.shape[1]
    wih, whh, bb = params["lstm_wih"], params["lstm_whh"], params["lstm_b"]
    h = h0
    c = h0
    ys = []
    for s in range(S):
        x_t = aa_string[:, s][:, None]                                  # (B, 1)
        z = x_t @ wih + h @ whh + bb
        i_g = jax.nn.sigmoid(z[:, 0:H])
        f_g = jax.nn.sigmoid(z[:, H:2 * H])
        g_g = jnp.tanh(z[:, 2 * H:3 * H])
        o_g = jax.nn.sigmoid(z[:, 3 * H:4 * H])
        c = f_g * c + i_g * g_g
        h = o_g * jnp.tanh(c)
        ys.append(h)
    hs = jnp.stack(ys, axis=0)                                          # (S, B, H)
    y = jnp.tanh(hs) @ params["lin1_w"] + params["lin1_b"]
    return y.reshape(S, B, output_size)


# ---------------------------------------------------------------------------
# Deterministic parameter construction (PyTorch layouts folded / transposed)
# ---------------------------------------------------------------------------
def make_params(key, input_size, num_filters, kernel_size, output_size, num_aas):
    conv_size = num_aas - sum(k - 1 for k in kernel_size)
    H = conv_size + 1
    nf_last = num_filters[-1]
    F = nf_last * NUM_PREV

    keys = iter(jax.random.split(key, 64))
    conv_params = []
    cin = input_size
    for k, nf in zip(kernel_size, num_filters):
        # weight stored as (K, Cin, Cout) == transpose of PyTorch (Cout, Cin, K)
        w = 0.2 * jax.random.normal(next(keys), (k, cin, nf), jnp.float32)
        gamma = 1.0 + 0.1 * jax.random.normal(next(keys), (nf,), jnp.float32)
        beta = 0.1 * jax.random.normal(next(keys), (nf,), jnp.float32)
        rmean = 0.1 * jax.random.normal(next(keys), (nf,), jnp.float32)
        rvar = 0.5 + jnp.abs(jax.random.normal(next(keys), (nf,), jnp.float32))
        scale = gamma / jnp.sqrt(rvar + 1e-5)
        shift = beta - rmean * scale
        conv_params.append((w, scale.reshape(1, nf), shift.reshape(1, nf)))
        cin = nf

    # lin2: Linear(F, 1)
    lin2_w = 0.2 * jax.random.normal(next(keys), (F,), jnp.float32)
    lin2_b = 0.1 * jax.random.normal(next(keys), (), jnp.float32)
    w2_mat = lin2_w.reshape(NUM_PREV, nf_last)                      # per-path lin2 weights
    const_vals = jnp.arange(NUM_PREV, dtype=jnp.float32) - NUM_PREV  # -2, -1 (prepended cols)
    h0_col0 = lin2_b + jnp.sum(const_vals * jnp.sum(w2_mat, axis=1))
    h0_bias = jnp.concatenate(
        [jnp.reshape(h0_col0, (1, 1)), jnp.full((1, H - 1), lin2_b)], axis=1)   # (1, H)
    shiftP = jnp.eye(conv_size, H, k=1, dtype=jnp.float32)          # (L2, H) column shifter

    # lin1: Linear(H, output_size)
    lin1_w = 0.2 * jax.random.normal(next(keys), (H, output_size), jnp.float32)
    lin1_b = 0.1 * jax.random.normal(next(keys), (1, output_size), jnp.float32)

    # LSTM(1, H): PyTorch layout W_ih (4H,1), W_hh (4H,H), gate order i, f, g, o
    w_ih = 0.2 * jax.random.normal(next(keys), (4 * H, 1), jnp.float32)
    w_hh = 0.2 * jax.random.normal(next(keys), (4 * H, H), jnp.float32)
    b_ih = 0.1 * jax.random.normal(next(keys), (4 * H,), jnp.float32)
    b_hh = 0.1 * jax.random.normal(next(keys), (4 * H,), jnp.float32)
    lstm_wih = w_ih.T                                               # (1, 4H)
    lstm_whh = w_hh.T                                               # (H, 4H)
    lstm_b = (b_ih + b_hh).reshape(1, 4 * H)                        # (1, 4H)

    return dict(conv=conv_params, lin2_w=lin2_w, lin2_b=lin2_b, w2_mat=w2_mat,
                h0_bias=h0_bias, shiftP=shiftP,
                lin1_w=lin1_w, lin1_b=lin1_b,
                lstm_wih=lstm_wih, lstm_whh=lstm_whh, lstm_b=lstm_b), H


if __name__ == "__main__":
    # Small, self-consistent configuration
    B = 2
    num_aas = 32
    S = 8                      # aa_string sequence length
    input_size = 1             # Conv1d in_channels (matches unsqueeze(-2) in forward)
    num_filters = [4, 8]
    kernel_size = [3, 5]
    output_size = 5

    key = jax.random.PRNGKey(0)
    kp, kx, ka = jax.random.split(key, 3)
    params, H = make_params(kp, input_size, num_filters, kernel_size,
                            output_size, num_aas)

    inputs = jax.random.normal(kx, (B, NUM_PREV, num_aas), jnp.float32)
    aa_string = jax.random.normal(ka, (B, S), jnp.float32)

    fwd = jax.jit(rnn_forward, static_argnums=(3,))
    out = jax.block_until_ready(fwd(params, inputs, aa_string, output_size))
    assert out.shape == (S, B, output_size), out.shape
    assert bool(jnp.all(jnp.isfinite(out)))

    ref = rnn_forward_ref(params, inputs, aa_string, output_size)
    assert bool(jnp.allclose(out, ref, atol=2e-3, rtol=2e-3)), \
        float(jnp.max(jnp.abs(out - ref)))

    print("KERNEL_OK")
</pallas_src>

<mosaic_0001>
module attributes {stable_mosaic.version = 11 : i64} {
  func.func @_fused_rnn_kernel(%arg0: memref<4x32x1xf32, #tpu.memory_space<vmem>>, %arg1: memref<16x1xf32, #tpu.memory_space<vmem>>, %arg2: memref<3x1x4xf32, #tpu.memory_space<vmem>>, %arg3: memref<1x4xf32, #tpu.memory_space<vmem>>, %arg4: memref<1x4xf32, #tpu.memory_space<vmem>>, %arg5: memref<5x4x8xf32, #tpu.memory_space<vmem>>, %arg6: memref<1x8xf32, #tpu.memory_space<vmem>>, %arg7: memref<1x8xf32, #tpu.memory_space<vmem>>, %arg8: memref<4x1x8xf32, #tpu.memory_space<vmem>>, %arg9: memref<26x27xf32, #tpu.memory_space<vmem>>, %arg10: memref<1x27xf32, #tpu.memory_space<vmem>>, %arg11: memref<1x108xf32, #tpu.memory_space<vmem>>, %arg12: memref<27x108xf32, #tpu.memory_space<vmem>>, %arg13: memref<1x108xf32, #tpu.memory_space<vmem>>, %arg14: memref<27x5xf32, #tpu.memory_space<vmem>>, %arg15: memref<1x5xf32, #tpu.memory_space<vmem>>, %arg16: memref<16x5xf32, #tpu.memory_space<vmem>>, %arg17: memref<16x27xf32, #tpu.memory_space<vmem>>) attributes {dimension_semantics = [], scalar_prefetch = 0 : i64, scratch_operands = 1 : i64, tpu.core_type = #tpu.core_type<tc>} {
    %c0 = arith.constant 0 : index
    %c0_0 = arith.constant 0 : index
    %c0_1 = arith.constant 0 : index
    %0 = vector.load %arg0[%c0, %c0_0, %c0_1] : memref<4x32x1xf32, #tpu.memory_space<vmem>>, vector<4x32x1xf32>
    %c0_2 = arith.constant 0 : index
    %c0_3 = arith.constant 0 : index
    %c0_4 = arith.constant 0 : index
    %1 = vector.load %arg2[%c0_2, %c0_3, %c0_4] : memref<3x1x4xf32, #tpu.memory_space<vmem>>, vector<3x1x4xf32>
    %cst = arith.constant 0.000000e+00 : f32
    %2 = vector.broadcast %cst : f32 to vector<4x30x4xf32>
    %3 = vector.extract_strided_slice %0 {offsets = [0, 0, 0], sizes = [4, 30, 1], strides = [1, 1, 1]} : vector<4x32x1xf32> to vector<4x30x1xf32>
    %4 = vector.extract_strided_slice %1 {offsets = [0, 0, 0], sizes = [1, 1, 4], strides = [1, 1, 1]} : vector<3x1x4xf32> to vector<1x1x4xf32>
    %5 = vector.shape_cast %4 : vector<1x1x4xf32> to vector<1x4xf32>
    %6 = vector.shape_cast %5 : vector<1x4xf32> to vector<1x1x4xf32>
    %7 = vector.broadcast %3 : vector<4x30x1xf32> to vector<4x30x4xf32>
    %8 = vector.broadcast %6 : vector<1x1x4xf32> to vector<4x30x4xf32>
    %9 = arith.mulf %7, %8 : vector<4x30x4xf32>
    %10 = arith.addf %2, %9 : vector<4x30x4xf32>
    %11 = vector.extract_strided_slice %0 {offsets = [0, 1, 0], sizes = [4, 30, 1], strides = [1, 1, 1]} : vector<4x32x1xf32> to vector<4x30x1xf32>
    %12 = vector.extract_strided_slice %1 {offsets = [1, 0, 0], sizes = [1, 1, 4], strides = [1, 1, 1]} : vector<3x1x4xf32> to vector<1x1x4xf32>
    %13 = vector.shape_cast %12 : vector<1x1x4xf32> to vector<1x4xf32>
    %14 = vector.shape_cast %13 : vector<1x4xf32> to vector<1x1x4xf32>
    %15 = vector.broadcast %11 : vector<4x30x1xf32> to vector<4x30x4xf32>
    %16 = vector.broadcast %14 : vector<1x1x4xf32> to vector<4x30x4xf32>
    %17 = arith.mulf %15, %16 : vector<4x30x4xf32>
    %18 = arith.addf %10, %17 : vector<4x30x4xf32>
    %19 = vector.extract_strided_slice %0 {offsets = [0, 2, 0], sizes = [4, 30, 1], strides = [1, 1, 1]} : vector<4x32x1xf32> to vector<4x30x1xf32>
    %20 = vector.extract_strided_slice %1 {offsets = [2, 0, 0], sizes = [1, 1, 4], strides = [1, 1, 1]} : vector<3x1x4xf32> to vector<1x1x4xf32>
    %21 = vector.shape_cast %20 : vector<1x1x4xf32> to vector<1x4xf32>
    %22 = vector.shape_cast %21 : vector<1x4xf32> to vector<1x1x4xf32>
    %23 = vector.broadcast %19 : vector<4x30x1xf32> to vector<4x30x4xf32>
    %24 = vector.broadcast %22 : vector<1x1x4xf32> to vector<4x30x4xf32>
    %25 = arith.mulf %23, %24 : vector<4x30x4xf32>
    %26 = arith.addf %18, %25 : vector<4x30x4xf32>
    %c0_5 = arith.constant 0 : index
    %c0_6 = arith.constant 0 : index
    %27 = vector.load %arg3[%c0_5, %c0_6] : memref<1x4xf32, #tpu.memory_space<vmem>>, vector<1x4xf32>
    %28 = vector.shape_cast %27 : vector<1x4xf32> to vector<1x1x4xf32>
    %29 = vector.broadcast %28 : vector<1x1x4xf32> to vector<4x30x4xf32>
    %30 = arith.mulf %26, %29 : vector<4x30x4xf32>
    %c0_7 = arith.constant 0 : index
    %c0_8 = arith.constant 0 : index
    %31 = vector.load %arg4[%c0_7, %c0_8] : memref<1x4xf32, #tpu.memory_space<vmem>>, vector<1x4xf32>
    %32 = vector.shape_cast %31 : vector<1x4xf32> to vector<1x1x4xf32>
    %33 = vector.broadcast %32 : vector<1x1x4xf32> to vector<4x30x4xf32>
    %34 = arith.addf %30, %33 : vector<4x30x4xf32>
    %cst_9 = arith.constant 0.000000e+00 : f32
    %35 = vector.broadcast %cst_9 : f32 to vector<4x30x4xf32>
    %36 = arith.maximumf %34, %35 : vector<4x30x4xf32>
    %c0_10 = arith.constant 0 : index
    %c0_11 = arith.constant 0 : index
    %c0_12 = arith.constant 0 : index
    %37 = vector.load %arg5[%c0_10, %c0_11, %c0_12] : memref<5x4x8xf32, #tpu.memory_space<vmem>>, vector<5x4x8xf32>
    %cst_13 = arith.constant 0.000000e+00 : f32
    %38 = vector.broadcast %cst_13 : f32 to vector<4x26x8xf32>
    %39 = vector.extract_strided_slice %36 {offsets = [0, 0, 0], sizes = [4, 26, 4], strides = [1, 1, 1]} : vector<4x30x4xf32> to vector<4x26x4xf32>
    %40 = vector.extract_strided_slice %39 {offsets = [0, 0, 0], sizes = [4, 26, 1], strides = [1, 1, 1]} : vector<4x26x4xf32> to vector<4x26x1xf32>
    %41 = vector.extract_strided_slice %37 {offsets = [0, 0, 0], sizes = [1, 1, 8], strides = [1, 1, 1]} : vector<5x4x8xf32> to vector<1x1x8xf32>
    %42 = vector.shape_cast %41 : vector<1x1x8xf32> to vector<1x8xf32>
    %43 = vector.shape_cast %42 : vector<1x8xf32> to vector<1x1x8xf32>
    %44 = vector.broadcast %40 : vector<4x26x1xf32> to vector<4x26x8xf32>
    %45 = vector.broadcast %43 : vector<1x1x8xf32> to vector<4x26x8xf32>
    %46 = arith.mulf %44, %45 : vector<4x26x8xf32>
    %47 = arith.addf %38, %46 : vector<4x26x8xf32>
    %48 = vector.extract_strided_slice %39 {offsets = [0, 0, 1], sizes = [4, 26, 1], strides = [1, 1, 1]} : vector<4x26x4xf32> to vector<4x26x1xf32>
    %49 = vector.extract_strided_slice %37 {offsets = [0, 1, 0], sizes = [1, 1, 8], strides = [1, 1, 1]} : vector<5x4x8xf32> to vector<1x1x8xf32>
    %50 = vector.shape_cast %49 : vector<1x1x8xf32> to vector<1x8xf32>
    %51 = vector.shape_cast %50 : vector<1x8xf32> to vector<1x1x8xf32>
    %52 = vector.broadcast %48 : vector<4x26x1xf32> to vector<4x26x8xf32>
    %53 = vector.broadcast %51 : vector<1x1x8xf32> to vector<4x26x8xf32>
    %54 = arith.mulf %52, %53 : vector<4x26x8xf32>
    %55 = arith.addf %47, %54 : vector<4x26x8xf32>
    %56 = vector.extract_strided_slice %39 {offsets = [0, 0, 2], sizes = [4, 26, 1], strides = [1, 1, 1]} : vector<4x26x4xf32> to vector<4x26x1xf32>
    %57 = vector.extract_strided_slice %37 {offsets = [0, 2, 0], sizes = [1, 1, 8], strides = [1, 1, 1]} : vector<5x4x8xf32> to vector<1x1x8xf32>
    %58 = vector.shape_cast %57 : vector<1x1x8xf32> to vector<1x8xf32>
    %59 = vector.shape_cast %58 : vector<1x8xf32> to vector<1x1x8xf32>
    %60 = vector.broadcast %56 : vector<4x26x1xf32> to vector<4x26x8xf32>
    %61 = vector.broadcast %59 : vector<1x1x8xf32> to vector<4x26x8xf32>
    %62 = arith.mulf %60, %61 : vector<4x26x8xf32>
    %63 = arith.addf %55, %62 : vector<4x26x8xf32>
    %64 = vector.extract_strided_slice %39 {offsets = [0, 0, 3], sizes = [4, 26, 1], strides = [1, 1, 1]} : vector<4x26x4xf32> to vector<4x26x1xf32>
    %65 = vector.extract_strided_slice %37 {offsets = [0, 3, 0], sizes = [1, 1, 8], strides = [1, 1, 1]} : vector<5x4x8xf32> to vector<1x1x8xf32>
    %66 = vector.shape_cast %65 : vector<1x1x8xf32> to vector<1x8xf32>
    %67 = vector.shape_cast %66 : vector<1x8xf32> to vector<1x1x8xf32>
    %68 = vector.broadcast %64 : vector<4x26x1xf32> to vector<4x26x8xf32>
    %69 = vector.broadcast %67 : vector<1x1x8xf32> to vector<4x26x8xf32>
    %70 = arith.mulf %68, %69 : vector<4x26x8xf32>
    %71 = arith.addf %63, %70 : vector<4x26x8xf32>
    %72 = vector.extract_strided_slice %36 {offsets = [0, 1, 0], sizes = [4, 26, 4], strides = [1, 1, 1]} : vector<4x30x4xf32> to vector<4x26x4xf32>
    %73 = vector.extract_strided_slice %72 {offsets = [0, 0, 0], sizes = [4, 26, 1], strides = [1, 1, 1]} : vector<4x26x4xf32> to vector<4x26x1xf32>
    %74 = vector.extract_strided_slice %37 {offsets = [1, 0, 0], sizes = [1, 1, 8], strides = [1, 1, 1]} : vector<5x4x8xf32> to vector<1x1x8xf32>
    %75 = vector.shape_cast %74 : vector<1x1x8xf32> to vector<1x8xf32>
    %76 = vector.shape_cast %75 : vector<1x8xf32> to vector<1x1x8xf32>
    %77 = vector.broadcast %73 : vector<4x26x1xf32> to vector<4x26x8xf32>
    %78 = vector.broadcast %76 : vector<1x1x8xf32> to vector<4x26x8xf32>
    %79 = arith.mulf %77, %78 : vector<4x26x8xf32>
    %80 = arith.addf %71, %79 : vector<4x26x8xf32>
    %81 = vector.extract_strided_slice %72 {offsets = [0, 0, 1], sizes = [4, 26, 1], strides = [1, 1, 1]} : vector<4x26x4xf32> to vector<4x26x1xf32>
    %82 = vector.extract_strided_slice %37 {offsets = [1, 1, 0], sizes = [1, 1, 8], strides = [1, 1, 1]} : vector<5x4x8xf32> to vector<1x1x8xf32>
    %83 = vector.shape_cast %82 : vector<1x1x8xf32> to vector<1x8xf32>
    %84 = vector.shape_cast %83 : vector<1x8xf32> to vector<1x1x8xf32>
    %85 = vector.broadcast %81 : vector<4x26x1xf32> to vector<4x26x8xf32>
    %86 = vector.broadcast %84 : vector<1x1x8xf32> to vector<4x26x8xf32>
    %87 = arith.mulf %85, %86 : vector<4x26x8xf32>
    %88 = arith.addf %80, %87 : vector<4x26x8xf32>
    %89 = vector.extract_strided_slice %72 {offsets = [0, 0, 2], sizes = [4, 26, 1], strides = [1, 1, 1]} : vector<4x26x4xf32> to vector<4x26x1xf32>
    %90 = vector.extract_strided_slice %37 {offsets = [1, 2, 0], sizes = [1, 1, 8], strides = [1, 1, 1]} : vector<5x4x8xf32> to vector<1x1x8xf32>
    %91 = vector.shape_cast %90 : vector<1x1x8xf32> to vector<1x8xf32>
    %92 = vector.shape_cast %91 : vector<1x8xf32> to vector<1x1x8xf32>
    %93 = vector.broadcast %89 : vector<4x26x1xf32> to vector<4x26x8xf32>
    %94 = vector.broadcast %92 : vector<1x1x8xf32> to vector<4x26x8xf32>
    %95 = arith.mulf %93, %94 : vector<4x26x8xf32>
    %96 = arith.addf %88, %95 : vector<4x26x8xf32>
    %97 = vector.extract_strided_slice %72 {offsets = [0, 0, 3], sizes = [4, 26, 1], strides = [1, 1, 1]} : vector<4x26x4xf32> to vector<4x26x1xf32>
    %98 = vector.extract_strided_slice %37 {offsets = [1, 3, 0], sizes = [1, 1, 8], strides = [1, 1, 1]} : vector<5x4x8xf32> to vector<1x1x8xf32>
    %99 = vector.shape_cast %98 : vector<1x1x8xf32> to vector<1x8xf32>
    %100 = vector.shape_cast %99 : vector<1x8xf32> to vector<1x1x8xf32>
    %101 = vector.broadcast %97 : vector<4x26x1xf32> to vector<4x26x8xf32>
    %102 = vector.broadcast %100 : vector<1x1x8xf32> to vector<4x26x8xf32>
    %103 = arith.mulf %101, %102 : vector<4x26x8xf32>
    %104 = arith.addf %96, %103 : vector<4x26x8xf32>
    %105 = vector.extract_strided_slice %36 {offsets = [0, 2, 0], sizes = [4, 26, 4], strides = [1, 1, 1]} : vector<4x30x4xf32> to vector<4x26x4xf32>
    %106 = vector.extract_strided_slice %105 {offsets = [0, 0, 0], sizes = [4, 26, 1], strides = [1, 1, 1]} : vector<4x26x4xf32> to vector<4x26x1xf32>
    %107 = vector.extract_strided_slice %37 {offsets = [2, 0, 0], sizes = [1, 1, 8], strides = [1, 1, 1]} : vector<5x4x8xf32> to vector<1x1x8xf32>
    %108 = vector.shape_cast %107 : vector<1x1x8xf32> to vector<1x8xf32>
    %109 = vector.shape_cast %108 : vector<1x8xf32> to vector<1x1x8xf32>
    %110 = vector.broadcast %106 : vector<4x26x1xf32> to vector<4x26x8xf32>
    %111 = vector.broadcast %109 : vector<1x1x8xf32> to vector<4x26x8xf32>
    %112 = arith.mulf %110, %111 : vector<4x26x8xf32>
    %113 = arith.addf %104, %112 : vector<4x26x8xf32>
    %114 = vector.extract_strided_slice %105 {offsets = [0, 0, 1], sizes = [4, 26, 1], strides = [1, 1, 1]} : vector<4x26x4xf32> to vector<4x26x1xf32>
    %115 = vector.extract_strided_slice %37 {offsets = [2, 1, 0], sizes = [1, 1, 8], strides = [1, 1, 1]} : vector<5x4x8xf32> to vector<1x1x8xf32>
    %116 = vector.shape_cast %115 : vector<1x1x8xf32> to vector<1x8xf32>
    %117 = vector.shape_cast %116 : vector<1x8xf32> to vector<1x1x8xf32>
    %118 = vector.broadcast %114 : vector<4x26x1xf32> to vector<4x26x8xf32>
    %119 = vector.broadcast %117 : vector<1x1x8xf32> to vector<4x26x8xf32>
    %120 = arith.mulf %118, %119 : vector<4x26x8xf32>
    %121 = arith.addf %113, %120 : vector<4x26x8xf32>
    %122 = vector.extract_strided_slice %105 {offsets = [0, 0, 2], sizes = [4, 26, 1], strides = [1, 1, 1]} : vector<4x26x4xf32> to vector<4x26x1xf32>
    %123 = vector.extract_strided_slice %37 {offsets = [2, 2, 0], sizes = [1, 1, 8], strides = [1, 1, 1]} : vector<5x4x8xf32> to vector<1x1x8xf32>
    %124 = vector.shape_cast %123 : vector<1x1x8xf32> to vector<1x8xf32>
    %125 = vector.shape_cast %124 : vector<1x8xf32> to vector<1x1x8xf32>
    %126 = vector.broadcast %122 : vector<4x26x1xf32> to vector<4x26x8xf32>
    %127 = vector.broadcast %125 : vector<1x1x8xf32> to vector<4x26x8xf32>
    %128 = arith.mulf %126, %127 : vector<4x26x8xf32>
    %129 = arith.addf %121, %128 : vector<4x26x8xf32>
    %130 = vector.extract_strided_slice %105 {offsets = [0, 0, 3], sizes = [4, 26, 1], strides = [1, 1, 1]} : vector<4x26x4xf32> to vector<4x26x1xf32>
    %131 = vector.extract_strided_slice %37 {offsets = [2, 3, 0], sizes = [1, 1, 8], strides = [1, 1, 1]} : vector<5x4x8xf32> to vector<1x1x8xf32>
    %132 = vector.shape_cast %131 : vector<1x1x8xf32> to vector<1x8xf32>
    %133 = vector.shape_cast %132 : vector<1x8xf32> to vector<1x1x8xf32>
    %134 = vector.broadcast %130 : vector<4x26x1xf32> to vector<4x26x8xf32>
    %135 = vector.broadcast %133 : vector<1x1x8xf32> to vector<4x26x8xf32>
    %136 = arith.mulf %134, %135 : vector<4x26x8xf32>
    %137 = arith.addf %129, %136 : vector<4x26x8xf32>
    %138 = vector.extract_strided_slice %36 {offsets = [0, 3, 0], sizes = [4, 26, 4], strides = [1, 1, 1]} : vector<4x30x4xf32> to vector<4x26x4xf32>
    %139 = vector.extract_strided_slice %138 {offsets = [0, 0, 0], sizes = [4, 26, 1], strides = [1, 1, 1]} : vector<4x26x4xf32> to vector<4x26x1xf32>
    %140 = vector.extract_strided_slice %37 {offsets = [3, 0, 0], sizes = [1, 1, 8], strides = [1, 1, 1]} : vector<5x4x8xf32> to vector<1x1x8xf32>
    %141 = vector.shape_cast %140 : vector<1x1x8xf32> to vector<1x8xf32>
    %142 = vector.shape_cast %141 : vector<1x8xf32> to vector<1x1x8xf32>
    %143 = vector.broadcast %139 : vector<4x26x1xf32> to vector<4x26x8xf32>
    %144 = vector.broadcast %142 : vector<1x1x8xf32> to vector<4x26x8xf32>
    %145 = arith.mulf %143, %144 : vector<4x26x8xf32>
    %146 = arith.addf %137, %145 : vector<4x26x8xf32>
    %147 = vector.extract_strided_slice %138 {offsets = [0, 0, 1], sizes = [4, 26, 1], strides = [1, 1, 1]} : vector<4x26x4xf32> to vector<4x26x1xf32>
    %148 = vector.extract_strided_slice %37 {offsets = [3, 1, 0], sizes = [1, 1, 8], strides = [1, 1, 1]} : vector<5x4x8xf32> to vector<1x1x8xf32>
    %149 = vector.shape_cast %148 : vector<1x1x8xf32> to vector<1x8xf32>
    %150 = vector.shape_cast %149 : vector<1x8xf32> to vector<1x1x8xf32>
    %151 = vector.broadcast %147 : vector<4x26x1xf32> to vector<4x26x8xf32>
    %152 = vector.broadcast %150 : vector<1x1x8xf32> to vector<4x26x8xf32>
    %153 = arith.mulf %151, %152 : vector<4x26x8xf32>
    %154 = arith.addf %146, %153 : vector<4x26x8xf32>
    %155 = vector.extract_strided_slice %138 {offsets = [0, 0, 2], sizes = [4, 26, 1], strides = [1, 1, 1]} : vector<4x26x4xf32> to vector<4x26x1xf32>
    %156 = vector.extract_strided_slice %37 {offsets = [3, 2, 0], sizes = [1, 1, 8], strides = [1, 1, 1]} : vector<5x4x8xf32> to vector<1x1x8xf32>
    %157 = vector.shape_cast %156 : vector<1x1x8xf32> to vector<1x8xf32>
    %158 = vector.shape_cast %157 : vector<1x8xf32> to vector<1x1x8xf32>
    %159 = vector.broadcast %155 : vector<4x26x1xf32> to vector<4x26x8xf32>
    %160 = vector.broadcast %158 : vector<1x1x8xf32> to vector<4x26x8xf32>
    %161 = arith.mulf %159, %160 : vector<4x26x8xf32>
    %162 = arith.addf %154, %161 : vector<4x26x8xf32>
    %163 = vector.extract_strided_slice %138 {offsets = [0, 0, 3], sizes = [4, 26, 1], strides = [1, 1, 1]} : vector<4x26x4xf32> to vector<4x26x1xf32>
    %164 = vector.extract_strided_slice %37 {offsets = [3, 3, 0], sizes = [1, 1, 8], strides = [1, 1, 1]} : vector<5x4x8xf32> to vector<1x1x8xf32>
    %165 = vector.shape_cast %164 : vector<1x1x8xf32> to vector<1x8xf32>
    %166 = vector.shape_cast %165 : vector<1x8xf32> to vector<1x1x8xf32>
    %167 = vector.broadcast %163 : vector<4x26x1xf32> to vector<4x26x8xf32>
    %168 = vector.broadcast %166 : vector<1x1x8xf32> to vector<4x26x8xf32>
    %169 = arith.mulf %167, %168 : vector<4x26x8xf32>
    %170 = arith.addf %162, %169 : vector<4x26x8xf32>
    %171 = vector.extract_strided_slice %36 {offsets = [0, 4, 0], sizes = [4, 26, 4], strides = [1, 1, 1]} : vector<4x30x4xf32> to vector<4x26x4xf32>
    %172 = vector.extract_strided_slice %171 {offsets = [0, 0, 0], sizes = [4, 26, 1], strides = [1, 1, 1]} : vector<4x26x4xf32> to vector<4x26x1xf32>
    %173 = vector.extract_strided_slice %37 {offsets = [4, 0, 0], sizes = [1, 1, 8], strides = [1, 1, 1]} : vector<5x4x8xf32> to vector<1x1x8xf32>
    %174 = vector.shape_cast %173 : vector<1x1x8xf32> to vector<1x8xf32>
    %175 = vector.shape_cast %174 : vector<1x8xf32> to vector<1x1x8xf32>
    %176 = vector.broadcast %172 : vector<4x26x1xf32> to vector<4x26x8xf32>
    %177 = vector.broadcast %175 : vector<1x1x8xf32> to vector<4x26x8xf32>
    %178 = arith.mulf %176, %177 : vector<4x26x8xf32>
    %179 = arith.addf %170, %178 : vector<4x26x8xf32>
    %180 = vector.extract_strided_slice %171 {offsets = [0, 0, 1], sizes = [4, 26, 1], strides = [1, 1, 1]} : vector<4x26x4xf32> to vector<4x26x1xf32>
    %181 = vector.extract_strided_slice %37 {offsets = [4, 1, 0], sizes = [1, 1, 8], strides = [1, 1, 1]} : vector<5x4x8xf32> to vector<1x1x8xf32>
    %182 = vector.shape_cast %181 : vector<1x1x8xf32> to vector<1x8xf32>
    %183 = vector.shape_cast %182 : vector<1x8xf32> to vector<1x1x8xf32>
    %184 = vector.broadcast %180 : vector<4x26x1xf32> to vector<4x26x8xf32>
    %185 = vector.broadcast %183 : vector<1x1x8xf32> to vector<4x26x8xf32>
    %186 = arith.mulf %184, %185 : vector<4x26x8xf32>
    %187 = arith.addf %179, %186 : vector<4x26x8xf32>
    %188 = vector.extract_strided_slice %171 {offsets = [0, 0, 2], sizes = [4, 26, 1], strides = [1, 1, 1]} : vector<4x26x4xf32> to vector<4x26x1xf32>
    %189 = vector.extract_strided_slice %37 {offsets = [4, 2, 0], sizes = [1, 1, 8], strides = [1, 1, 1]} : vector<5x4x8xf32> to vector<1x1x8xf32>
    %190 = vector.shape_cast %189 : vector<1x1x8xf32> to vector<1x8xf32>
    %191 = vector.shape_cast %190 : vector<1x8xf32> to vector<1x1x8xf32>
    %192 = vector.broadcast %188 : vector<4x26x1xf32> to vector<4x26x8xf32>
    %193 = vector.broadcast %191 : vector<1x1x8xf32> to vector<4x26x8xf32>
    %194 = arith.mulf %192, %193 : vector<4x26x8xf32>
    %195 = arith.addf %187, %194 : vector<4x26x8xf32>
    %196 = vector.extract_strided_slice %171 {offsets = [0, 0, 3], sizes = [4, 26, 1], strides = [1, 1, 1]} : vector<4x26x4xf32> to vector<4x26x1xf32>
    %197 = vector.extract_strided_slice %37 {offsets = [4, 3, 0], sizes = [1, 1, 8], strides = [1, 1, 1]} : vector<5x4x8xf32> to vector<1x1x8xf32>
    %198 = vector.shape_cast %197 : vector<1x1x8xf32> to vector<1x8xf32>
    %199 = vector.shape_cast %198 : vector<1x8xf32> to vector<1x1x8xf32>
    %200 = vector.broadcast %196 : vector<4x26x1xf32> to vector<4x26x8xf32>
    %201 = vector.broadcast %199 : vector<1x1x8xf32> to vector<4x26x8xf32>
    %202 = arith.mulf %200, %201 : vector<4x26x8xf32>
    %203 = arith.addf %195, %202 : vector<4x26x8xf32>
    %c0_14 = arith.constant 0 : index
    %c0_15 = arith.constant 0 : index
    %204 = vector.load %arg6[%c0_14, %c0_15] : memref<1x8xf32, #tpu.memory_space<vmem>>, vector<1x8xf32>
    %205 = vector.shape_cast %204 : vector<1x8xf32> to vector<1x1x8xf32>
    %206 = vector.broadcast %205 : vector<1x1x8xf32> to vector<4x26x8xf32>
    %207 = arith.mulf %203, %206 : vector<4x26x8xf32>
    %c0_16 = arith.constant 0 : index
    %c0_17 = arith.constant 0 : index
    %208 = vector.load %arg7[%c0_16, %c0_17] : memref<1x8xf32, #tpu.memory_space<vmem>>, vector<1x8xf32>
    %209 = vector.shape_cast %208 : vector<1x8xf32> to vector<1x1x8xf32>
    %210 = vector.broadcast %209 : vector<1x1x8xf32> to vector<4x26x8xf32>
    %211 = arith.addf %207, %210 : vector<4x26x8xf32>
    %cst_18 = arith.constant 0.000000e+00 : f32
    %212 = vector.broadcast %cst_18 : f32 to vector<4x26x8xf32>
    %213 = arith.maximumf %211, %212 : vector<4x26x8xf32>
    %c0_19 = arith.constant 0 : index
    %c0_20 = arith.constant 0 : index
    %c0_21 = arith.constant 0 : index
    %214 = vector.load %arg8[%c0_19, %c0_20, %c0_21] : memref<4x1x8xf32, #tpu.memory_space<vmem>>, vector<4x1x8xf32>
    %215 = vector.broadcast %214 : vector<4x1x8xf32> to vector<4x26x8xf32>
    %216 = arith.mulf %213, %215 : vector<4x26x8xf32>
    %cst_22 = arith.constant dense<0.000000e+00> : vector<4x26xf32>
    %217 = vector.multi_reduction <add>, %216, %cst_22 [2] : vector<4x26x8xf32> to vector<4x26xf32>
    %218 = vector.extract_strided_slice %217 {offsets = [0, 0], sizes = [2, 26], strides = [1, 1]} : vector<4x26xf32> to vector<2x26xf32>
    %219 = vector.extract_strided_slice %217 {offsets = [2, 0], sizes = [2, 26], strides = [1, 1]} : vector<4x26xf32> to vector<2x26xf32>
    %220 = arith.addf %218, %219 : vector<2x26xf32>
    %c0_23 = arith.constant 0 : index
    %c0_24 = arith.constant 0 : index
    %221 = vector.load %arg9[%c0_23, %c0_24] : memref<26x27xf32, #tpu.memory_space<vmem>>, vector<26x27xf32>
    %cst_25 = arith.constant dense<0.000000e+00> : vector<2x27xf32>
    %222 = tpu.matmul %220, %221, %cst_25 {dimension_numbers = #tpu.dot_dimension_numbers<[1], [0], [0], [1], [0, 0, 1, 1], [], []>} : vector<2x26xf32>, vector<26x27xf32>, vector<2x27xf32> -> vector<2x27xf32>
    %c0_26 = arith.constant 0 : index
    %c0_27 = arith.constant 0 : index
    %223 = vector.load %arg10[%c0_26, %c0_27] : memref<1x27xf32, #tpu.memory_space<vmem>>, vector<1x27xf32>
    %224 = vector.broadcast %223 : vector<1x27xf32> to vector<2x27xf32>
    %225 = arith.addf %222, %224 : vector<2x27xf32>
    %c0_28 = arith.constant 0 : index
    %c0_29 = arith.constant 0 : index
    %226 = vector.load %arg1[%c0_28, %c0_29] : memref<16x1xf32, #tpu.memory_space<vmem>>, vector<16x1xf32>
    %c0_30 = arith.constant 0 : index
    %c0_31 = arith.constant 0 : index
    %227 = vector.load %arg11[%c0_30, %c0_31] : memref<1x108xf32, #tpu.memory_space<vmem>>, vector<1x108xf32>
    %228 = vector.broadcast %226 : vector<16x1xf32> to vector<16x108xf32>
    %229 = vector.broadcast %227 : vector<1x108xf32> to vector<16x108xf32>
    %230 = arith.mulf %228, %229 : vector<16x108xf32>
    %c0_32 = arith.constant 0 : index
    %c0_33 = arith.constant 0 : index
    %231 = vector.load %arg13[%c0_32, %c0_33] : memref<1x108xf32, #tpu.memory_space<vmem>>, vector<1x108xf32>
    %232 = vector.broadcast %231 : vector<1x108xf32> to vector<16x108xf32>
    %233 = arith.addf %230, %232 : vector<16x108xf32>
    %c0_34 = arith.constant 0 : index
    %c0_35 = arith.constant 0 : index
    %234 = vector.load %arg12[%c0_34, %c0_35] : memref<27x108xf32, #tpu.memory_space<vmem>>, vector<27x108xf32>
    %235 = vector.extract_strided_slice %233 {offsets = [0, 0], sizes = [2, 108], strides = [1, 1]} : vector<16x108xf32> to vector<2x108xf32>
    %cst_36 = arith.constant dense<0.000000e+00> : vector<2x108xf32>
    %236 = tpu.matmul %225, %234, %cst_36 {dimension_numbers = #tpu.dot_dimension_numbers<[1], [0], [0], [1], [0, 0, 1, 1], [], []>} : vector<2x27xf32>, vector<27x108xf32>, vector<2x108xf32> -> vector<2x108xf32>
    %237 = arith.addf %235, %236 : vector<2x108xf32>
    %238 = vector.extract_strided_slice %237 {offsets = [0, 0], sizes = [2, 27], strides = [1, 1]} : vector<2x108xf32> to vector<2x27xf32>
    %239 = arith.negf %238 : vector<2x27xf32>
    %240 = math.exp %239 : vector<2x27xf32>
    %cst_37 = arith.constant 1.000000e+00 : f32
    %241 = vector.broadcast %cst_37 : f32 to vector<2x27xf32>
    %242 = arith.addf %241, %240 : vector<2x27xf32>
    %243 = arith.divf %241, %242 : vector<2x27xf32>
    %244 = vector.extract_strided_slice %237 {offsets = [0, 27], sizes = [2, 27], strides = [1, 1]} : vector<2x108xf32> to vector<2x27xf32>
    %245 = arith.negf %244 : vector<2x27xf32>
    %246 = math.exp %245 : vector<2x27xf32>
    %cst_38 = arith.constant 1.000000e+00 : f32
    %247 = vector.broadcast %cst_38 : f32 to vector<2x27xf32>
    %248 = arith.addf %247, %246 : vector<2x27xf32>
    %249 = arith.divf %247, %248 : vector<2x27xf32>
    %250 = vector.extract_strided_slice %237 {offsets = [0, 54], sizes = [2, 27], strides = [1, 1]} : vector<2x108xf32> to vector<2x27xf32>
    %251 = math.tanh %250 : vector<2x27xf32>
    %252 = vector.extract_strided_slice %237 {offsets = [0, 81], sizes = [2, 27], strides = [1, 1]} : vector<2x108xf32> to vector<2x27xf32>
    %253 = arith.negf %252 : vector<2x27xf32>
    %254 = math.exp %253 : vector<2x27xf32>
    %cst_39 = arith.constant 1.000000e+00 : f32
    %255 = vector.broadcast %cst_39 : f32 to vector<2x27xf32>
    %256 = arith.addf %255, %254 : vector<2x27xf32>
    %257 = arith.divf %255, %256 : vector<2x27xf32>
    %258 = arith.mulf %249, %225 : vector<2x27xf32>
    %259 = arith.mulf %243, %251 : vector<2x27xf32>
    %260 = arith.addf %258, %259 : vector<2x27xf32>
    %261 = math.tanh %260 : vector<2x27xf32>
    %262 = arith.mulf %257, %261 : vector<2x27xf32>
    %c0_40 = arith.constant 0 : index
    %c0_41 = arith.constant 0 : index
    %263 = vector.load %arg17[%c0_40, %c0_41] : memref<16x27xf32, #tpu.memory_space<vmem>>, vector<2x27xf32>
    tpu.vector_store %arg17[%c0_40, %c0_41], %262 {strides = array<i32>} : memref<16x27xf32, #tpu.memory_space<vmem>>, vector<2x27xf32>,
    %264 = vector.extract_strided_slice %233 {offsets = [2, 0], sizes = [2, 108], strides = [1, 1]} : vector<16x108xf32> to vector<2x108xf32>
    %cst_42 = arith.constant dense<0.000000e+00> : vector<2x108xf32>
    %265 = tpu.matmul %262, %234, %cst_42 {dimension_numbers = #tpu.dot_dimension_numbers<[1], [0], [0], [1], [0, 0, 1, 1], [], []>} : vector<2x27xf32>, vector<27x108xf32>, vector<2x108xf32> -> vector<2x108xf32>
    %266 = arith.addf %264, %265 : vector<2x108xf32>
    %267 = vector.extract_strided_slice %266 {offsets = [0, 0], sizes = [2, 27], strides = [1, 1]} : vector<2x108xf32> to vector<2x27xf32>
    %268 = arith.negf %267 : vector<2x27xf32>
    %269 = math.exp %268 : vector<2x27xf32>
    %cst_43 = arith.constant 1.000000e+00 : f32
    %270 = vector.broadcast %cst_43 : f32 to vector<2x27xf32>
    %271 = arith.addf %270, %269 : vector<2x27xf32>
    %272 = arith.divf %270, %271 : vector<2x27xf32>
    %273 = vector.extract_strided_slice %266 {offsets = [0, 27], sizes = [2, 27], strides = [1, 1]} : vector<2x108xf32> to vector<2x27xf32>
    %274 = arith.negf %273 : vector<2x27xf32>
    %275 = math.exp %274 : vector<2x27xf32>
    %cst_44 = arith.constant 1.000000e+00 : f32
    %276 = vector.broadcast %cst_44 : f32 to vector<2x27xf32>
    %277 = arith.addf %276, %275 : vector<2x27xf32>
    %278 = arith.divf %276, %277 : vector<2x27xf32>
    %279 = vector.extract_strided_slice %266 {offsets = [0, 54], sizes = [2, 27], strides = [1, 1]} : vector<2x108xf32> to vector<2x27xf32>
    %280 = math.tanh %279 : vector<2x27xf32>
    %281 = vector.extract_strided_slice %266 {offsets = [0, 81], sizes = [2, 27], strides = [1, 1]} : vector<2x108xf32> to vector<2x27xf32>
    %282 = arith.negf %281 : vector<2x27xf32>
    %283 = math.exp %282 : vector<2x27xf32>
    %cst_45 = arith.constant 1.000000e+00 : f32
    %284 = vector.broadcast %cst_45 : f32 to vector<2x27xf32>
    %285 = arith.addf %284, %283 : vector<2x27xf32>
    %286 = arith.divf %284, %285 : vector<2x27xf32>
    %287 = arith.mulf %278, %260 : vector<2x27xf32>
    %288 = arith.mulf %272, %280 : vector<2x27xf32>
    %289 = arith.addf %287, %288 : vector<2x27xf32>
    %290 = math.tanh %289 : vector<2x27xf32>
    %291 = arith.mulf %286, %290 : vector<2x27xf32>
    %c2 = arith.constant 2 : index
    %c0_46 = arith.constant 0 : index
    %292 = vector.load %arg17[%c2, %c0_46] : memref<16x27xf32, #tpu.memory_space<vmem>>, vector<2x27xf32>
    tpu.vector_store %arg17[%c2, %c0_46], %291 {strides = array<i32>} : memref<16x27xf32, #tpu.memory_space<vmem>>, vector<2x27xf32>,
    %293 = vector.extract_strided_slice %233 {offsets = [4, 0], sizes = [2, 108], strides = [1, 1]} : vector<16x108xf32> to vector<2x108xf32>
    %cst_47 = arith.constant dense<0.000000e+00> : vector<2x108xf32>
    %294 = tpu.matmul %291, %234, %cst_47 {dimension_numbers = #tpu.dot_dimension_numbers<[1], [0], [0], [1], [0, 0, 1, 1], [], []>} : vector<2x27xf32>, vector<27x108xf32>, vector<2x108xf32> -> vector<2x108xf32>
    %295 = arith.addf %293, %294 : vector<2x108xf32>
    %296 = vector.extract_strided_slice %295 {offsets = [0, 0], sizes = [2, 27], strides = [1, 1]} : vector<2x108xf32> to vector<2x27xf32>
    %297 = arith.negf %296 : vector<2x27xf32>
    %298 = math.exp %297 : vector<2x27xf32>
    %cst_48 = arith.constant 1.000000e+00 : f32
    %299 = vector.broadcast %cst_48 : f32 to vector<2x27xf32>
    %300 = arith.addf %299, %298 : vector<2x27xf32>
    %301 = arith.divf %299, %300 : vector<2x27xf32>
    %302 = vector.extract_strided_slice %295 {offsets = [0, 27], sizes = [2, 27], strides = [1, 1]} : vector<2x108xf32> to vector<2x27xf32>
    %303 = arith.negf %302 : vector<2x27xf32>
    %304 = math.exp %303 : vector<2x27xf32>
    %cst_49 = arith.constant 1.000000e+00 : f32
    %305 = vector.broadcast %cst_49 : f32 to vector<2x27xf32>
    %306 = arith.addf %305, %304 : vector<2x27xf32>
    %307 = arith.divf %305, %306 : vector<2x27xf32>
    %308 = vector.extract_strided_slice %295 {offsets = [0, 54], sizes = [2, 27], strides = [1, 1]} : vector<2x108xf32> to vector<2x27xf32>
    %309 = math.tanh %308 : vector<2x27xf32>
    %310 = vector.extract_strided_slice %295 {offsets = [0, 81], sizes = [2, 27], strides = [1, 1]} : vector<2x108xf32> to vector<2x27xf32>
    %311 = arith.negf %310 : vector<2x27xf32>
    %312 = math.exp %311 : vector<2x27xf32>
    %cst_50 = arith.constant 1.000000e+00 : f32
    %313 = vector.broadcast %cst_50 : f32 to vector<2x27xf32>
    %314 = arith.addf %313, %312 : vector<2x27xf32>
    %315 = arith.divf %313, %314 : vector<2x27xf32>
    %316 = arith.mulf %307, %289 : vector<2x27xf32>
    %317 = arith.mulf %301, %309 : vector<2x27xf32>
    %318 = arith.addf %316, %317 : vector<2x27xf32>
    %319 = math.tanh %318 : vector<2x27xf32>
    %320 = arith.mulf %315, %319 : vector<2x27xf32>
    %c4 = arith.constant 4 : index
    %c0_51 = arith.constant 0 : index
    %321 = vector.load %arg17[%c4, %c0_51] : memref<16x27xf32, #tpu.memory_space<vmem>>, vector<2x27xf32>
    tpu.vector_store %arg17[%c4, %c0_51], %320 {strides = array<i32>} : memref<16x27xf32, #tpu.memory_space<vmem>>, vector<2x27xf32>,
    %322 = vector.extract_strided_slice %233 {offsets = [6, 0], sizes = [2, 108], strides = [1, 1]} : vector<16x108xf32> to vector<2x108xf32>
    %cst_52 = arith.constant dense<0.000000e+00> : vector<2x108xf32>
    %323 = tpu.matmul %320, %234, %cst_52 {dimension_numbers = #tpu.dot_dimension_numbers<[1], [0], [0], [1], [0, 0, 1, 1], [], []>} : vector<2x27xf32>, vector<27x108xf32>, vector<2x108xf32> -> vector<2x108xf32>
    %324 = arith.addf %322, %323 : vector<2x108xf32>
    %325 = vector.extract_strided_slice %324 {offsets = [0, 0], sizes = [2, 27], strides = [1, 1]} : vector<2x108xf32> to vector<2x27xf32>
    %326 = arith.negf %325 : vector<2x27xf32>
    %327 = math.exp %326 : vector<2x27xf32>
    %cst_53 = arith.constant 1.000000e+00 : f32
    %328 = vector.broadcast %cst_53 : f32 to vector<2x27xf32>
    %329 = arith.addf %328, %327 : vector<2x27xf32>
    %330 = arith.divf %328, %329 : vector<2x27xf32>
    %331 = vector.extract_strided_slice %324 {offsets = [0, 27], sizes = [2, 27], strides = [1, 1]} : vector<2x108xf32> to vector<2x27xf32>
    %332 = arith.negf %331 : vector<2x27xf32>
    %333 = math.exp %332 : vector<2x27xf32>
    %cst_54 = arith.constant 1.000000e+00 : f32
    %334 = vector.broadcast %cst_54 : f32 to vector<2x27xf32>
    %335 = arith.addf %334, %333 : vector<2x27xf32>
    %336 = arith.divf %334, %335 : vector<2x27xf32>
    %337 = vector.extract_strided_slice %324 {offsets = [0, 54], sizes = [2, 27], strides = [1, 1]} : vector<2x108xf32> to vector<2x27xf32>
    %338 = math.tanh %337 : vector<2x27xf32>
    %339 = vector.extract_strided_slice %324 {offsets = [0, 81], sizes = [2, 27], strides = [1, 1]} : vector<2x108xf32> to vector<2x27xf32>
    %340 = arith.negf %339 : vector<2x27xf32>
    %341 = math.exp %340 : vector<2x27xf32>
    %cst_55 = arith.constant 1.000000e+00 : f32
    %342 = vector.broadcast %cst_55 : f32 to vector<2x27xf32>
    %343 = arith.addf %342, %341 : vector<2x27xf32>
    %344 = arith.divf %342, %343 : vector<2x27xf32>
    %345 = arith.mulf %336, %318 : vector<2x27xf32>
    %346 = arith.mulf %330, %338 : vector<2x27xf32>
    %347 = arith.addf %345, %346 : vector<2x27xf32>
    %348 = math.tanh %347 : vector<2x27xf32>
    %349 = arith.mulf %344, %348 : vector<2x27xf32>
    %c6 = arith.constant 6 : index
    %c0_56 = arith.constant 0 : index
    %350 = vector.load %arg17[%c6, %c0_56] : memref<16x27xf32, #tpu.memory_space<vmem>>, vector<2x27xf32>
    tpu.vector_store %arg17[%c6, %c0_56], %349 {strides = array<i32>} : memref<16x27xf32, #tpu.memory_space<vmem>>, vector<2x27xf32>,
    %351 = vector.extract_strided_slice %233 {offsets = [8, 0], sizes = [2, 108], strides = [1, 1]} : vector<16x108xf32> to vector<2x108xf32>
    %cst_57 = arith.constant dense<0.000000e+00> : vector<2x108xf32>
    %352 = tpu.matmul %349, %234, %cst_57 {dimension_numbers = #tpu.dot_dimension_numbers<[1], [0], [0], [1], [0, 0, 1, 1], [], []>} : vector<2x27xf32>, vector<27x108xf32>, vector<2x108xf32> -> vector<2x108xf32>
    %353 = arith.addf %351, %352 : vector<2x108xf32>
    %354 = vector.extract_strided_slice %353 {offsets = [0, 0], sizes = [2, 27], strides = [1, 1]} : vector<2x108xf32> to vector<2x27xf32>
    %355 = arith.negf %354 : vector<2x27xf32>
    %356 = math.exp %355 : vector<2x27xf32>
    %cst_58 = arith.constant 1.000000e+00 : f32
    %357 = vector.broadcast %cst_58 : f32 to vector<2x27xf32>
    %358 = arith.addf %357, %356 : vector<2x27xf32>
    %359 = arith.divf %357, %358 : vector<2x27xf32>
    %360 = vector.extract_strided_slice %353 {offsets = [0, 27], sizes = [2, 27], strides = [1, 1]} : vector<2x108xf32> to vector<2x27xf32>
    %361 = arith.negf %360 : vector<2x27xf32>
    %362 = math.exp %361 : vector<2x27xf32>
    %cst_59 = arith.constant 1.000000e+00 : f32
    %363 = vector.broadcast %cst_59 : f32 to vector<2x27xf32>
    %364 = arith.addf %363, %362 : vector<2x27xf32>
    %365 = arith.divf %363, %364 : vector<2x27xf32>
    %366 = vector.extract_strided_slice %353 {offsets = [0, 54], sizes = [2, 27], strides = [1, 1]} : vector<2x108xf32> to vector<2x27xf32>
    %367 = math.tanh %366 : vector<2x27xf32>
    %368 = vector.extract_strided_slice %353 {offsets = [0, 81], sizes = [2, 27], strides = [1, 1]} : vector<2x108xf32> to vector<2x27xf32>
    %369 = arith.negf %368 : vector<2x27xf32>
    %370 = math.exp %369 : vector<2x27xf32>
    %cst_60 = arith.constant 1.000000e+00 : f32
    %371 = vector.broadcast %cst_60 : f32 to vector<2x27xf32>
    %372 = arith.addf %371, %370 : vector<2x27xf32>
    %373 = arith.divf %371, %372 : vector<2x27xf32>
    %374 = arith.mulf %365, %347 : vector<2x27xf32>
    %375 = arith.mulf %359, %367 : vector<2x27xf32>
    %376 = arith.addf %374, %375 : vector<2x27xf32>
    %377 = math.tanh %376 : vector<2x27xf32>
    %378 = arith.mulf %373, %377 : vector<2x27xf32>
    %c8 = arith.constant 8 : index
    %c0_61 = arith.constant 0 : index
    %379 = vector.load %arg17[%c8, %c0_61] : memref<16x27xf32, #tpu.memory_space<vmem>>, vector<2x27xf32>
    tpu.vector_store %arg17[%c8, %c0_61], %378 {strides = array<i32>} : memref<16x27xf32, #tpu.memory_space<vmem>>, vector<2x27xf32>,
    %380 = vector.extract_strided_slice %233 {offsets = [10, 0], sizes = [2, 108], strides = [1, 1]} : vector<16x108xf32> to vector<2x108xf32>
    %cst_62 = arith.constant dense<0.000000e+00> : vector<2x108xf32>
    %381 = tpu.matmul %378, %234, %cst_62 {dimension_numbers = #tpu.dot_dimension_numbers<[1], [0], [0], [1], [0, 0, 1, 1], [], []>} : vector<2x27xf32>, vector<27x108xf32>, vector<2x108xf32> -> vector<2x108xf32>
    %382 = arith.addf %380, %381 : vector<2x108xf32>
    %383 = vector.extract_strided_slice %382 {offsets = [0, 0], sizes = [2, 27], strides = [1, 1]} : vector<2x108xf32> to vector<2x27xf32>
    %384 = arith.negf %383 : vector<2x27xf32>
    %385 = math.exp %384 : vector<2x27xf32>
    %cst_63 = arith.constant 1.000000e+00 : f32
    %386 = vector.broadcast %cst_63 : f32 to vector<2x27xf32>
    %387 = arith.addf %386, %385 : vector<2x27xf32>
    %388 = arith.divf %386, %387 : vector<2x27xf32>
    %389 = vector.extract_strided_slice %382 {offsets = [0, 27], sizes = [2, 27], strides = [1, 1]} : vector<2x108xf32> to vector<2x27xf32>
    %390 = arith.negf %389 : vector<2x27xf32>
    %391 = math.exp %390 : vector<2x27xf32>
    %cst_64 = arith.constant 1.000000e+00 : f32
    %392 = vector.broadcast %cst_64 : f32 to vector<2x27xf32>
    %393 = arith.addf %392, %391 : vector<2x27xf32>
    %394 = arith.divf %392, %393 : vector<2x27xf32>
    %395 = vector.extract_strided_slice %382 {offsets = [0, 54], sizes = [2, 27], strides = [1, 1]} : vector<2x108xf32> to vector<2x27xf32>
    %396 = math.tanh %395 : vector<2x27xf32>
    %397 = vector.extract_strided_slice %382 {offsets = [0, 81], sizes = [2, 27], strides = [1, 1]} : vector<2x108xf32> to vector<2x27xf32>
    %398 = arith.negf %397 : vector<2x27xf32>
    %399 = math.exp %398 : vector<2x27xf32>
    %cst_65 = arith.constant 1.000000e+00 : f32
    %400 = vector.broadcast %cst_65 : f32 to vector<2x27xf32>
    %401 = arith.addf %400, %399 : vector<2x27xf32>
    %402 = arith.divf %400, %401 : vector<2x27xf32>
    %403 = arith.mulf %394, %376 : vector<2x27xf32>
    %404 = arith.mulf %388, %396 : vector<2x27xf32>
    %405 = arith.addf %403, %404 : vector<2x27xf32>
    %406 = math.tanh %405 : vector<2x27xf32>
    %407 = arith.mulf %402, %406 : vector<2x27xf32>
    %c10 = arith.constant 10 : index
    %c0_66 = arith.constant 0 : index
    %408 = vector.load %arg17[%c10, %c0_66] : memref<16x27xf32, #tpu.memory_space<vmem>>, vector<2x27xf32>
    tpu.vector_store %arg17[%c10, %c0_66], %407 {strides = array<i32>} : memref<16x27xf32, #tpu.memory_space<vmem>>, vector<2x27xf32>,
    %409 = vector.extract_strided_slice %233 {offsets = [12, 0], sizes = [2, 108], strides = [1, 1]} : vector<16x108xf32> to vector<2x108xf32>
    %cst_67 = arith.constant dense<0.000000e+00> : vector<2x108xf32>
    %410 = tpu.matmul %407, %234, %cst_67 {dimension_numbers = #tpu.dot_dimension_numbers<[1], [0], [0], [1], [0, 0, 1, 1], [], []>} : vector<2x27xf32>, vector<27x108xf32>, vector<2x108xf32> -> vector<2x108xf32>
    %411 = arith.addf %409, %410 : vector<2x108xf32>
    %412 = vector.extract_strided_slice %411 {offsets = [0, 0], sizes = [2, 27], strides = [1, 1]} : vector<2x108xf32> to vector<2x27xf32>
    %413 = arith.negf %412 : vector<2x27xf32>
    %414 = math.exp %413 : vector<2x27xf32>
    %cst_68 = arith.constant 1.000000e+00 : f32
    %415 = vector.broadcast %cst_68 : f32 to vector<2x27xf32>
    %416 = arith.addf %415, %414 : vector<2x27xf32>
    %417 = arith.divf %415, %416 : vector<2x27xf32>
    %418 = vector.extract_strided_slice %411 {offsets = [0, 27], sizes = [2, 27], strides = [1, 1]} : vector<2x108xf32> to vector<2x27xf32>
    %419 = arith.negf %418 : vector<2x27xf32>
    %420 = math.exp %419 : vector<2x27xf32>
    %cst_69 = arith.constant 1.000000e+00 : f32
    %421 = vector.broadcast %cst_69 : f32 to vector<2x27xf32>
    %422 = arith.addf %421, %420 : vector<2x27xf32>
    %423 = arith.divf %421, %422 : vector<2x27xf32>
    %424 = vector.extract_strided_slice %411 {offsets = [0, 54], sizes = [2, 27], strides = [1, 1]} : vector<2x108xf32> to vector<2x27xf32>
    %425 = math.tanh %424 : vector<2x27xf32>
    %426 = vector.extract_strided_slice %411 {offsets = [0, 81], sizes = [2, 27], strides = [1, 1]} : vector<2x108xf32> to vector<2x27xf32>
    %427 = arith.negf %426 : vector<2x27xf32>
    %428 = math.exp %427 : vector<2x27xf32>
    %cst_70 = arith.constant 1.000000e+00 : f32
    %429 = vector.broadcast %cst_70 : f32 to vector<2x27xf32>
    %430 = arith.addf %429, %428 : vector<2x27xf32>
    %431 = arith.divf %429, %430 : vector<2x27xf32>
    %432 = arith.mulf %423, %405 : vector<2x27xf32>
    %433 = arith.mulf %417, %425 : vector<2x27xf32>
    %434 = arith.addf %432, %433 : vector<2x27xf32>
    %435 = math.tanh %434 : vector<2x27xf32>
    %436 = arith.mulf %431, %435 : vector<2x27xf32>
    %c12 = arith.constant 12 : index
    %c0_71 = arith.constant 0 : index
    %437 = vector.load %arg17[%c12, %c0_71] : memref<16x27xf32, #tpu.memory_space<vmem>>, vector<2x27xf32>
    tpu.vector_store %arg17[%c12, %c0_71], %436 {strides = array<i32>} : memref<16x27xf32, #tpu.memory_space<vmem>>, vector<2x27xf32>,
    %438 = vector.extract_strided_slice %233 {offsets = [14, 0], sizes = [2, 108], strides = [1, 1]} : vector<16x108xf32> to vector<2x108xf32>
    %cst_72 = arith.constant dense<0.000000e+00> : vector<2x108xf32>
    %439 = tpu.matmul %436, %234, %cst_72 {dimension_numbers = #tpu.dot_dimension_numbers<[1], [0], [0], [1], [0, 0, 1, 1], [], []>} : vector<2x27xf32>, vector<27x108xf32>, vector<2x108xf32> -> vector<2x108xf32>
    %440 = arith.addf %438, %439 : vector<2x108xf32>
    %441 = vector.extract_strided_slice %440 {offsets = [0, 0], sizes = [2, 27], strides = [1, 1]} : vector<2x108xf32> to vector<2x27xf32>
    %442 = arith.negf %441 : vector<2x27xf32>
    %443 = math.exp %442 : vector<2x27xf32>
    %cst_73 = arith.constant 1.000000e+00 : f32
    %444 = vector.broadcast %cst_73 : f32 to vector<2x27xf32>
    %445 = arith.addf %444, %443 : vector<2x27xf32>
    %446 = arith.divf %444, %445 : vector<2x27xf32>
    %447 = vector.extract_strided_slice %440 {offsets = [0, 27], sizes = [2, 27], strides = [1, 1]} : vector<2x108xf32> to vector<2x27xf32>
    %448 = arith.negf %447 : vector<2x27xf32>
    %449 = math.exp %448 : vector<2x27xf32>
    %cst_74 = arith.constant 1.000000e+00 : f32
    %450 = vector.broadcast %cst_74 : f32 to vector<2x27xf32>
    %451 = arith.addf %450, %449 : vector<2x27xf32>
    %452 = arith.divf %450, %451 : vector<2x27xf32>
    %453 = vector.extract_strided_slice %440 {offsets = [0, 54], sizes = [2, 27], strides = [1, 1]} : vector<2x108xf32> to vector<2x27xf32>
    %454 = math.tanh %453 : vector<2x27xf32>
    %455 = vector.extract_strided_slice %440 {offsets = [0, 81], sizes = [2, 27], strides = [1, 1]} : vector<2x108xf32> to vector<2x27xf32>
    %456 = arith.negf %455 : vector<2x27xf32>
    %457 = math.exp %456 : vector<2x27xf32>
    %cst_75 = arith.constant 1.000000e+00 : f32
    %458 = vector.broadcast %cst_75 : f32 to vector<2x27xf32>
    %459 = arith.addf %458, %457 : vector<2x27xf32>
    %460 = arith.divf %458, %459 : vector<2x27xf32>
    %461 = arith.mulf %452, %434 : vector<2x27xf32>
    %462 = arith.mulf %446, %454 : vector<2x27xf32>
    %463 = arith.addf %461, %462 : vector<2x27xf32>
    %464 = math.tanh %463 : vector<2x27xf32>
    %465 = arith.mulf %460, %464 : vector<2x27xf32>
    %c14 = arith.constant 14 : index
    %c0_76 = arith.constant 0 : index
    %466 = vector.load %arg17[%c14, %c0_76] : memref<16x27xf32, #tpu.memory_space<vmem>>, vector<2x27xf32>
    tpu.vector_store %arg17[%c14, %c0_76], %465 {strides = array<i32>} : memref<16x27xf32, #tpu.memory_space<vmem>>, vector<2x27xf32>,
    %c0_77 = arith.constant 0 : index
    %c0_78 = arith.constant 0 : index
    %467 = vector.load %arg17[%c0_77, %c0_78] : memref<16x27xf32, #tpu.memory_space<vmem>>, vector<16x27xf32>
    %468 = math.tanh %467 : vector<16x27xf32>
    %c0_79 = arith.constant 0 : index
    %c0_80 = arith.constant 0 : index
    %469 = vector.load %arg14[%c0_79, %c0_80] : memref<27x5xf32, #tpu.memory_space<vmem>>, vector<27x5xf32>
    %cst_81 = arith.constant dense<0.000000e+00> : vector<16x5xf32>
    %470 = tpu.matmul %468, %469, %cst_81 {dimension_numbers = #tpu.dot_dimension_numbers<[1], [0], [0], [1], [0, 0, 1, 1], [], []>} : vector<16x27xf32>, vector<27x5xf32>, vector<16x5xf32> -> vector<16x5xf32>
    %c0_82 = arith.constant 0 : index
    %c0_83 = arith.constant 0 : index
    %471 = vector.load %arg15[%c0_82, %c0_83] : memref<1x5xf32, #tpu.memory_space<vmem>>, vector<1x5xf32>
    %472 = vector.broadcast %471 : vector<1x5xf32> to vector<16x5xf32>
    %473 = arith.addf %470, %472 : vector<16x5xf32>
    %c0_84 = arith.constant 0 : index
    %c0_85 = arith.constant 0 : index
    %474 = vector.load %arg16[%c0_84, %c0_85] : memref<16x5xf32, #tpu.memory_space<vmem>>, vector<16x5xf32>
    tpu.vector_store %arg16[%c0_84, %c0_85], %473 {strides = array<i32>} : memref<16x5xf32, #tpu.memory_space<vmem>>, vector<16x5xf32>,
    return
  }
}

</mosaic_0001>

<bundles_post_ra>
// kernel: rnn_forward.1
= control target key start
LH: loop header
LB: loop body
LE: loop exit
PB: predicated region body
PF: predicated region fallthrough
CT: control target
= control target key end

     0   :  { %v7297_v0 = vmov 0   ;;  %vm228_vm0 = vcmask 1046528   ;;  %vm327_vm1 = vcmask 1045504   ;;  %vm1675_vm2 = vcmask 1044480   ;;  %s7274_s0 = inlined_call_operand.vmem [shape: f32[4,32,1], index: 0, kind: input, shape index: {}]   ;;  %s7275_s2 = inlined_call_operand.vmem [shape: f32[3,1,4], index: 2, kind: input, shape index: {}]   ;;  %s7276_s3 = inlined_call_operand.vmem [shape: f32[1,4], index: 3, kind: input, shape index: {}]   ;;  %s7277_s4 = inlined_call_operand.vmem [shape: f32[1,4], index: 4, kind: input, shape index: {}]   ;;  %s7278_s5 = inlined_call_operand.vmem [shape: f32[5,4,8], index: 5, kind: input, shape index: {}]   ;;  %s7279_s6 = inlined_call_operand.vmem [shape: f32[1,8], index: 6, kind: input, shape index: {}]   ;;  %s7280_s7 = inlined_call_operand.vmem [shape: f32[1,8], index: 7, kind: input, shape index: {}]   ;;  %s7281_s8 = inlined_call_operand.vmem [shape: f32[4,1,8], index: 8, kind: input, shape index: {}]   ;;  %s7282_s9 = inlined_call_operand.vmem [shape: f32[26,27], index: 9, kind: input, shape index: {}]   ;;  %s7283_s12 = inlined_call_operand.vmem [shape: f32[27,108], index: 12, kind: input, shape index: {}]   ;;  %s7284_s1 = inlined_call_operand.vmem [shape: f32[16,1], index: 1, kind: input, shape index: {}]   ;;  %s7285_s10 = inlined_call_operand.vmem [shape: f32[1,27], index: 10, kind: input, shape index: {}]   ;;  %s7286_s11 = inlined_call_operand.vmem [shape: f32[1,108], index: 11, kind: input, shape index: {}]   ;;  %s7287_s13 = inlined_call_operand.vmem [shape: f32[1,108], index: 13, kind: input, shape index: {}]   ;;  %s7288_s14 = inlined_call_operand.vmem [shape: f32[27,5], index: 14, kind: input, shape index: {}]   ;;  %s7289_s15 = inlined_call_operand.vmem [shape: f32[1,5], index: 15, kind: input, shape index: {}]   ;;  %s7290_s16 = inlined_call_operand.vmem [shape: f32[16,5], index: 16, kind: output, shape index: {}]  }
   0x1   :  { %7503 = sst [smem:[#allocation202_spill]] %s7274_s0  ;;  %4031 = vset.pattern.permute.xlu1 %v7297_v0  ;;  %4030 = vset.pattern.permute.xlu0 %v7297_v0  ;;  %v4288_v29 = vld [vmem:[%s7275_s2 + $0x1] ss:$0 sm:$0xff]  ;;  %v4296_v33 = vld [vmem:[%s7275_s2] ss:$0 sm:$0xff]  ;;  %vm2060_vm3 = vcmask 1043456  }
   0x2   :  { %s7504_s23 = sld [smem:[#allocation202_spill]]  ;;  %v4301_v34 = vld [vmem:[%s7275_s2 + $0x2] ss:$0 sm:$0xff]  ;;  %vm2525_vm4 = vcmask 58368   ;;  %vm2515_vm5 = vcmask 64512   ;;  %vm2643_vm6 = vcmask 1041408  }
   0x3   :  { %vm4123_vm7 = vmmov 0   ;;  %vm4125_vm8 = vmmov 1   ;;  %vm2603_vm10 = vcmask 130112   ;;  %vm2610_vm11 = vcmask 195712  }
   0x4   :  { %vm3950_vm9 = vmpackc.low %vm2643_vm6, %vm4125_vm8  ;;  %vm2617_vm12 = vcmask 261312   ;;  %vm2638_vm13 = vcmask 1041409   ;;  %vm2640_vm14 = vcmask 211968   ;;  %vm2755_vm15 = vcmask 1042432  }
   0x5   :  { %vm3733_vm6 = vcmask 39936  }
   0x8   :  { %v55_v1 = vld [vmem:[%s7504_s23 + $0x10] sm:$0xff]  ;;  %v53_v2 = vld [vmem:[%s7504_s23] sm:$0xff]  ;;  %v54_v4 = vld [vmem:[%s7504_s23 + $0x8] sm:$0xff] }
   0x9   :  { %84 = vperm.xlu1 %4031, %v55_v1   ;;  %74 = vperm.xlu0 %4030, %v53_v2   ;;  %v57_v3 = vld [vmem:[%s7504_s23 + $0x20] sm:$0xff]  ;;  %v59_v5 = vld [vmem:[%s7504_s23 + $0x30] sm:$0xff]  ;;  %v58_v6 = vld [vmem:[%s7504_s23 + $0x28] sm:$0xff] }
   0xa   :  { %v62_v7 = vld [vmem:[%s7504_s23 + $0x48] sm:$0xff]  ;;  %v61_v8 = vld [vmem:[%s7504_s23 + $0x40] sm:$0xff]  ;;  %v63_v10 = vld [vmem:[%s7504_s23 + $0x50] sm:$0xff] }
   0xb   :  { %v65_v9 = vld [vmem:[%s7504_s23 + $0x60] sm:$0xff]  ;;  %v67_v11 = vld [vmem:[%s7504_s23 + $0x70] sm:$0xff]  ;;  %v66_v12 = vld [vmem:[%s7504_s23 + $0x68] sm:$0xff] }
   0xc   :  { %v60_v13 = vld [vmem:[%s7504_s23 + $0x38] sm:$0xff]  ;;  %v4360_v2 = vld [vmem:[%s7276_s3] ss:$0 sm:$0xff] }
   0xd   :  { %94 = vperm.xlu1 %4031, %v57_v3   ;;  %79 = vperm.xlu0 %4030, %v54_v4   ;;  %v56_v14 = vld [vmem:[%s7504_s23 + $0x18] sm:$0xff] }
   0xe   :  { %v68_v15 = vld [vmem:[%s7504_s23 + $0x78] sm:$0xff] }
   0xf   :  { %v64_v16 = vld [vmem:[%s7504_s23 + $0x58] sm:$0xff] }
  0x11   :  { %104 = vperm.xlu1 %4031, %v59_v5   ;;  %99 = vperm.xlu0 %4030, %v58_v6  }
  0x15   :  { %119 = vperm.xlu1 %4031, %v62_v7   ;;  %114 = vperm.xlu0 %4030, %v61_v8  }
  0x19   :  { %134 = vperm.xlu1 %4031, %v65_v9   ;;  %124 = vperm.xlu0 %4030, %v63_v10  }
  0x1d   :  { %144 = vperm.xlu1 %4031, %v67_v11   ;;  %139 = vperm.xlu0 %4030, %v66_v12   ;;  %v4376_v11 = vld [vmem:[%s7277_s4] ss:$0 sm:$0xff]  ;;  %s4126_s4 = smov 74  }
  0x21   :  { %109 = vperm.xlu1 %4031, %v60_v13   ;;  %89 = vperm.xlu0 %4030, %v56_v14  }
  0x25   :  { %149 = vperm.xlu1 %4031, %v68_v15   ;;  %129 = vperm.xlu0 %4030, %v64_v16  }
  0x88   :  { %v4265_v17 = vpop.permute.xlu1 %84  ;;  %v4267_v18 = vpop.permute.xlu0 %74 }
  0x89   :  { %v4305_v35 = vmul.f32 %v4288_v29, %v4267_v18  ;;  %v4318_v41 = vmul.f32 %v4288_v29, %v4265_v17  ;;  %v4328_v44 = vmul.f32 %v4301_v34, %v4267_v18 }
  0x8b   :  { %v229_v48 = vrot.slane %v4305_v35, 1 }
  0x8c   :  { %v4269_v19 = vpop.permute.xlu1 %94  ;;  %v4271_v20 = vpop.permute.xlu0 %79 }
  0x8d   :  { %v4309_v36 = vmul.f32 %v4288_v29, %v4271_v20 }
  0x8f   :  { %v230_v53 = vrot.slane %v4309_v36, 1 }
  0x90   :  { %v4273_v21 = vpop.permute.xlu1 %104  ;;  %v4275_v22 = vpop.permute.xlu0 %99 }
  0x91   :  { %v4382_v16 = vmul.f32 %v4288_v29, %v4275_v22 }
  0x94   :  { %v4277_v23 = vpop.permute.xlu1 %119  ;;  %v4279_v24 = vpop.permute.xlu0 %114 }
  0x98   :  { %v4281_v25 = vpop.permute.xlu1 %134  ;;  %v125_v26 = vpop.permute.xlu0 %124 }
  0x99   :  { %v4342_v54 = vmul.f32 %v4288_v29, %v125_v26  ;;  %v4348_v57 = vmul.f32 %v4301_v34, %v125_v26 }
  0x9b   :  { %v246_v7 = vrot.slane %v4342_v54, 1  ;;  %v345_v35 = vrot.slane %v4348_v57, 2 }
  0x9c   :  { %v145_v27 = vpop.permute.xlu1 %144  ;;  %v4283_v28 = vpop.permute.xlu0 %139 }
  0x9d   :  { %v4331_v45 = vmul.f32 %v4288_v29, %v145_v27  ;;  %v172_v58 = vmul.f32 %v4296_v33, %v145_v27  ;;  %v4363_v3 = vmul.f32 %v4301_v34, %v145_v27  ;;  %v168_v27 = vmul.f32 %v4296_v33, %v125_v26 }
  0x9e   :  { %v4396_v26 = vmul.f32 %v4301_v34, %v4271_v20 }
  0x9f   :  { %v253_v61 = vrot.slane %v4331_v45, 1 }
  0xa0   :  { %v110_v30 = vpop.permute.xlu1 %109  ;;  %v90_v31 = vpop.permute.xlu0 %89 }
  0xa1   :  { %v4291_v32 = vmul.f32 %v4288_v29, %v110_v30  ;;  %v165_v37 = vmul.f32 %v4296_v33, %v110_v30  ;;  %v4314_v39 = vmul.f32 %v4301_v34, %v110_v30  ;;  %v4321_v42 = vmul.f32 %v4288_v29, %v90_v31 }
  0xa2   :  { %v4324_v43 = vmul.f32 %v4301_v34, %v90_v31  ;;  %v161_v49 = vmul.f32 %v4296_v33, %v90_v31 }
  0xa3   :  { %v7295_v38 = vrot.slane %v4291_v32, 1  ;;  %v7293_v47 = vrot.slane %v4314_v39, 2  ;;  %v7294_v50 = vrot.slane %v4321_v42, 1 }
  0xa4   :  { %v150_v40 = vpop.permute.xlu1 %149  ;;  %v130_v52 = vpop.permute.xlu0 %129  ;;  %v7292_v60 = vrot.slane %v4324_v43, 2 }
  0xa5   :  { %v280_v46 = vadd.f32 %v7295_v38, %v165_v37  ;;  %v211_v51 = vmul.f32 %v4288_v29, %v150_v40  ;;  %v310_v56 = vmul.f32 %v4301_v34, %v150_v40  ;;  %v276_v59 = vadd.f32 %v7294_v50, %v161_v49 }
  0xa6   :  { %v173_v62 = vmul.f32 %v4296_v33, %v150_v40  ;;  %v207_v1 = vmul.f32 %v4288_v29, %v130_v52  ;;  %v306_v5 = vmul.f32 %v4301_v34, %v130_v52  ;;  %v169_v12 = vmul.f32 %v4296_v33, %v130_v52 }
  0xa7   :  { %v379_v55 = vadd.f32 %v7293_v47, %v280_v46  ;;  %v255_v63 = vrot.slane %v211_v51, 1  ;;  %v375_v4 = vadd.f32 %v7292_v60, %v276_v59  ;;  %v354_v10 = vrot.slane %v310_v56, 2 }
  0xa8   :  { %v248_v13 = vrot.slane %v207_v1, 1  ;;  %v347_v14 = vrot.slane %v306_v5, 2  ;;  %v352_v49 = vrot.slane %v4363_v3, 2  ;;  %v158_v5 = vmul.f32 %v4296_v33, %v4267_v18 }
  0xa9   :  { %v402_v6 = vmul.f32 %v4360_v2, %v379_v55  ;;  %v256_v8 = vsel %vm228_vm0, %v253_v61, %v255_v63  ;;  %v288_v9 = vadd.f32 %v255_v63, %v173_v62  ;;  %v398_v31 = vmul.f32 %v4360_v2, %v375_v4 }
  0xaa   :  { %v287_v37 = vadd.f32 %v256_v8, %v172_v58  ;;  %v249_v40 = vsel %vm228_vm0, %v246_v7, %v248_v13  ;;  %v284_v46 = vadd.f32 %v248_v13, %v169_v12  ;;  %v348_v56 = vsel %vm327_vm1, %v345_v35, %v347_v14 }
  0xab   :  { %v425_v15 = vadd.f32 %v4376_v11, %v402_v6  ;;  %v387_v30 = vadd.f32 %v354_v10, %v288_v9  ;;  %v283_v51 = vadd.f32 %v249_v40, %v168_v27  ;;  %v421_v55 = vadd.f32 %v4376_v11, %v398_v31 }
  0xac   :  { %v383_v58 = vadd.f32 %v347_v14, %v284_v46  ;;  %v200_v62 = vmul.f32 %v4288_v29, %v4269_v19  ;;  %v355_v63 = vsel %vm327_vm1, %v352_v49, %v354_v10  ;;  %v4414_v6 = vmul.f32 %v4288_v29, %v4277_v23 }
  0xad   :  { %v4391_v52 = vmax.f32 %v425_v15, 0.0  ;;  %v410_v59 = vmul.f32 %v4360_v2, %v387_v30  ;;  %v382_v1 = vadd.f32 %v348_v56, %v283_v51  ;;  %v4408_v4 = vmax.f32 %v421_v55, 0.0 }
  0xae   :  { %v386_v8 = vadd.f32 %v355_v63, %v287_v37  ;;  %v406_v9 = vmul.f32 %v4360_v2, %v383_v58  ;;  %v328_v12 = vrot.slane %v4328_v44, 2  ;;  %v231_v10 = vsel %vm228_vm0, %v229_v48, %v230_v53 }
  0xaf   :  { %492 = vperm.xlu0 %4030, %v4391_v52   ;;  %v237_v13 = vrot.slane %v4382_v16, 1  ;;  %v204_v14 = vmul.f32 %v4288_v29, %v4279_v24  ;;  %472 = vperm.xlu1 %4031, %v4408_v4   ;;  %v329_v18 = vrot.slane %v4396_v26, 2  ;;  %v4428_v15 = vmul.f32 %v4301_v34, %v4275_v22 }
  0xb0   :  { %v429_v27 = vadd.f32 %v4376_v11, %v406_v9  ;;  %v433_v44 = vadd.f32 %v4376_v11, %v410_v59  ;;  %v162_v48 = vmul.f32 %v4296_v33, %v4269_v19  ;;  %v236_v30 = vrot.slane %v200_v62, 1 }
  0xb1   :  { %v299_v31 = vmul.f32 %v4301_v34, %v4269_v19  ;;  %v4438_v37 = vmul.f32 %v4288_v29, %v4273_v21  ;;  %v4119_v40 = vmov 1   ;;  %v273_v46 = vadd.f32 %v231_v10, %v158_v5 }
  0xb2   :  { %v244_v51 = vrot.slane %v4414_v6, 1  ;;  %v4442_v55 = vmax.f32 %v429_v27, 0.0  ;;  %v409_v56 = vmul.f32 %v4360_v2, %v386_v8  ;;  %v238_v19 = vsel %vm228_vm0, %v236_v30, %v237_v13 }
  0xb3   :  { %4032 = vset.pattern.permute.xlu0 %v4119_v40  ;;  %v243_v58 = vrot.slane %v204_v14, 1  ;;  %v4451_v59 = vmul.f32 %v4288_v29, %v4283_v28  ;;  %v405_v62 = vmul.f32 %v4360_v2, %v382_v1  ;;  %v330_v63 = vsel %vm327_vm1, %v328_v12, %v329_v18 }
  0xb4   :  { %584 = vperm.xlu0 %4032, %v4408_v4   ;;  %v336_v5 = vrot.slane %v4428_v15, 2  ;;  %512 = vperm.xlu1 %4031, %v4442_v55   ;;  %v4459_v8 = vmax.f32 %v433_v44, 0.0  ;;  %v4462_v9 = vadd.f32 %v4376_v11, %v409_v56  ;;  %v4466_v10 = vmul.f32 %v4301_v34, %v4277_v23 }
  0xb5   :  { %v303_v1 = vmul.f32 %v4301_v34, %v4279_v24  ;;  %v208_v14 = vmul.f32 %v4288_v29, %v4281_v25  ;;  %v4473_v12 = vadd.f32 %v4376_v11, %v405_v62  ;;  %v232_v27 = vrot.slane %v4318_v41, 1 }
  0xb6   :  { %v335_v44 = vrot.slane %v299_v31, 2  ;;  %v372_v30 = vadd.f32 %v330_v63, %v273_v46  ;;  %v277_v60 = vadd.f32 %v238_v19, %v162_v48  ;;  %v245_v56 = vsel %vm228_vm0, %v243_v58, %v244_v51 }
  0xb7   :  { %v251_v47 = vrot.slane %v4451_v59, 1  ;;  %v4483_v50 = vmul.f32 %v4301_v34, %v4265_v17  ;;  %v239_v29 = vrot.slane %v4438_v37, 1  ;;  %v166_v48 = vmul.f32 %v4296_v33, %v4279_v24 }
  0xb8   :  { %632 = vperm.xlu0 %4032, %v4459_v8   ;;  %v337_v31 = vsel %vm327_vm1, %v335_v44, %v336_v5  ;;  %532 = vperm.xlu1 %4031, %v4459_v8   ;;  %v343_v46 = vrot.slane %v4466_v10, 2  ;;  %v342_v19 = vrot.slane %v303_v1, 2  ;;  %v250_v58 = vrot.slane %v208_v14, 1 }
  0xb9   :  { %v4495_v59 = vmul.f32 %v4301_v34, %v4283_v28  ;;  %v233_v62 = vsel %vm228_vm0, %v230_v53, %v232_v27  ;;  %v376_v63 = vadd.f32 %v337_v31, %v277_v60  ;;  %v281_v44 = vadd.f32 %v245_v56, %v166_v48 }
  0xba   :  { %v4120_v38 = vmov 2   ;;  %v395_v24 = vmul.f32 %v4360_v2, %v372_v30  ;;  %v159_v10 = vmul.f32 %v4296_v33, %v4271_v20  ;;  %v307_v1 = vmul.f32 %v4301_v34, %v4281_v25 }
  0xbb   :  { %v252_v14 = vsel %vm228_vm0, %v250_v58, %v251_v47  ;;  %v331_v36 = vrot.slane %v4483_v50, 2  ;;  %v4513_v53 = vmul.f32 %v4301_v34, %v4273_v21  ;;  %v170_v60 = vmul.f32 %v4296_v33, %v4281_v25 }
  0xbc   :  { %4034 = vset.pattern.permute.xlu0 %v4120_v38  ;;  %4033 = vset.pattern.permute.xlu1 %v4119_v40  ;;  %v274_v30 = vadd.f32 %v233_v62, %v159_v10  ;;  %v240_v20 = vsel %vm228_vm0, %v237_v13, %v239_v29  ;;  %v344_v56 = vsel %vm327_vm1, %v342_v19, %v343_v46  ;;  %v350_v31 = vrot.slane %v4495_v59, 2 }
  0xbd   :  { %684 = vperm.xlu0 %4034, %v4408_v4   ;;  %600 = vperm.xlu1 %4033, %v4391_v52   ;;  %v380_v34 = vadd.f32 %v344_v56, %v281_v44  ;;  %v285_v48 = vadd.f32 %v252_v14, %v170_v60  ;;  %v418_v58 = vadd.f32 %v4376_v11, %v395_v24  ;;  %v349_v10 = vrot.slane %v307_v1, 2 }
  0xbe   :  { %v399_v25 = vmul.f32 %v4360_v2, %v376_v63  ;;  %v163_v62 = vmul.f32 %v4296_v33, %v4275_v22  ;;  %v332_v16 = vsel %vm327_vm1, %v329_v18, %v331_v36  ;;  %v338_v13 = vrot.slane %v4513_v53, 2 }
  0xbf   :  { %v373_v19 = vadd.f32 %v332_v16, %v274_v30  ;;  %v247_v63 = vsel %vm228_vm0, %v244_v51, %v246_v7  ;;  %v351_v22 = vsel %vm327_vm1, %v349_v10, %v350_v31  ;;  %v4544_v24 = vmax.f32 %v418_v58, 0.0 }
  0xc0   :  { %v278_v59 = vadd.f32 %v240_v20, %v163_v62  ;;  %v384_v44 = vadd.f32 %v351_v22, %v285_v48  ;;  %v422_v26 = vadd.f32 %v4376_v11, %v399_v25  ;;  %v403_v18 = vmul.f32 %v4360_v2, %v380_v34 }
  0xc1   :  { %716 = vperm.xlu0 %4034, %v4442_v55   ;;  %616 = vperm.xlu1 %4033, %v4442_v55   ;;  %v167_v1 = vmul.f32 %v4296_v33, %v4277_v23  ;;  %v339_v54 = vsel %vm327_vm1, %v336_v5, %v338_v13  ;;  %v396_v51 = vmul.f32 %v4360_v2, %v373_v19  ;;  %v7505_v3 = vrot.slane %v4291_v32, 1 }
  0xc2   :  { %v377_v7 = vadd.f32 %v339_v54, %v278_v59  ;;  %v254_v14 = vsel %vm228_vm0, %v251_v47, %v253_v61  ;;  %v4561_v23 = vmax.f32 %v422_v26, 0.0  ;;  %v426_v15 = vadd.f32 %v4376_v11, %v403_v18  ;;  %v454_v18 = vld [vmem:[%s7278_s5 + $0x10] sm:$0xf] }
  0xc3   :  { %v282_v6 = vadd.f32 %v247_v63, %v167_v1  ;;  %v407_v5 = vmul.f32 %v4360_v2, %v384_v44  ;;  %v171_v53 = vmul.f32 %v4296_v33, %v4283_v28  ;;  %v346_v60 = vsel %vm327_vm1, %v343_v46, %v345_v35 }
  0xc4   :  { %v419_v47 = vadd.f32 %v4376_v11, %v396_v51  ;;  %v400_v61 = vmul.f32 %v4360_v2, %v377_v7  ;;  %v4574_v20 = vmax.f32 %v426_v15, 0.0  ;;  %v353_v28 = vsel %vm327_vm1, %v350_v31, %v352_v49 }
  0xc5   :  { %4036 = vset.pattern.permute.xlu0 %v7297_v0  ;;  %4035 = vset.pattern.permute.xlu1 %v4120_v38  ;;  %v381_v45 = vadd.f32 %v346_v60, %v282_v6  ;;  %v286_v30 = vadd.f32 %v254_v14, %v171_v53  ;;  %v430_v56 = vadd.f32 %v4376_v11, %v407_v5  ;;  %v7506_v37 = vrot.slane %v4321_v42, 1 }
  0xc6   :  { %457 = vperm.xlu0 %4036, %v4544_v24   ;;  %700 = vperm.xlu1 %4035, %v4391_v52   ;;  %v4581_v35 = vmax.f32 %v419_v47, 0.0  ;;  %v423_v46 = vadd.f32 %v4376_v11, %v400_v61  ;;  %v242_v49 = vsel %vm228_vm0, %v239_v29, %v7505_v3  ;;  %v164_v62 = vmul.f32 %v4296_v33, %v4273_v21 }
  0xc7   :  { %v385_v57 = vadd.f32 %v353_v28, %v286_v30  ;;  %v404_v34 = vmul.f32 %v4360_v2, %v381_v45  ;;  %v4586_v48 = vmax.f32 %v430_v56, 0.0  ;;  %v235_v29 = vsel %vm228_vm0, %v232_v27, %v7506_v37 }
  0xc8   :  { %v439_v31 = vmax.f32 %v423_v46, 0.0  ;;  %v279_v10 = vadd.f32 %v242_v49, %v164_v62  ;;  %v160_v19 = vmul.f32 %v4296_v33, %v4265_v17  ;;  %v7507_v21 = vrot.slane %v4314_v39, 2 }
  0xc9   :  { %v427_v58 = vadd.f32 %v4376_v11, %v404_v34  ;;  %v408_v25 = vmul.f32 %v4360_v2, %v385_v57  ;;  %v7508_v26 = vrot.slane %v4324_v43, 2 }
  0xca   :  { %477 = vperm.xlu0 %4036, %v4561_v23   ;;  %732 = vperm.xlu1 %4035, %v4459_v8   ;;  %v341_v59 = vsel %vm327_vm1, %v338_v13, %v7507_v21  ;;  %v275_v22 = vadd.f32 %v235_v29, %v160_v19  ;;  %v452_v13 = vld [vmem:[%s7278_s5 + $0x8] sm:$0xf] }
  0xcb   :  { %v443_v16 = vmax.f32 %v427_v58, 0.0  ;;  %v431_v32 = vadd.f32 %v4376_v11, %v408_v25  ;;  %v378_v63 = vadd.f32 %v341_v59, %v279_v10  ;;  %v334_v41 = vsel %vm327_vm1, %v331_v36, %v7508_v26  ;;  %v451_v36 = vld [vmem:[%s7278_s5 + $0x4] sm:$0xf] }
  0xcc   :  { %v374_v27 = vadd.f32 %v334_v41, %v275_v22 }
  0xcd   :  { %v447_v44 = vmax.f32 %v431_v32, 0.0  ;;  %v401_v42 = vmul.f32 %v4360_v2, %v378_v63 }
  0xce   :  { %497 = vperm.xlu0 %4036, %v4574_v20   ;;  %4037 = vset.pattern.permute.xlu1 %v7297_v0  ;;  %v397_v33 = vmul.f32 %v4360_v2, %v374_v27  ;;  %v448_v2 = vmax.f32 %v4462_v9, 0.0  ;;  %v4121_v9 = vmov 3  }
  0xcf   :  { %462 = vperm.xlu1 %4037, %v4581_v35   ;;  %v424_v17 = vadd.f32 %v4376_v11, %v401_v42 }
  0xd0   :  { %v420_v43 = vadd.f32 %v4376_v11, %v397_v33  ;;  %v4635_v11 = vmax.f32 %v4473_v12, 0.0 }
  0xd1   :  { %v440_v39 = vmax.f32 %v424_v17, 0.0 }
  0xd2   :  { %517 = vperm.xlu0 %4036, %v4586_v48   ;;  %v4626_v50 = vmax.f32 %v420_v43, 0.0 }
  0xd3   :  { %482 = vperm.xlu1 %4037, %v439_v31  }
  0xd6   :  { %4038 = vset.pattern.permute.xlu0 %v4119_v40 }
  0xd7   :  { %572 = vperm.xlu0 %4038, %v4544_v24   ;;  %502 = vperm.xlu1 %4037, %v443_v16  }
  0xdb   :  { %592 = vperm.xlu0 %4038, %v439_v31   ;;  %522 = vperm.xlu1 %4037, %v447_v44  }
  0xdf   :  { %608 = vperm.xlu0 %4038, %v443_v16   ;;  %4039 = vset.pattern.permute.xlu1 %v4119_v40 }
  0xe0   :  { %576 = vperm.xlu1 %4039, %v4581_v35  }
  0xe3   :  { %624 = vperm.xlu0 %4038, %v447_v44  }
  0xe4   :  { %588 = vperm.xlu1 %4039, %v4561_v23  }
  0xe7   :  { %4041 = vset.pattern.permute.xlu0 %v7297_v0 }
  0xe8   :  { %487 = vperm.xlu0 %4041, %v440_v39   ;;  %604 = vperm.xlu1 %4039, %v4574_v20  }
  0xec   :  { %4042 = vset.pattern.permute.xlu0 %v4119_v40  ;;  %620 = vperm.xlu1 %4039, %v4586_v48  }
  0xed   :  { %580 = vperm.xlu0 %4042, %v4626_v50  }
  0xf0   :  { %4040 = vset.pattern.permute.xlu1 %v7297_v0 }
  0xf1   :  { %628 = vperm.xlu0 %4042, %v448_v2   ;;  %467 = vperm.xlu1 %4040, %v4626_v50  }
  0xf5   :  { %4045 = vset.pattern.permute.xlu0 %v4120_v38  ;;  %507 = vperm.xlu1 %4040, %v4635_v11  }
  0xf6   :  { %676 = vperm.xlu0 %4045, %v4581_v35  }
  0xf9   :  { %527 = vperm.xlu1 %4040, %v448_v2  }
  0xfa   :  { %704 = vperm.xlu0 %4045, %v4574_v20  }
  0xfd   :  { %4043 = vset.pattern.permute.xlu1 %v4119_v40  ;;  %v7296_v40 = vlaneseq }
  0xfe   :  { %720 = vperm.xlu0 %4045, %v4586_v48   ;;  %596 = vperm.xlu1 %4043, %v440_v39  }
 0x102   :  { %680 = vperm.xlu0 %4045, %v4626_v50   ;;  %612 = vperm.xlu1 %4043, %v4635_v11  }
 0x106   :  { %712 = vperm.xlu0 %4045, %v4635_v11   ;;  %4044 = vset.pattern.permute.xlu1 %v4120_v38  ;;  %v4652_v38 = vshrl.u32 %v7296_v40, 7 }
 0x107   :  { %672 = vperm.xlu1 %4044, %v4544_v24  }
 0x108   :  { %7509 = vst [vmem:[#allocation3_spill] sm:$0xff] %v4652_v38  ;;  %v537_v12 = vsub.s32 0, %v4652_v38  ;;  %v737_v1 = vsub.s32 2, %v4652_v38  ;;  %v837_v6 = vsub.s32 3, %v4652_v38 }
 0x10a   :  { %4046 = vset.pattern.permute.xlu0 %v4121_v9  ;;  %v4676_v54 = vrot.slane %v451_v36, %v537_v12  ;;  %v4678_v7 = vrot.slane %v452_v13, %v537_v12  ;;  %v4700_v61 = vrot.slane %v451_v36, %v737_v1  ;;  %v4702_v56 = vrot.slane %v452_v13, %v737_v1 }
 0x10b   :  { %772 = vperm.xlu0 %4046, %v4544_v24   ;;  %688 = vperm.xlu1 %4044, %v4561_v23   ;;  %v450_v24 = vld [vmem:[%s7278_s5] sm:$0xf]  ;;  %v4712_v46 = vrot.slane %v454_v18, %v737_v1  ;;  %v4725_v58 = vrot.slane %v451_v36, %v837_v6  ;;  %v4745_v21 = vrot.slane %v454_v18, %v837_v6 }
 0x10c   :  { %v4681_v51 = vrot.slane %v450_v24, %v537_v12  ;;  %v4698_v47 = vrot.slane %v450_v24, %v737_v1  ;;  %v4714_v34 = vrot.slane %v450_v24, %v837_v6 }
 0x10d   :  { %7512 = vst [vmem:[#allocation6_spill] sm:$0xff] %v4712_v46  ;;  %7517 = vst [vmem:[#allocation11_spill] sm:$0xff] %v4725_v58 }
 0x10e   :  { %7513 = vst [vmem:[#allocation7_spill] sm:$0xff] %v4714_v34  ;;  %7523 = vst [vmem:[#allocation17_spill] sm:$0xff] %v4745_v21 }
 0x10f   :  { %792 = vperm.xlu0 %4046, %v439_v31   ;;  %692 = vperm.xlu1 %4044, %v439_v31  }
 0x113   :  { %808 = vperm.xlu0 %4046, %v443_v16   ;;  %708 = vperm.xlu1 %4044, %v443_v16   ;;  %v4737_v16 = vrot.slane %v452_v13, %v837_v6 }
 0x115   :  { %7521 = vst [vmem:[#allocation15_spill] sm:$0xff] %v4737_v16 }
 0x117   :  { %824 = vperm.xlu0 %4046, %v447_v44   ;;  %724 = vperm.xlu1 %4044, %v447_v44  }
 0x11b   :  { %796 = vperm.xlu0 %4046, %v440_v39   ;;  %696 = vperm.xlu1 %4044, %v440_v39  }
 0x11f   :  { %828 = vperm.xlu0 %4046, %v448_v2   ;;  %728 = vperm.xlu1 %4044, %v448_v2  }
 0x123   :  { %800 = vperm.xlu0 %4046, %v4391_v52   ;;  %4047 = vset.pattern.permute.xlu1 %v4121_v9  ;;  %v637_v52 = vsub.s32 1, %v4652_v38 }
 0x124   :  { %776 = vperm.xlu1 %4047, %v4581_v35  }
 0x125   :  { %v4687_v15 = vrot.slane %v450_v24, %v637_v52  ;;  %v4690_v53 = vrot.slane %v451_v36, %v637_v52  ;;  %v4692_v60 = vrot.slane %v452_v13, %v637_v52  ;;  %v4696_v30 = vrot.slane %v454_v18, %v637_v52 }
 0x127   :  { %832 = vperm.xlu0 %4046, %v4459_v8   ;;  %v453_v8 = vld [vmem:[%s7278_s5 + $0xc] sm:$0xf] }
 0x128   :  { %788 = vperm.xlu1 %4047, %v4561_v23   ;;  %v4683_v14 = vrot.slane %v453_v8, %v537_v12  ;;  %v4685_v23 = vrot.slane %v454_v18, %v537_v12  ;;  %v4694_v45 = vrot.slane %v453_v8, %v637_v52  ;;  %v4704_v28 = vrot.slane %v453_v8, %v737_v1 }
 0x129   :  { %v4743_v19 = vrot.slane %v453_v8, %v837_v6 }
 0x12b   :  { %4048 = vset.pattern.permute.xlu0 %v7297_v0  ;;  %7522 = vst [vmem:[#allocation16_spill] sm:$0xff] %v4743_v19 }
 0x12c   :  { %804 = vperm.xlu1 %4047, %v4574_v20  }
 0x12e   :  { %v493_v5 = vpop.permute.xlu0 %492  ;;  %v473_v57 = vpop.permute.xlu1 %472 }
 0x12f   :  { %v4707_v20 = vmul.f32 %v4676_v54, %v493_v5  ;;  %v4710_v35 = vmul.f32 %v4678_v7, %v493_v5  ;;  %v4717_v3 = vmul.f32 %v4676_v54, %v473_v57  ;;  %v4720_v49 = vmul.f32 %v4678_v7, %v473_v57 }
 0x130   :  { %v4723_v31 = vmul.f32 %v4683_v14, %v493_v5  ;;  %v4728_v25 = vmul.f32 %v4683_v14, %v473_v57  ;;  %v4731_v62 = vmul.f32 %v4685_v23, %v473_v57  ;;  %v4734_v10 = vmul.f32 %v4685_v23, %v493_v5  ;;  %820 = vperm.xlu1 %4047, %v4586_v48  }
 0x131   :  { %7510 = vst [vmem:[#allocation4_spill] sm:$0xff] %v4707_v20  ;;  %7511 = vst [vmem:[#allocation5_spill] sm:$0xff] %v4710_v35  ;;  %v542_v32 = vmul.f32 %v4681_v51, %v473_v57  ;;  %v4741_v37 = vmul.f32 %v4681_v51, %v493_v5 }
 0x132   :  { %7514 = vst [vmem:[#allocation8_spill] sm:$0xff] %v4717_v3  ;;  %7515 = vst [vmem:[#allocation9_spill] sm:$0xff] %v4720_v49 }
 0x133   :  { %7516 = vst [vmem:[#allocation10_spill] sm:$0xff] %v4723_v31  ;;  %7518 = vst [vmem:[#allocation12_spill] sm:$0xff] %v4728_v25  ;;  %v585_v29 = vpop.permute.xlu0 %584  ;;  %v513_v42 = vpop.permute.xlu1 %512 }
 0x134   :  { %7519 = vst [vmem:[#allocation13_spill] sm:$0xff] %v4731_v62  ;;  %7520 = vst [vmem:[#allocation14_spill] sm:$0xff] %v4734_v10  ;;  %v642_v22 = vmul.f32 %v4687_v15, %v585_v29  ;;  %v4751_v48 = vmul.f32 %v4690_v53, %v585_v29  ;;  %v4757_v27 = vmul.f32 %v4692_v60, %v585_v29  ;;  %780 = vperm.xlu1 %4047, %v4626_v50  }
 0x135   :  { %v4763_v43 = vmul.f32 %v4676_v54, %v513_v42  ;;  %v4767_v2 = vmul.f32 %v4678_v7, %v513_v42  ;;  %v4770_v9 = vmul.f32 %v4683_v14, %v513_v42  ;;  %v4773_v12 = vmul.f32 %v4694_v45, %v585_v29 }
 0x136   :  { %7524 = vst [vmem:[#allocation18_spill] sm:$0xff] %v4751_v48  ;;  %7525 = vst [vmem:[#allocation19_spill] sm:$0xff] %v4757_v27  ;;  %v4776_v36 = vmul.f32 %v4696_v30, %v585_v29  ;;  %v4779_v52 = vmul.f32 %v4681_v51, %v513_v42  ;;  %v4782_v24 = vmul.f32 %v4685_v23, %v513_v42 }
 0x137   :  { %7526 = vst [vmem:[#allocation20_spill] sm:$0xff] %v4763_v43  ;;  %7527 = vst [vmem:[#allocation21_spill] sm:$0xff] %v4767_v2  ;;  %v633_v13 = vpop.permute.xlu0 %632  ;;  %v4784_v50 = vadd.f32 %v642_v22, %v542_v32  ;;  %v533_v6 = vpop.permute.xlu1 %532 }
 0x138   :  { %7528 = vst [vmem:[#allocation22_spill] sm:$0xff] %v4770_v9  ;;  %7529 = vst [vmem:[#allocation23_spill] sm:$0xff] %v4773_v12  ;;  %v654_v5 = vmul.f32 %v4687_v15, %v633_v13  ;;  %v4791_v57 = vmul.f32 %v4690_v53, %v633_v13  ;;  %v554_v29 = vmul.f32 %v4681_v51, %v533_v6  ;;  %812 = vperm.xlu1 %4047, %v4635_v11  }
 0x139   :  { %7530 = vst [vmem:[#allocation24_spill] sm:$0xff] %v4776_v36  ;;  %7531 = vst [vmem:[#allocation25_spill] sm:$0xff] %v4782_v24  ;;  %v4795_v40 = vmul.f32 %v4676_v54, %v533_v6  ;;  %v4798_v32 = vmul.f32 %v4678_v7, %v533_v6  ;;  %v4801_v22 = vmul.f32 %v4683_v14, %v533_v6  ;;  %v7561_v24 = vmov 0  }
 0x13a   :  { %7532 = vst [vmem:[#allocation26_spill] sm:$0xff] %v4784_v50  ;;  %7533 = vst [vmem:[#allocation27_spill] sm:$0xff] %v4791_v57  ;;  %v4807_v18 = vmul.f32 %v4685_v23, %v533_v6  ;;  %v4810_v44 = vmul.f32 %v4692_v60, %v633_v13  ;;  %v4816_v1 = vmul.f32 %v4694_v45, %v633_v13 }
 0x13b   :  { %7534 = vst [vmem:[#allocation28_spill] sm:$0xff] %v4795_v40  ;;  %7535 = vst [vmem:[#allocation29_spill] sm:$0xff] %v4798_v32  ;;  %v4822_v8 = vmul.f32 %v4696_v30, %v633_v13  ;;  %v4825_v59 = vadd.f32 %v654_v5, %v554_v29 }
 0x13c   :  { %7536 = vst [vmem:[#allocation30_spill] sm:$0xff] %v4801_v22  ;;  %7537 = vst [vmem:[#allocation31_spill] sm:$0xff] %v4807_v18  ;;  %v685_v11 = vpop.permute.xlu0 %684  ;;  %784 = vperm.xlu1 %4047, %v4408_v4   ;;  %v601_v26 = vpop.permute.xlu1 %600 }
 0x13d   :  { %7538 = vst [vmem:[#allocation32_spill] sm:$0xff] %v4810_v44  ;;  %7539 = vst [vmem:[#allocation33_spill] sm:$0xff] %v4816_v1  ;;  %v4829_v17 = vmul.f32 %v4700_v61, %v685_v11  ;;  %v4832_v41 = vmul.f32 %v4702_v56, %v685_v11  ;;  %v646_v13 = vmul.f32 %v4687_v15, %v601_v26 }
 0x13e   :  { %7540 = vst [vmem:[#allocation34_spill] sm:$0xff] %v4822_v8  ;;  %7541 = vst [vmem:[#allocation35_spill] sm:$0xff] %v4825_v59  ;;  %v4838_v6 = vmul.f32 %v4690_v53, %v601_v26  ;;  %v4842_v4 = vmul.f32 %v4692_v60, %v601_v26  ;;  %v4845_v29 = vmul.f32 %v4694_v45, %v601_v26 }
 0x13f   :  { %7542 = vst [vmem:[#allocation36_spill] sm:$0xff] %v4829_v17  ;;  %7543 = vst [vmem:[#allocation37_spill] sm:$0xff] %v4832_v41  ;;  %v4848_v39 = vmul.f32 %v4704_v28, %v685_v11  ;;  %v4852_v33 = vmul.f32 %v4696_v30, %v601_v26  ;;  %v4855_v0 = vmul.f32 %v4698_v47, %v685_v11 }
 0x140   :  { %7544 = vst [vmem:[#allocation38_spill] sm:$0xff] %v4838_v6  ;;  %7545 = vst [vmem:[#allocation39_spill] sm:$0xff] %v4842_v4  ;;  %v717_v63 = vpop.permute.xlu0 %716  ;;  %v4859_v38 = vadd.f32 %v646_v13, %v4741_v37  ;;  %v4864_v50 = vmul.f32 %v4712_v46, %v685_v11  ;;  %816 = vperm.xlu1 %4047, %v4442_v55   ;;  %v617_v42 = vpop.permute.xlu1 %616 }
 0x141   :  { %7546 = vst [vmem:[#allocation40_spill] sm:$0xff] %v4845_v29  ;;  %7547 = vst [vmem:[#allocation41_spill] sm:$0xff] %v4848_v39  ;;  %v650_v26 = vmul.f32 %v4687_v15, %v617_v42  ;;  %v4869_v43 = vmul.f32 %v4690_v53, %v617_v42  ;;  %v4872_v5 = vmul.f32 %v4692_v60, %v617_v42 }
 0x142   :  { %7548 = vst [vmem:[#allocation42_spill] sm:$0xff] %v4852_v33  ;;  %7549 = vst [vmem:[#allocation43_spill] sm:$0xff] %v4855_v0  ;;  %v4875_v37 = vmul.f32 %v4694_v45, %v617_v42  ;;  %v4881_v55 = vmul.f32 %v4696_v30, %v617_v42  ;;  %v4885_v0 = vmul.f32 %v4698_v47, %v717_v63 }
 0x143   :  { %7550 = vst [vmem:[#allocation44_spill] sm:$0xff] %v4859_v38  ;;  %7551 = vst [vmem:[#allocation45_spill] sm:$0xff] %v4864_v50  ;;  %v4888_v3 = vmul.f32 %v4700_v61, %v717_v63  ;;  %v4891_v59 = vmul.f32 %v4702_v56, %v717_v63  ;;  %v4895_v62 = vadd.f32 %v650_v26, %v4779_v52 }
 0x144   :  { %7552 = vst [vmem:[#allocation46_spill] sm:$0xff] %v4869_v43  ;;  %7553 = vst [vmem:[#allocation47_spill] sm:$0xff] %v4872_v5  ;;  %v4899_v11 = vmul.f32 %v4704_v28, %v717_v63  ;;  %4049 = vset.pattern.permute.xlu1 %v7561_v24  ;;  %v4905_v20 = vmul.f32 %v4712_v46, %v717_v63 }
 0x145   :  { %7554 = vst [vmem:[#allocation48_spill] sm:$0xff] %v4875_v37  ;;  %7555 = vst [vmem:[#allocation49_spill] sm:$0xff] %v4881_v55  ;;  %v458_v38 = vpop.permute.xlu0 %457  ;;  %v701_v21 = vpop.permute.xlu1 %700 }
 0x146   :  { %7556 = vst [vmem:[#allocation50_spill] sm:$0xff] %v4885_v0  ;;  %7557 = vst [vmem:[#allocation51_spill] sm:$0xff] %v4888_v3  ;;  %v4908_v13 = vmul.f32 %v4676_v54, %v458_v38  ;;  %v4912_v26 = vmul.f32 %v4700_v61, %v701_v21  ;;  %v4915_v42 = vmul.f32 %v4702_v56, %v701_v21 }
 0x147   :  { %7558 = vst [vmem:[#allocation52_spill] sm:$0xff] %v4891_v59  ;;  %7559 = vst [vmem:[#allocation53_spill] sm:$0xff] %v4895_v62  ;;  %v4918_v24 = vmul.f32 %v4678_v7, %v458_v38  ;;  %v4923_v0 = vmul.f32 %v4704_v28, %v701_v21  ;;  %v4926_v50 = vmul.f32 %v4681_v51, %v458_v38 }
 0x148   :  { %7560 = vst [vmem:[#allocation54_spill] sm:$0xff] %v4899_v11  ;;  %7562 = vst [vmem:[#allocation55_spill] sm:$0xff] %v4905_v20  ;;  %v4930_v19 = vmul.f32 %v4698_v47, %v701_v21  ;;  %v4933_v16 = vmul.f32 %v4712_v46, %v701_v21  ;;  %v4936_v58 = vmul.f32 %v4683_v14, %v458_v38 }
 0x149   :  { %7563 = vst [vmem:[#allocation56_spill] sm:$0xff] %v4908_v13  ;;  %7564 = vst [vmem:[#allocation57_spill] sm:$0xff] %v4912_v26  ;;  %v478_v52 = vpop.permute.xlu0 %477  ;;  %v4942_v59 = vmul.f32 %v4685_v23, %v458_v38  ;;  %v733_v3 = vpop.permute.xlu1 %732 }
 0x14a   :  { %7565 = vst [vmem:[#allocation58_spill] sm:$0xff] %v4915_v42  ;;  %7566 = vst [vmem:[#allocation59_spill] sm:$0xff] %v4923_v0  ;;  %v4947_v21 = vmul.f32 %v4700_v61, %v733_v3  ;;  %v4950_v11 = vmul.f32 %v4702_v56, %v733_v3  ;;  %v4954_v40 = vmul.f32 %v4704_v28, %v733_v3  ;;  %v1676_v20 = vrot.slane %v4936_v58, 3 }
 0x14b   :  { %7567 = vst [vmem:[#allocation60_spill] sm:$0xff] %v4930_v19  ;;  %7568 = vst [vmem:[#allocation61_spill] sm:$0xff] %v4933_v16  ;;  %v1291_v19 = vrot.slane %v4918_v24, 2  ;;  %v4957_v34 = vmul.f32 %v4712_v46, %v733_v3  ;;  %v4960_v38 = vmul.f32 %v4676_v54, %v478_v52  ;;  %v4965_v42 = vmul.f32 %v4681_v51, %v478_v52 }
 0x14c   :  { %7569 = vst [vmem:[#allocation62_spill] sm:$0xff] %v4942_v59  ;;  %7570 = vst [vmem:[#allocation63_spill] sm:$0xff] %v4947_v21  ;;  %v1263_v26 = vmul.f32 %v4678_v7, %v478_v52  ;;  %v4970_v0 = vmul.f32 %v4698_v47, %v733_v3  ;;  %v4973_v13 = vmul.f32 %v4683_v14, %v478_v52 }
 0x14d   :  { %7571 = vst [vmem:[#allocation64_spill] sm:$0xff] %v4950_v11  ;;  %7572 = vst [vmem:[#allocation65_spill] sm:$0xff] %v4954_v40  ;;  %v498_v62 = vpop.permute.xlu0 %497  ;;  %v4976_v39 = vmul.f32 %v4685_v23, %v478_v52 }
 0x14e   :  { %7573 = vst [vmem:[#allocation66_spill] sm:$0xff] %v4957_v34  ;;  %7574 = vst [vmem:[#allocation67_spill] sm:$0xff] %v4960_v38  ;;  %v4982_v41 = vmul.f32 %v4676_v54, %v498_v62  ;;  %v1298_v24 = vrot.slane %v1263_v26, 2  ;;  %v4999_v40 = vmul.f32 %v4678_v7, %v498_v62  ;;  %v1683_v63 = vrot.slane %v4973_v13, 3 }
 0x14f   :  { %7575 = vst [vmem:[#allocation68_spill] sm:$0xff] %v4965_v42  ;;  %7576 = vst [vmem:[#allocation69_spill] sm:$0xff] %v4970_v0  ;;  %v463_v42 = vpop.permute.xlu1 %462  ;;  %v5005_v38 = vmul.f32 %v4681_v51, %v498_v62  ;;  %v5012_v21 = vmul.f32 %v4683_v14, %v498_v62  ;;  %v5015_v17 = vmul.f32 %v4685_v23, %v498_v62 }
 0x150   :  { %7577 = vst [vmem:[#allocation70_spill] sm:$0xff] %v4976_v39  ;;  %7578 = vst [vmem:[#allocation71_spill] sm:$0xff] %v4982_v41  ;;  %v4987_v59 = vmul.f32 %v4676_v54, %v463_v42  ;;  %v4990_v52 = vmul.f32 %v4678_v7, %v463_v42  ;;  %v4993_v58 = vmul.f32 %v4683_v14, %v463_v42  ;;  %v1305_v39 = vrot.slane %v4999_v40, 2 }
 0x151   :  { %v518_v0 = vpop.permute.xlu0 %517  ;;  %v4996_v16 = vmul.f32 %v4685_v23, %v463_v42  ;;  %7581 = vst [vmem:[#allocation74_spill] sm:$0xff] %v5005_v38  ;;  %v5008_v26 = vmul.f32 %v4681_v51, %v463_v42  ;;  %7582 = vst [vmem:[#allocation75_spill] sm:$0xff] %v5015_v17 }
 0x152   :  { %7579 = vst [vmem:[#allocation72_spill] sm:$0xff] %v4987_v59  ;;  %v5031_v62 = vmul.f32 %v4681_v51, %v518_v0  ;;  %v7585_v13 = vrot.slane %v4990_v52, 2  ;;  %v5042_v34 = vmul.f32 %v4676_v54, %v518_v0  ;;  %v1690_v59 = vrot.slane %v5012_v21, 3 }
 0x153   :  { %7580 = vst [vmem:[#allocation73_spill] sm:$0xff] %v4996_v16  ;;  %v483_v55 = vpop.permute.xlu1 %482  ;;  %v5045_v16 = vmul.f32 %v4678_v7, %v518_v0  ;;  %v5051_v33 = vmul.f32 %v4683_v14, %v518_v0  ;;  %v5061_v6 = vmul.f32 %v4685_v23, %v518_v0 }
 0x154   :  { %v5022_v42 = vmul.f32 %v4676_v54, %v483_v55  ;;  %v5025_v11 = vmul.f32 %v4678_v7, %v483_v55  ;;  %v5028_v41 = vmul.f32 %v4683_v14, %v483_v55  ;;  %7584 = vst [vmem:[#allocation77_spill] sm:$0xff] %v5031_v62  ;;  %v5036_v3 = vsel %vm327_vm1, %v1291_v19, %v7585_v13 }
 0x155   :  { %7586 = vst [vmem:[#allocation78_spill] sm:$0xff] %v5036_v3  ;;  %v5039_v40 = vmul.f32 %v4685_v23, %v483_v55  ;;  %7588 = vst [vmem:[#allocation80_spill] sm:$0xff] %v5042_v34  ;;  %v7589_v13 = vrot.slane %v4993_v58, 3  ;;  %v544_v29 = vmul.f32 %v4681_v51, %v483_v55  ;;  %v1312_v17 = vrot.slane %v5045_v16, 2 }
 0x156   :  { %7583 = vst [vmem:[#allocation76_spill] sm:$0xff] %v5022_v42  ;;  %v573_v37 = vpop.permute.xlu0 %572  ;;  %7591 = vst [vmem:[#allocation82_spill] sm:$0xff] %v5061_v6  ;;  %v1697_v43 = vrot.slane %v5051_v33, 3 }
 0x157   :  { %7587 = vst [vmem:[#allocation79_spill] sm:$0xff] %v5039_v40  ;;  %v503_v19 = vpop.permute.xlu1 %502  ;;  %v5056_v3 = vsel %vm1675_vm2, %v1676_v20, %v7589_v13  ;;  %v7596_v13 = vrot.slane %v5025_v11, 2  ;;  %v639_v16 = vmul.f32 %v4687_v15, %v573_v37  ;;  %v5087_v5 = vmul.f32 %v4690_v53, %v573_v37 }
 0x158   :  { %7590 = vst [vmem:[#allocation81_spill] sm:$0xff] %v5056_v3  ;;  %v5068_v18 = vmul.f32 %v4676_v54, %v503_v19  ;;  %v5071_v20 = vmul.f32 %v4678_v7, %v503_v19  ;;  %v5074_v55 = vmul.f32 %v4683_v14, %v503_v19  ;;  %v5077_v0 = vmul.f32 %v4685_v23, %v503_v19 }
 0x159   :  { %v5082_v21 = vsel %vm327_vm1, %v1298_v24, %v7596_v13  ;;  %7598 = vst [vmem:[#allocation88_spill] sm:$0xff] %v5087_v5  ;;  %v7599_v3 = vrot.slane %v5028_v41, 3  ;;  %v1355_v62 = vmul.f32 %v4692_v60, %v573_v37  ;;  %v5097_v24 = vmul.f32 %v4694_v45, %v573_v37 }
 0x15a   :  { %7592 = vst [vmem:[#allocation83_spill] sm:$0xff] %v5068_v18  ;;  %7593 = vst [vmem:[#allocation84_spill] sm:$0xff] %v5071_v20  ;;  %v593_v34 = vpop.permute.xlu0 %592  ;;  %v548_v33 = vmul.f32 %v4681_v51, %v503_v19  ;;  %v7394_v13 = vrot.slane %v5071_v20, 2  ;;  %v5103_v32 = vadd.f32 %v639_v16, %v4926_v50  ;;  %v5109_v22 = vmul.f32 %v4696_v30, %v573_v37 }
 0x15b   :  { %7594 = vst [vmem:[#allocation85_spill] sm:$0xff] %v5074_v55  ;;  %7595 = vst [vmem:[#allocation86_spill] sm:$0xff] %v5077_v0  ;;  %v523_v4 = vpop.permute.xlu1 %522  ;;  %v5092_v42 = vsel %vm1675_vm2, %v1683_v63, %v7599_v3  ;;  %v1387_v16 = vrot.slane %v1355_v62, 2  ;;  %v1772_v63 = vrot.slane %v5097_v24, 3  ;;  %v644_v9 = vmul.f32 %v4687_v15, %v593_v34 }
 0x15c   :  { %7597 = vst [vmem:[#allocation87_spill] sm:$0xff] %v5082_v21  ;;  %7600 = vst [vmem:[#allocation89_spill] sm:$0xff] %v5092_v42  ;;  %v5112_v6 = vmul.f32 %v4676_v54, %v523_v4  ;;  %v5115_v19 = vmul.f32 %v4678_v7, %v523_v4  ;;  %v5118_v21 = vmul.f32 %v4683_v14, %v523_v4  ;;  %v7609_v42 = vrot.slane %v5074_v55, 3 }
 0x15d   :  { %7601 = vst [vmem:[#allocation90_spill] sm:$0xff] %v5103_v32  ;;  %7602 = vst [vmem:[#allocation91_spill] sm:$0xff] %v5109_v22  ;;  %v5121_v50 = vmul.f32 %v4685_v23, %v523_v4  ;;  %v5126_v37 = vmul.f32 %v4690_v53, %v593_v34  ;;  %v5131_v0 = vsel %vm327_vm1, %v1305_v39, %v7394_v13 }
 0x15e   :  { %7603 = vst [vmem:[#allocation92_spill] sm:$0xff] %v5112_v6  ;;  %7604 = vst [vmem:[#allocation93_spill] sm:$0xff] %v5115_v19  ;;  %v5136_v18 = vsel %vm1675_vm2, %v1690_v59, %v7609_v42  ;;  %v552_v62 = vmul.f32 %v4681_v51, %v523_v4  ;;  %v5140_v24 = vmul.f32 %v4692_v60, %v593_v34  ;;  %v609_v5 = vpop.permute.xlu0 %608  ;;  %v7404_v46 = vrot.slane %v5115_v19, 2 }
 0x15f   :  { %7605 = vst [vmem:[#allocation94_spill] sm:$0xff] %v5118_v21  ;;  %7606 = vst [vmem:[#allocation95_spill] sm:$0xff] %v5121_v50  ;;  %v577_v3 = vpop.permute.xlu1 %576  ;;  %v5150_v59 = vmul.f32 %v4694_v45, %v593_v34  ;;  %v5153_v4 = vmul.f32 %v4696_v30, %v593_v34  ;;  %v648_v13 = vmul.f32 %v4687_v15, %v609_v5 }
 0x160   :  { %7607 = vst [vmem:[#allocation96_spill] sm:$0xff] %v5126_v37  ;;  %7608 = vst [vmem:[#allocation97_spill] sm:$0xff] %v5131_v0  ;;  %v5147_v0 = vadd.f32 %v644_v9, %v544_v29  ;;  %v5157_v32 = vmul.f32 %v4690_v53, %v577_v3  ;;  %v5160_v38 = vmul.f32 %v4692_v60, %v577_v3 }
 0x161   :  { %7610 = vst [vmem:[#allocation98_spill] sm:$0xff] %v5136_v18  ;;  %7611 = vst [vmem:[#allocation99_spill] sm:$0xff] %v5140_v24  ;;  %v5163_v39 = vmul.f32 %v4694_v45, %v577_v3  ;;  %v5167_v29 = vmul.f32 %v4696_v30, %v577_v3  ;;  %v5171_v34 = vmul.f32 %v4690_v53, %v609_v5  ;;  %v7618_v18 = vrot.slane %v5118_v21, 3 }
 0x162   :  { %7612 = vst [vmem:[#allocation100_spill] sm:$0xff] %v5147_v0  ;;  %7613 = vst [vmem:[#allocation101_spill] sm:$0xff] %v5150_v59  ;;  %v5176_v22 = vsel %vm327_vm1, %v1312_v17, %v7404_v46  ;;  %v5184_v9 = vmul.f32 %v4687_v15, %v577_v3  ;;  %v5191_v19 = vmul.f32 %v4692_v60, %v609_v5  ;;  %v625_v17 = vpop.permute.xlu0 %624 }
 0x163   :  { %7614 = vst [vmem:[#allocation102_spill] sm:$0xff] %v5153_v4  ;;  %7615 = vst [vmem:[#allocation103_spill] sm:$0xff] %v5167_v29  ;;  %v589_v42 = vpop.permute.xlu1 %588  ;;  %v5181_v6 = vsel %vm1675_vm2, %v1697_v43, %v7618_v18  ;;  %v5195_v18 = vadd.f32 %v648_v13, %v548_v33  ;;  %v5198_v3 = vmul.f32 %v4694_v45, %v609_v5 }
 0x164   :  { %7616 = vst [vmem:[#allocation104_spill] sm:$0xff] %v5171_v34  ;;  %7617 = vst [vmem:[#allocation105_spill] sm:$0xff] %v5176_v22  ;;  %v5202_v37 = vmul.f32 %v4696_v30, %v609_v5  ;;  %v5205_v50 = vmul.f32 %v4690_v53, %v589_v42  ;;  %v1359_v55 = vmul.f32 %v4692_v60, %v589_v42  ;;  %v7627_v5 = vrot.slane %v5163_v39, 3 }
 0x165   :  { %7619 = vst [vmem:[#allocation106_spill] sm:$0xff] %v5181_v6  ;;  %7620 = vst [vmem:[#allocation107_spill] sm:$0xff] %v5191_v19  ;;  %v7624_v6 = vrot.slane %v5160_v38, 2  ;;  %v1744_v33 = vmul.f32 %v4694_v45, %v589_v42  ;;  %v5215_v13 = vmul.f32 %v4696_v30, %v589_v42  ;;  %v652_v0 = vmul.f32 %v4687_v15, %v625_v17 }
 0x166   :  { %7621 = vst [vmem:[#allocation108_spill] sm:$0xff] %v5195_v18  ;;  %7622 = vst [vmem:[#allocation109_spill] sm:$0xff] %v5202_v37  ;;  %v5221_v43 = vsel %vm1675_vm2, %v1772_v63, %v7627_v5  ;;  %v1394_v18 = vrot.slane %v1359_v55, 2  ;;  %v5225_v34 = vmul.f32 %v4690_v53, %v625_v17  ;;  %v5232_v21 = vmul.f32 %v4692_v60, %v625_v17 }
 0x167   :  { %7623 = vst [vmem:[#allocation110_spill] sm:$0xff] %v5205_v50  ;;  %v5211_v46 = vsel %vm327_vm1, %v1387_v16, %v7624_v6  ;;  %7626 = vst [vmem:[#allocation112_spill] sm:$0xff] %v5215_v13  ;;  %v605_v6 = vpop.permute.xlu1 %604  ;;  %v1779_v4 = vrot.slane %v1744_v33, 3  ;;  %v5238_v55 = vmul.f32 %v4694_v45, %v625_v17  ;;  %v488_v22 = vpop.permute.xlu0 %487 }
 0x168   :  { %7625 = vst [vmem:[#allocation111_spill] sm:$0xff] %v5211_v46  ;;  %7628 = vst [vmem:[#allocation113_spill] sm:$0xff] %v5221_v43  ;;  %v5229_v46 = vmul.f32 %v4687_v15, %v589_v42  ;;  %v7631_v43 = vrot.slane %v5140_v24, 2  ;;  %v5245_v42 = vadd.f32 %v652_v0, %v552_v62  ;;  %v5252_v63 = vmul.f32 %v4690_v53, %v605_v6 }
 0x169   :  { %7629 = vst [vmem:[#allocation114_spill] sm:$0xff] %v5225_v34  ;;  %v1363_v5 = vmul.f32 %v4692_v60, %v605_v6  ;;  %v1748_v2 = vmul.f32 %v4694_v45, %v605_v6  ;;  %v5257_v13 = vmul.f32 %v4696_v30, %v605_v6  ;;  %v2034_v62 = vmul.f32 %v4685_v23, %v488_v22 }
 0x16a   :  { %7630 = vst [vmem:[#allocation115_spill] sm:$0xff] %v5229_v46  ;;  %v5243_v16 = vsel %vm327_vm1, %v1394_v18, %v7631_v43  ;;  %7633 = vst [vmem:[#allocation117_spill] sm:$0xff] %v5245_v42  ;;  %v5249_v46 = vmul.f32 %v4696_v30, %v625_v17  ;;  %v7637_v43 = vrot.slane %v5150_v59, 3  ;;  %v5266_v17 = vmul.f32 %v4676_v54, %v488_v22 }
 0x16b   :  { %7632 = vst [vmem:[#allocation116_spill] sm:$0xff] %v5243_v16  ;;  %7635 = vst [vmem:[#allocation119_spill] sm:$0xff] %v5252_v63  ;;  %v1265_v18 = vmul.f32 %v4678_v7, %v488_v22  ;;  %v1401_v16 = vrot.slane %v1363_v5, 2  ;;  %v1786_v50 = vrot.slane %v1748_v2, 3  ;;  %v1649_v42 = vmul.f32 %v4683_v14, %v488_v22  ;;  %v621_v37 = vpop.permute.xlu1 %620 }
 0x16c   :  { %7634 = vst [vmem:[#allocation118_spill] sm:$0xff] %v5249_v46  ;;  %7636 = vst [vmem:[#allocation120_spill] sm:$0xff] %v5257_v13  ;;  %v5262_v0 = vsel %vm1675_vm2, %v1779_v4, %v7637_v43  ;;  %v5273_v4 = vmul.f32 %v4687_v15, %v605_v6  ;;  %v5279_v20 = vmul.f32 %v4681_v51, %v488_v22  ;;  %v7644_v22 = vrot.slane %v5198_v3, 3 }
 0x16d   :  { %7638 = vst [vmem:[#allocation121_spill] sm:$0xff] %v5262_v0  ;;  %7639 = vst [vmem:[#allocation122_spill] sm:$0xff] %v5266_v17  ;;  %v1301_v43 = vrot.slane %v1265_v18, 2  ;;  %v1686_v5 = vrot.slane %v1649_v42, 3  ;;  %v5283_v33 = vmul.f32 %v4687_v15, %v621_v37  ;;  %v5286_v24 = vmul.f32 %v4690_v53, %v621_v37  ;;  %v581_v18 = vpop.permute.xlu0 %580 }
 0x16e   :  { %7640 = vst [vmem:[#allocation123_spill] sm:$0xff] %v5273_v4  ;;  %v1367_v6 = vmul.f32 %v4692_v60, %v621_v37  ;;  %v7642_v4 = vrot.slane %v5191_v19, 2  ;;  %v5297_v42 = vsel %vm1675_vm2, %v1786_v50, %v7644_v22  ;;  %v2071_v59 = vrot.slane %v2034_v62, 4 }
 0x16f   :  { %7641 = vst [vmem:[#allocation124_spill] sm:$0xff] %v5286_v24  ;;  %7645 = vst [vmem:[#allocation126_spill] sm:$0xff] %v5297_v42  ;;  %v1752_v2 = vmul.f32 %v4694_v45, %v621_v37  ;;  %v7646_v13 = vrot.slane %v5025_v11, 2  ;;  %v7647_v17 = vrot.slane %v4710_v35, 2  ;;  %v5316_v62 = vmul.f32 %v4696_v30, %v621_v37 }
 0x170   :  { %v5292_v0 = vsel %vm327_vm1, %v1401_v16, %v7642_v4  ;;  %v7649_v16 = vrot.slane %v5028_v41, 3  ;;  %v1408_v50 = vrot.slane %v1367_v6, 2  ;;  %v973_v11 = vmul.f32 %v4690_v53, %v581_v18  ;;  %v468_v42 = vpop.permute.xlu1 %467 }
 0x171   :  { %7643 = vst [vmem:[#allocation125_spill] sm:$0xff] %v5292_v0  ;;  %v5303_v63 = vsel %vm327_vm1, %v7646_v13, %v1301_v43  ;;  %v5308_v19 = vsel %vm327_vm1, %v1301_v43, %v7647_v17  ;;  %v1793_v22 = vrot.slane %v1752_v2, 3  ;;  %7650 = vst [vmem:[#allocation128_spill] sm:$0xff] %v5316_v62  ;;  %v1357_v13 = vmul.f32 %v4692_v60, %v581_v18 }
 0x172   :  { %7648 = vst [vmem:[#allocation127_spill] sm:$0xff] %v5308_v19  ;;  %v5313_v4 = vsel %vm1675_vm2, %v7649_v16, %v1686_v5  ;;  %v7651_v0 = vrot.slane %v4723_v31, 3  ;;  %v1742_v43 = vmul.f32 %v4694_v45, %v581_v18  ;;  %v2127_v6 = vmul.f32 %v4696_v30, %v581_v18 }
 0x173   :  { %v7653_v2 = vrot.slane %v5039_v40, 4  ;;  %v7655_v16 = vrot.slane %v4734_v10, 4  ;;  %v1006_v31 = vrot.slane %v973_v11, 1  ;;  %v1390_v19 = vrot.slane %v1357_v13, 2 }
 0x174   :  { %v5323_v17 = vsel %vm1675_vm2, %v1686_v5, %v7651_v0  ;;  %v7657_v0 = vrot.slane %v5232_v21, 2  ;;  %v5344_v41 = vmul.f32 %v4687_v15, %v581_v18  ;;  %v1775_v24 = vrot.slane %v1742_v43, 3 }
 0x175   :  { %7652 = vst [vmem:[#allocation129_spill] sm:$0xff] %v5323_v17  ;;  %v5331_v37 = vsel %vm2060_vm3, %v7653_v2, %v2071_v59  ;;  %v5336_v35 = vsel %vm2060_vm3, %v2071_v59, %v7655_v16  ;;  %v1261_v40 = vmul.f32 %v4678_v7, %v468_v42  ;;  %v7659_v2 = vrot.slane %v5238_v55, 3  ;;  %v629_v16 = vpop.permute.xlu0 %628 }
 0x176   :  { %7654 = vst [vmem:[#allocation130_spill] sm:$0xff] %v5331_v37  ;;  %7656 = vst [vmem:[#allocation131_spill] sm:$0xff] %v5336_v35  ;;  %v5341_v5 = vsel %vm327_vm1, %v1408_v50, %v7657_v0  ;;  %v2160_v11 = vrot.slane %v2127_v6, 4  ;;  %v5354_v13 = vmul.f32 %v4681_v51, %v468_v42  ;;  %v7661_v50 = vrot.slane %v5157_v32, 1 }
 0x177   :  { %7658 = vst [vmem:[#allocation132_spill] sm:$0xff] %v5341_v5  ;;  %v5350_v37 = vsel %vm1675_vm2, %v1793_v22, %v7659_v2  ;;  %v7663_v43 = vrot.slane %v4751_v48, 1  ;;  %v7665_v22 = vrot.slane %v5160_v38, 2  ;;  %v5372_v6 = vmul.f32 %v4676_v54, %v468_v42 }
 0x178   :  { %7660 = vst [vmem:[#allocation133_spill] sm:$0xff] %v5350_v37  ;;  %v5359_v18 = vsel %vm228_vm0, %v7661_v50, %v1006_v31  ;;  %v7668_v59 = vrot.slane %v4757_v27, 2  ;;  %v7670_v50 = vrot.slane %v5163_v39, 3  ;;  %v5386_v38 = vmul.f32 %v4685_v23, %v468_v42 }
 0x179   :  { %7662 = vst [vmem:[#allocation134_spill] sm:$0xff] %v5359_v18  ;;  %v5364_v0 = vsel %vm228_vm0, %v1006_v31, %v7663_v43  ;;  %v5369_v2 = vsel %vm327_vm1, %v7665_v22, %v1390_v19  ;;  %7667 = vst [vmem:[#allocation137_spill] sm:$0xff] %v5372_v6  ;;  %v1294_v31 = vrot.slane %v1261_v40, 2  ;;  %v1645_v43 = vmul.f32 %v4683_v14, %v468_v42 }
 0x17a   :  { %7664 = vst [vmem:[#allocation135_spill] sm:$0xff] %v5364_v0  ;;  %7666 = vst [vmem:[#allocation136_spill] sm:$0xff] %v5369_v2  ;;  %v5377_v62 = vsel %vm327_vm1, %v1390_v19, %v7668_v59  ;;  %v5382_v35 = vsel %vm1675_vm2, %v7670_v50, %v1775_v24  ;;  %v985_v22 = vmul.f32 %v4690_v53, %v629_v16  ;;  %v7673_v19 = vrot.slane %v4773_v12, 3  ;;  %v508_v12 = vpop.permute.xlu1 %507 }
 0x17b   :  { %7669 = vst [vmem:[#allocation138_spill] sm:$0xff] %v5377_v62  ;;  %7671 = vst [vmem:[#allocation139_spill] sm:$0xff] %v5382_v35  ;;  %v1369_v48 = vmul.f32 %v4692_v60, %v629_v16  ;;  %v1754_v27 = vmul.f32 %v4694_v45, %v629_v16  ;;  %v7675_v39 = vrot.slane %v5167_v29, 4  ;;  %v7677_v50 = vrot.slane %v4776_v36, 4 }
 0x17c   :  { %7672 = vst [vmem:[#allocation140_spill] sm:$0xff] %v5386_v38  ;;  %v5394_v59 = vsel %vm1675_vm2, %v1775_v24, %v7673_v19  ;;  %v1679_v62 = vrot.slane %v1645_v43, 3  ;;  %v1027_v35 = vrot.slane %v985_v22, 1  ;;  %v2139_v5 = vmul.f32 %v4696_v30, %v629_v16 }
 0x17d   :  { %7674 = vst [vmem:[#allocation141_spill] sm:$0xff] %v5394_v59  ;;  %v5399_v40 = vsel %vm2060_vm3, %v7675_v39, %v2160_v11  ;;  %v5404_v42 = vsel %vm2060_vm3, %v2160_v11, %v7677_v50  ;;  %v1411_v37 = vrot.slane %v1369_v48, 2  ;;  %v1796_v2 = vrot.slane %v1754_v27, 3 }
 0x17e   :  { %7676 = vst [vmem:[#allocation142_spill] sm:$0xff] %v5399_v40  ;;  %7678 = vst [vmem:[#allocation143_spill] sm:$0xff] %v5404_v42  ;;  %v7679_v19 = vrot.slane %v4990_v52, 2  ;;  %v7681_v39 = vrot.slane %v4720_v49, 2  ;;  %v653_v11 = vmul.f32 %v4687_v15, %v629_v16  ;;  %v7683_v48 = vrot.slane %v4993_v58, 3 }
 0x17f   :  { %v7685_v22 = vrot.slane %v5225_v34, 1  ;;  %v7686_v50 = vrot.slane %v5232_v21, 2  ;;  %v7688_v16 = vrot.slane %v4728_v25, 3  ;;  %v2181_v43 = vrot.slane %v2139_v5, 4 }
 0x180   :  { %v5411_v29 = vsel %vm327_vm1, %v7679_v19, %v1294_v31  ;;  %v5416_v40 = vsel %vm327_vm1, %v1294_v31, %v7681_v39  ;;  %v5422_v27 = vsel %vm1675_vm2, %v7683_v48, %v1679_v62  ;;  %v677_v31 = vpop.permute.xlu0 %676  ;;  %v7690_v39 = vrot.slane %v5238_v55, 3 }
 0x181   :  { %7680 = vst [vmem:[#allocation144_spill] sm:$0xff] %v5411_v29  ;;  %7682 = vst [vmem:[#allocation145_spill] sm:$0xff] %v5416_v40  ;;  %v5428_v52 = vsel %vm228_vm0, %v7685_v22, %v1027_v35  ;;  %v5433_v19 = vsel %vm327_vm1, %v7686_v50, %v1411_v37  ;;  %v5438_v58 = vsel %vm1675_vm2, %v1679_v62, %v7688_v16  ;;  %v7694_v62 = vrot.slane %v4791_v57, 1  ;;  %v7712_v40 = vld [vmem:[#allocation123_spill] sm:$0xff]  ;;  %v7730_v29 = vld [vmem:[#allocation30_spill] sm:$0xff] }
 0x182   :  { %7684 = vst [vmem:[#allocation146_spill] sm:$0xff] %v5422_v27  ;;  %7687 = vst [vmem:[#allocation147_spill] sm:$0xff] %v5433_v19  ;;  %v5443_v48 = vsel %vm1675_vm2, %v7690_v39, %v1796_v2  ;;  %v5446_v22 = vmul.f32 %v4676_v54, %v508_v12  ;;  %v5449_v21 = vmul.f32 %v4681_v51, %v508_v12  ;;  %v7695_v5 = vrot.slane %v5249_v46, 4  ;;  %v528_v46 = vpop.permute.xlu1 %527 }
 0x183   :  { %7689 = vst [vmem:[#allocation148_spill] sm:$0xff] %v5438_v58  ;;  %7691 = vst [vmem:[#allocation149_spill] sm:$0xff] %v5443_v48  ;;  %v1269_v50 = vmul.f32 %v4678_v7, %v508_v12  ;;  %v1653_v24 = vmul.f32 %v4683_v14, %v508_v12  ;;  %v5454_v42 = vmul.f32 %v4685_v23, %v508_v12  ;;  %v7697_v36 = vrot.slane %v4810_v44, 2  ;;  %v7843_v48 = vld [vmem:[#allocation100_spill] sm:$0xff] }
 0x184   :  { %7692 = vst [vmem:[#allocation150_spill] sm:$0xff] %v5446_v22  ;;  %v5459_v55 = vsel %vm228_vm0, %v1027_v35, %v7694_v62  ;;  %v5464_v16 = vsel %vm2060_vm3, %v7695_v5, %v2181_v43  ;;  %v740_v39 = vmul.f32 %v4698_v47, %v677_v31  ;;  %v5468_v38 = vmul.f32 %v4700_v61, %v677_v31 }
 0x185   :  { %7693 = vst [vmem:[#allocation151_spill] sm:$0xff] %v5454_v42  ;;  %7696 = vst [vmem:[#allocation152_spill] sm:$0xff] %v5464_v16  ;;  %v5473_v12 = vsel %vm327_vm1, %v1411_v37, %v7697_v36  ;;  %v7699_v25 = vrot.slane %v4816_v1, 3  ;;  %v1308_v62 = vrot.slane %v1269_v50, 2  ;;  %v656_v5 = vadd.f32 %v5184_v9, %v5008_v26  ;;  %v705_v9 = vpop.permute.xlu0 %704  ;;  %v7703_v50 = vld [vmem:[#allocation84_spill] sm:$0xff]  ;;  %v7733_v1 = vld [vmem:[#allocation95_spill] sm:$0xff] }
 0x186   :  { %7698 = vst [vmem:[#allocation153_spill] sm:$0xff] %v5473_v12  ;;  %v7701_v16 = vrot.slane %v4822_v8, 4  ;;  %v1693_v49 = vrot.slane %v1653_v24, 3  ;;  %v5496_v26 = vmul.f32 %v4704_v28, %v677_v31  ;;  %v7704_v8 = vrot.slane %v7703_v50, 2 }
 0x187   :  { %v5478_v35 = vsel %vm1675_vm2, %v1796_v2, %v7699_v25  ;;  %v5489_v37 = vadd.f32 %v740_v39, %v656_v5  ;;  %v5493_v2 = vmul.f32 %v4702_v56, %v677_v31  ;;  %v7709_v39 = vld [vmem:[#allocation6_spill] sm:$0xff]  ;;  %v553_v58 = vmul.f32 %v4681_v51, %v528_v46  ;;  %v7713_v51 = vld [vmem:[#allocation85_spill] sm:$0xff] }
 0x188   :  { %7700 = vst [vmem:[#allocation154_spill] sm:$0xff] %v5478_v35  ;;  %v5485_v59 = vsel %vm2060_vm3, %v2181_v43, %v7701_v16  ;;  %v5501_v43 = vsel %vm327_vm1, %v7704_v8, %v1308_v62  ;;  %v7706_v16 = vld [vmem:[#allocation21_spill] sm:$0xff]  ;;  %v5509_v5 = vmul.f32 %v7709_v39, %v677_v31  ;;  %v5513_v25 = vmul.f32 %v4676_v54, %v528_v46 }
 0x189   :  { %7702 = vst [vmem:[#allocation155_spill] sm:$0xff] %v5485_v59  ;;  %7705 = vst [vmem:[#allocation84_spill] sm:$0xff] %v5501_v43  ;;  %v7707_v24 = vrot.slane %v7706_v16, 2  ;;  %v1273_v59 = vmul.f32 %v4678_v7, %v528_v46  ;;  %v1657_v50 = vmul.f32 %v4683_v14, %v528_v46  ;;  %v2042_v8 = vmul.f32 %v4685_v23, %v528_v46  ;;  %v7711_v16 = vld [vmem:[#allocation74_spill] sm:$0xff]  ;;  %v597_v43 = vpop.permute.xlu1 %596 }
 0x18a   :  { %7710 = vst [vmem:[#allocation6_spill] sm:$0xff] %v5509_v5  ;;  %v5518_v42 = vadd.f32 %v653_v11, %v553_v58  ;;  %v5524_v31 = vmul.f32 %v4700_v61, %v705_v9  ;;  %v7716_v7 = vld [vmem:[#allocation22_spill] sm:$0xff]  ;;  %v7722_v11 = vld [vmem:[#allocation29_spill] sm:$0xff]  ;;  %v7731_v0 = vrot.slane %v7730_v29, 3  ;;  %v7734_v34 = vrot.slane %v7733_v1, 4 }
 0x18b   :  { %v5506_v36 = vsel %vm327_vm1, %v1308_v62, %v7707_v24  ;;  %v663_v62 = vadd.f32 %v7712_v40, %v7711_v16  ;;  %v747_v24 = vmul.f32 %v4698_v47, %v705_v9  ;;  %v7717_v27 = vrot.slane %v7716_v7, 3 }
 0x18c   :  { %7708 = vst [vmem:[#allocation156_spill] sm:$0xff] %v5506_v36  ;;  %v7714_v36 = vrot.slane %v7713_v51, 3  ;;  %v1315_v23 = vrot.slane %v1273_v59, 2  ;;  %v1700_v46 = vrot.slane %v1657_v50, 3  ;;  %v5544_v7 = vmul.f32 %v4702_v56, %v705_v9  ;;  %v7720_v59 = vld [vmem:[#allocation93_spill] sm:$0xff] }
 0x18d   :  { %v5534_v14 = vsel %vm1675_vm2, %v1693_v49, %v7717_v27  ;;  %v5539_v16 = vadd.f32 %v747_v24, %v663_v62  ;;  %v7721_v27 = vrot.slane %v7720_v59, 2  ;;  %v7723_v40 = vrot.slane %v7722_v11, 2  ;;  %v7725_v24 = vld [vmem:[#allocation94_spill] sm:$0xff]  ;;  %v7736_v11 = vld [vmem:[#allocation31_spill] sm:$0xff] }
 0x18e   :  { %v5529_v54 = vsel %vm1675_vm2, %v7714_v36, %v1693_v49  ;;  %7718 = vst [vmem:[#allocation123_spill] sm:$0xff] %v5534_v14  ;;  %v2085_v36 = vrot.slane %v2042_v8, 4  ;;  %v721_v49 = vpop.permute.xlu0 %720  ;;  %v7726_v58 = vrot.slane %v7725_v24, 3  ;;  %v5562_v51 = vmul.f32 %v4704_v28, %v705_v9  ;;  %v7729_v24 = vld [vmem:[#allocation77_spill] sm:$0xff] }
 0x18f   :  { %7715 = vst [vmem:[#allocation74_spill] sm:$0xff] %v5529_v54  ;;  %7719 = vst [vmem:[#allocation85_spill] sm:$0xff] %v5539_v16  ;;  %v5549_v50 = vsel %vm327_vm1, %v7721_v27, %v1315_v23  ;;  %v5554_v62 = vsel %vm327_vm1, %v1315_v23, %v7723_v40  ;;  %v5565_v54 = vmul.f32 %v7709_v39, %v705_v9  ;;  %v7737_v16 = vrot.slane %v7736_v11, 4  ;;  %v7756_v11 = vld [vmem:[#allocation40_spill] sm:$0xff] }
 0x190   :  { %7724 = vst [vmem:[#allocation93_spill] sm:$0xff] %v5554_v62  ;;  %v5559_v8 = vsel %vm1675_vm2, %v7726_v58, %v1700_v46  ;;  %v645_v59 = vmul.f32 %v4687_v15, %v597_v43  ;;  %v977_v27 = vmul.f32 %v4690_v53, %v597_v43  ;;  %v1361_v14 = vmul.f32 %v4692_v60, %v597_v43 }
 0x191   :  { %7727 = vst [vmem:[#allocation94_spill] sm:$0xff] %v5559_v8  ;;  %7728 = vst [vmem:[#allocation157_spill] sm:$0xff] %v5565_v54  ;;  %v1746_v23 = vmul.f32 %v4694_v45, %v597_v43  ;;  %v2131_v40 = vmul.f32 %v4696_v30, %v597_v43  ;;  %v667_v58 = vadd.f32 %v5283_v33, %v7729_v24 }
 0x192   :  { %v751_v5 = vmul.f32 %v4698_v47, %v721_v49  ;;  %v5578_v9 = vsel %vm1675_vm2, %v1700_v46, %v7731_v0  ;;  %v5583_v35 = vsel %vm2060_vm3, %v7734_v34, %v2085_v36  ;;  %v1013_v10 = vrot.slane %v977_v27, 1  ;;  %v613_v27 = vpop.permute.xlu1 %612 }
 0x193   :  { %7732 = vst [vmem:[#allocation77_spill] sm:$0xff] %v5578_v9  ;;  %7735 = vst [vmem:[#allocation158_spill] sm:$0xff] %v5583_v35  ;;  %v1397_v44 = vrot.slane %v1361_v14, 2  ;;  %v5588_v43 = vsel %vm2060_vm3, %v2085_v36, %v7737_v16  ;;  %v1782_v33 = vrot.slane %v1746_v23, 3  ;;  %v2167_v24 = vrot.slane %v2131_v40, 4  ;;  %v7740_v14 = vld [vmem:[#allocation96_spill] sm:$0xff] }
 0x194   :  { %7738 = vst [vmem:[#allocation159_spill] sm:$0xff] %v5588_v43  ;;  %v5590_v12 = vadd.f32 %v751_v5, %v667_v58  ;;  %v5596_v34 = vadd.f32 %v645_v59, %v5279_v20  ;;  %v7741_v1 = vrot.slane %v7740_v14, 1  ;;  %v7742_v16 = vld [vmem:[#allocation101_spill] sm:$0xff]  ;;  %v7745_v23 = vld [vmem:[#allocation102_spill] sm:$0xff]  ;;  %v5614_v46 = vmul.f32 %v4700_v61, %v721_v49 }
 0x195   :  { %v7743_v36 = vrot.slane %v7742_v16, 3  ;;  %v7746_v40 = vrot.slane %v7745_v23, 4  ;;  %v7748_v20 = vld [vmem:[#allocation38_spill] sm:$0xff]  ;;  %v5630_v54 = vmul.f32 %v4704_v28, %v721_v49  ;;  %v981_v23 = vmul.f32 %v4690_v53, %v613_v27 }
 0x196   :  { %7739 = vst [vmem:[#allocation160_spill] sm:$0xff] %v5590_v12  ;;  %v5601_v35 = vsel %vm228_vm0, %v7741_v1, %v1013_v10  ;;  %v7749_v59 = vrot.slane %v7748_v20, 1  ;;  %v7750_v1 = vld [vmem:[#allocation99_spill] sm:$0xff]  ;;  %v1365_v43 = vmul.f32 %v4692_v60, %v613_v27  ;;  %v7757_v12 = vrot.slane %v7756_v11, 3  ;;  %v7759_v53 = vld [vmem:[#allocation42_spill] sm:$0xff] }
 0x197   :  { %v5606_v5 = vsel %vm1675_vm2, %v7743_v36, %v1782_v33  ;;  %v5611_v58 = vsel %vm2060_vm3, %v7746_v40, %v2167_v24  ;;  %v7751_v29 = vrot.slane %v7750_v1, 2  ;;  %v5627_v36 = vmul.f32 %v4702_v56, %v721_v49  ;;  %v7753_v1 = vld [vmem:[#allocation39_spill] sm:$0xff] }
 0x198   :  { %7744 = vst [vmem:[#allocation101_spill] sm:$0xff] %v5606_v5  ;;  %7747 = vst [vmem:[#allocation161_spill] sm:$0xff] %v5611_v58  ;;  %v5619_v0 = vsel %vm228_vm0, %v1013_v10, %v7749_v59  ;;  %v5633_v40 = vmul.f32 %v7709_v39, %v721_v49  ;;  %v1750_v10 = vmul.f32 %v4694_v45, %v613_v27  ;;  %v681_v59 = vpop.permute.xlu0 %680  ;;  %v7754_v58 = vrot.slane %v7753_v1, 2 }
 0x199   :  { %v5624_v16 = vsel %vm327_vm1, %v7751_v29, %v1397_v44  ;;  %v5646_v9 = vsel %vm1675_vm2, %v1782_v33, %v7757_v12  ;;  %v649_v49 = vmul.f32 %v4687_v15, %v613_v27  ;;  %v2135_v62 = vmul.f32 %v4696_v30, %v613_v27  ;;  %v7766_v15 = vld [vmem:[#allocation109_spill] sm:$0xff] }
 0x19a   :  { %7752 = vst [vmem:[#allocation99_spill] sm:$0xff] %v5633_v40  ;;  %v5641_v29 = vsel %vm327_vm1, %v1397_v44, %v7754_v58  ;;  %7758 = vst [vmem:[#allocation163_spill] sm:$0xff] %v5646_v9  ;;  %v7760_v57 = vrot.slane %v7759_v53, 4  ;;  %v1020_v17 = vrot.slane %v981_v23, 1  ;;  %v1789_v1 = vrot.slane %v1750_v10, 3  ;;  %v7762_v23 = vld [vmem:[#allocation104_spill] sm:$0xff] }
 0x19b   :  { %7755 = vst [vmem:[#allocation162_spill] sm:$0xff] %v5641_v29  ;;  %v2174_v58 = vrot.slane %v2135_v62, 4  ;;  %v741_v11 = vmul.f32 %v4698_v47, %v681_v59  ;;  %v1069_v12 = vmul.f32 %v4700_v61, %v681_v59  ;;  %v1404_v33 = vrot.slane %v1365_v43, 2  ;;  %v7771_v40 = vld [vmem:[#allocation46_spill] sm:$0xff] }
 0x19c   :  { %v5653_v60 = vsel %vm2060_vm3, %v2167_v24, %v7760_v57  ;;  %v657_v57 = vadd.f32 %v5344_v41, %v5354_v13  ;;  %v673_v24 = vpop.permute.xlu1 %672  ;;  %v665_v27 = vadd.f32 %v649_v49, %v5449_v21  ;;  %v7763_v10 = vrot.slane %v7762_v23, 1 }
 0x19d   :  { %7761 = vst [vmem:[#allocation164_spill] sm:$0xff] %v5653_v60  ;;  %v7764_v62 = vrot.slane %v5198_v3, 3  ;;  %v7767_v60 = vrot.slane %v7766_v15, 4  ;;  %v1102_v41 = vrot.slane %v1069_v12, 1  ;;  %v1453_v13 = vmul.f32 %v4702_v56, %v681_v59 }
 0x19e   :  { %v5667_v44 = vsel %vm228_vm0, %v7763_v10, %v1020_v17  ;;  %v5679_v30 = vadd.f32 %v741_v11, %v657_v57  ;;  %v1838_v21 = vmul.f32 %v4704_v28, %v681_v59  ;;  %v5684_v49 = vmul.f32 %v7709_v39, %v681_v59  ;;  %v7774_v11 = vld [vmem:[#allocation107_spill] sm:$0xff] }
 0x19f   :  { %v5672_v45 = vsel %vm1675_vm2, %v7764_v62, %v1789_v1  ;;  %v5677_v43 = vsel %vm2060_vm3, %v7767_v60, %v2174_v58  ;;  %v739_v3 = vmul.f32 %v4698_v47, %v673_v24  ;;  %v1067_v10 = vmul.f32 %v4700_v61, %v673_v24 }
 0x1a0   :  { %7765 = vst [vmem:[#allocation165_spill] sm:$0xff] %v5672_v45  ;;  %7768 = vst [vmem:[#allocation166_spill] sm:$0xff] %v5677_v43  ;;  %v1451_v62 = vmul.f32 %v4702_v56, %v673_v24  ;;  %v7772_v15 = vrot.slane %v7771_v40, 1  ;;  %v7775_v12 = vrot.slane %v7774_v11, 2  ;;  %v7777_v43 = vld [vmem:[#allocation47_spill] sm:$0xff]  ;;  %v1871_v45 = vrot.slane %v1838_v21, 3 }
 0x1a1   :  { %7769 = vst [vmem:[#allocation167_spill] sm:$0xff] %v5679_v30  ;;  %7770 = vst [vmem:[#allocation168_spill] sm:$0xff] %v5684_v49  ;;  %v7778_v53 = vrot.slane %v7777_v43, 2  ;;  %v7780_v30 = vld [vmem:[#allocation48_spill] sm:$0xff]  ;;  %v7783_v40 = vld [vmem:[#allocation49_spill] sm:$0xff]  ;;  %v713_v43 = vpop.permute.xlu0 %712 }
 0x1a2   :  { %v5692_v60 = vsel %vm228_vm0, %v1020_v17, %v7772_v15  ;;  %v5697_v57 = vsel %vm327_vm1, %v7775_v12, %v1404_v33  ;;  %v7781_v23 = vrot.slane %v7780_v30, 3  ;;  %v7784_v29 = vrot.slane %v7783_v40, 4 }
 0x1a3   :  { %7773 = vst [vmem:[#allocation169_spill] sm:$0xff] %v5692_v60  ;;  %7776 = vst [vmem:[#allocation107_spill] sm:$0xff] %v5697_v57  ;;  %v5702_v59 = vsel %vm327_vm1, %v1404_v33, %v7778_v53  ;;  %v7786_v15 = vrot.slane %v5468_v38, 1  ;;  %v1486_v12 = vrot.slane %v1453_v13, 2  ;;  %v7788_v53 = vld [vmem:[#allocation36_spill] sm:$0xff]  ;;  %v1099_v40 = vrot.slane %v1067_v10, 1 }
 0x1a4   :  { %7779 = vst [vmem:[#allocation170_spill] sm:$0xff] %v5702_v59  ;;  %v5707_v9 = vsel %vm1675_vm2, %v1789_v1, %v7781_v23  ;;  %v5712_v17 = vsel %vm2060_vm3, %v2174_v58, %v7784_v29  ;;  %v7789_v33 = vrot.slane %v7788_v53, 1  ;;  %v7791_v1 = vrot.slane %v5496_v26, 3  ;;  %v7793_v58 = vld [vmem:[#allocation90_spill] sm:$0xff]  ;;  %v7802_v57 = vld [vmem:[#allocation41_spill] sm:$0xff] }
 0x1a5   :  { %7782 = vst [vmem:[#allocation171_spill] sm:$0xff] %v5707_v9  ;;  %7785 = vst [vmem:[#allocation172_spill] sm:$0xff] %v5712_v17  ;;  %v5717_v11 = vsel %vm228_vm0, %v7786_v15, %v1102_v41  ;;  %v755_v17 = vadd.f32 %v739_v3, %v7793_v58  ;;  %v1483_v30 = vrot.slane %v1451_v62, 2  ;;  %v1836_v15 = vmul.f32 %v4704_v28, %v673_v24  ;;  %v689_v9 = vpop.permute.xlu1 %688  ;;  %v7797_v62 = vld [vmem:[#allocation37_spill] sm:$0xff] }
 0x1a6   :  { %7787 = vst [vmem:[#allocation173_spill] sm:$0xff] %v5717_v11  ;;  %v5722_v21 = vsel %vm228_vm0, %v1102_v41, %v7789_v33  ;;  %v5727_v23 = vsel %vm1675_vm2, %v7791_v1, %v1871_v45  ;;  %v5733_v13 = vmul.f32 %v7709_v39, %v673_v24  ;;  %v749_v41 = vmul.f32 %v4698_v47, %v713_v43 }
 0x1a7   :  { %7790 = vst [vmem:[#allocation174_spill] sm:$0xff] %v5722_v21  ;;  %7792 = vst [vmem:[#allocation175_spill] sm:$0xff] %v5727_v23  ;;  %v5737_v33 = vmul.f32 %v4700_v61, %v713_v43  ;;  %v5740_v1 = vmul.f32 %v4702_v56, %v713_v43  ;;  %v5743_v29 = vmul.f32 %v4704_v28, %v713_v43  ;;  %v7795_v3 = vrot.slane %v5493_v2, 2  ;;  %v7809_v23 = vld [vmem:[#allocation68_spill] sm:$0xff] }
 0x1a8   :  { %7794 = vst [vmem:[#allocation90_spill] sm:$0xff] %v5733_v13  ;;  %v7798_v24 = vrot.slane %v7797_v62, 2  ;;  %v1868_v49 = vrot.slane %v1836_v15, 3  ;;  %v5756_v59 = vmul.f32 %v7709_v39, %v713_v43  ;;  %v5758_v53 = vadd.f32 %v749_v41, %v665_v27  ;;  %v773_v41 = vpop.permute.xlu0 %772  ;;  %v7821_v13 = vld [vmem:[#allocation54_spill] sm:$0xff] }
 0x1a9   :  { %v5748_v10 = vsel %vm327_vm1, %v7795_v3, %v1486_v12  ;;  %v7803_v3 = vrot.slane %v7802_v57, 3  ;;  %v743_v43 = vmul.f32 %v4698_v47, %v689_v9  ;;  %v1071_v27 = vmul.f32 %v4700_v61, %v689_v9  ;;  %v7813_v57 = vld [vmem:[#allocation51_spill] sm:$0xff] }
 0x1aa   :  { %7796 = vst [vmem:[#allocation176_spill] sm:$0xff] %v5748_v10  ;;  %v5753_v58 = vsel %vm327_vm1, %v1486_v12, %v7798_v24  ;;  %7800 = vst [vmem:[#allocation178_spill] sm:$0xff] %v5756_v59  ;;  %v7805_v12 = vrot.slane %v5468_v38, 1  ;;  %v7807_v24 = vrot.slane %v5493_v2, 2  ;;  %v1455_v38 = vmul.f32 %v4702_v56, %v689_v9  ;;  %v7830_v59 = vld [vmem:[#allocation15_spill] sm:$0xff] }
 0x1ab   :  { %7799 = vst [vmem:[#allocation177_spill] sm:$0xff] %v5753_v58  ;;  %7801 = vst [vmem:[#allocation179_spill] sm:$0xff] %v5758_v53  ;;  %v5766_v10 = vsel %vm1675_vm2, %v1871_v45, %v7803_v3  ;;  %v7810_v45 = vld [vmem:[#allocation115_spill] sm:$0xff]  ;;  %v7815_v62 = vrot.slane %v5737_v33, 1  ;;  %v7819_v21 = vrot.slane %v5740_v1, 2  ;;  %v7832_v53 = vld [vmem:[#allocation72_spill] sm:$0xff] }
 0x1ac   :  { %7804 = vst [vmem:[#allocation180_spill] sm:$0xff] %v5766_v10  ;;  %v5771_v15 = vsel %vm228_vm0, %v1099_v40, %v7805_v12  ;;  %v5778_v60 = vsel %vm327_vm1, %v1483_v30, %v7807_v24  ;;  %v659_v3 = vadd.f32 %v7810_v45, %v7809_v23  ;;  %v7811_v40 = vrot.slane %v5496_v26, 3  ;;  %v7817_v30 = vld [vmem:[#allocation52_spill] sm:$0xff]  ;;  %v693_v26 = vpop.permute.xlu1 %692 }
 0x1ad   :  { %7806 = vst [vmem:[#allocation181_spill] sm:$0xff] %v5771_v15  ;;  %7808 = vst [vmem:[#allocation182_spill] sm:$0xff] %v5778_v60  ;;  %v7814_v10 = vrot.slane %v7813_v57, 1  ;;  %v7818_v24 = vrot.slane %v7817_v30, 2  ;;  %v744_v11 = vmul.f32 %v4698_v47, %v693_v26  ;;  %v5837_v20 = vmul.f32 %v4700_v61, %v693_v26 }
 0x1ae   :  { %v5787_v12 = vsel %vm1675_vm2, %v1868_v49, %v7811_v40  ;;  %v7822_v49 = vrot.slane %v7821_v13, 3  ;;  %v7823_v40 = vrot.slane %v5743_v29, 3  ;;  %v5811_v58 = vadd.f32 %v743_v43, %v659_v3 }
 0x1af   :  { %7812 = vst [vmem:[#allocation68_spill] sm:$0xff] %v5787_v12  ;;  %v5794_v2 = vsel %vm228_vm0, %v7815_v62, %v7814_v10  ;;  %v5801_v23 = vsel %vm327_vm1, %v7819_v21, %v7818_v24  ;;  %v1840_v10 = vmul.f32 %v4704_v28, %v689_v9  ;;  %v7826_v62 = vld [vmem:[#allocation7_spill] sm:$0xff]  ;;  %v5816_v21 = vmul.f32 %v7709_v39, %v689_v9  ;;  %v7838_v9 = vld [vmem:[#allocation17_spill] sm:$0xff] }
 0x1b0   :  { %7816 = vst [vmem:[#allocation115_spill] sm:$0xff] %v5794_v2  ;;  %7820 = vst [vmem:[#allocation183_spill] sm:$0xff] %v5801_v23  ;;  %v5809_v57 = vsel %vm1675_vm2, %v7823_v40, %v7822_v49  ;;  %v839_v30 = vmul.f32 %v7826_v62, %v773_v41  ;;  %v1106_v2 = vrot.slane %v1071_v27, 1  ;;  %v7828_v24 = vld [vmem:[#allocation11_spill] sm:$0xff]  ;;  %v5822_v13 = vmul.f32 %v7830_v59, %v773_v41  ;;  %v7834_v40 = vld [vmem:[#allocation56_spill] sm:$0xff] }
 0x1b1   :  { %7824 = vst [vmem:[#allocation184_spill] sm:$0xff] %v5809_v57  ;;  %7825 = vst [vmem:[#allocation185_spill] sm:$0xff] %v5811_v58  ;;  %v5819_v45 = vmul.f32 %v7828_v24, %v773_v41  ;;  %v1490_v23 = vrot.slane %v1455_v38, 2  ;;  %v7833_v49 = vrot.slane %v7832_v53, 1  ;;  %v7835_v43 = vrot.slane %v7834_v40, 1  ;;  %v7836_v27 = vld [vmem:[#allocation16_spill] sm:$0xff]  ;;  %v793_v58 = vpop.permute.xlu0 %792 }
 0x1b2   :  { %7827 = vst [vmem:[#allocation7_spill] sm:$0xff] %v5816_v21  ;;  %7831 = vst [vmem:[#allocation15_spill] sm:$0xff] %v5822_v13  ;;  %v855_v57 = vadd.f32 %v839_v30, %v755_v17  ;;  %v5831_v12 = vmul.f32 %v7836_v27, %v773_v41  ;;  %v5834_v14 = vmul.f32 %v7838_v9, %v773_v41  ;;  %v1875_v60 = vrot.slane %v1840_v10, 3  ;;  %v7848_v41 = vld [vmem:[#allocation76_spill] sm:$0xff] }
 0x1b3   :  { %7829 = vst [vmem:[#allocation11_spill] sm:$0xff] %v5819_v45  ;;  %v909_v3 = vsel %vm228_vm0, %v7835_v43, %v7833_v49  ;;  %v5840_v38 = vmul.f32 %v4702_v56, %v693_v26  ;;  %v7840_v40 = vrot.slane %v5157_v32, 1  ;;  %v7841_v49 = vld [vmem:[#allocation88_spill] sm:$0xff]  ;;  %v760_v8 = vadd.f32 %v744_v11, %v7843_v48 }
 0x1b4   :  { %7837 = vst [vmem:[#allocation56_spill] sm:$0xff] %v5831_v12  ;;  %7839 = vst [vmem:[#allocation16_spill] sm:$0xff] %v5834_v14  ;;  %v7842_v17 = vrot.slane %v7841_v49, 1  ;;  %v951_v43 = vadd.f32 %v909_v3, %v855_v57  ;;  %v5852_v19 = vmul.f32 %v4704_v28, %v693_v26  ;;  %v709_v57 = vpop.permute.xlu1 %708  ;;  %v5862_v3 = vmul.f32 %v7709_v39, %v693_v26  ;;  %v7846_v49 = vld [vmem:[#allocation122_spill] sm:$0xff]  ;;  %v7853_v12 = vld [vmem:[#allocation108_spill] sm:$0xff] }
 0x1b5   :  { %v7849_v15 = vrot.slane %v7848_v41, 1  ;;  %v5871_v10 = vmul.f32 %v7828_v24, %v793_v58  ;;  %v5874_v32 = vmul.f32 %v7830_v59, %v793_v58  ;;  %v5877_v11 = vmul.f32 %v7836_v27, %v793_v58  ;;  %v809_v41 = vpop.permute.xlu0 %808 }
 0x1b6   :  { %v1005_v30 = vsel %vm228_vm0, %v7842_v17, %v7840_v40  ;;  %v844_v40 = vmul.f32 %v7826_v62, %v793_v58  ;;  %7845 = vst [vmem:[#allocation88_spill] sm:$0xff] %v5862_v3  ;;  %v7847_v17 = vrot.slane %v7846_v49, 1  ;;  %v5880_v26 = vmul.f32 %v7838_v9, %v793_v58 }
 0x1b7   :  { %v5854_v5 = vadd.f32 %v1005_v30, %v951_v43  ;;  %v748_v48 = vmul.f32 %v4698_v47, %v709_v57  ;;  %v1076_v21 = vmul.f32 %v4700_v61, %v709_v57  ;;  %v1460_v14 = vmul.f32 %v4702_v56, %v709_v57 }
 0x1b8   :  { %v918_v30 = vsel %vm228_vm0, %v7849_v15, %v7847_v17  ;;  %v860_v18 = vadd.f32 %v844_v40, %v760_v8  ;;  %7850 = vst [vmem:[#allocation100_spill] sm:$0xff] %v5880_v26  ;;  %v7851_v15 = vrot.slane %v5837_v20, 1  ;;  %v7852_v40 = vrot.slane %v5840_v38, 2 }
 0x1b9   :  { %7844 = vst [vmem:[#allocation17_spill] sm:$0xff] %v5854_v5  ;;  %v764_v13 = vadd.f32 %v748_v48, %v7853_v12  ;;  %v1114_v45 = vrot.slane %v1076_v21, 1  ;;  %v1845_v5 = vmul.f32 %v4704_v28, %v709_v57  ;;  %v7854_v53 = vrot.slane %v5852_v19, 3  ;;  %v725_v48 = vpop.permute.xlu1 %724 }
 0x1ba   :  { %v5887_v8 = vsel %vm228_vm0, %v1106_v2, %v7851_v15  ;;  %v5892_v17 = vsel %vm327_vm1, %v1490_v23, %v7852_v40  ;;  %v956_v43 = vadd.f32 %v918_v30, %v860_v18  ;;  %v1498_v23 = vrot.slane %v1460_v14, 2 }
 0x1bb   :  { %v5901_v2 = vsel %vm1675_vm2, %v1875_v60, %v7854_v53  ;;  %v848_v21 = vmul.f32 %v7826_v62, %v809_v41  ;;  %v7855_v58 = vrot.slane %v5524_v31, 1  ;;  %v1883_v53 = vrot.slane %v1845_v5, 3 }
 0x1bc   :  { %v5904_v15 = vadd.f32 %v5601_v35, %v956_v43  ;;  %v5917_v35 = vmul.f32 %v7709_v39, %v709_v57  ;;  %v7857_v14 = vrot.slane %v5446_v22, 1  ;;  %v7858_v43 = vld [vmem:[#allocation83_spill] sm:$0xff]  ;;  %v7860_v12 = vrot.slane %v5737_v33, 1  ;;  %v7872_v22 = vld [vmem:[#allocation117_spill] sm:$0xff] }
 0x1bd   :  { %v5914_v60 = vsel %vm228_vm0, %v7855_v58, %v1114_v45  ;;  %v7859_v30 = vrot.slane %v7858_v43, 1  ;;  %v864_v26 = vadd.f32 %v848_v21, %v764_v13  ;;  %v5930_v31 = vmul.f32 %v7828_v24, %v809_v41 }
 0x1be   :  { %7856 = vst [vmem:[#allocation122_spill] sm:$0xff] %v5917_v35  ;;  %v5927_v18 = vsel %vm228_vm0, %v1114_v45, %v7860_v12  ;;  %v5933_v5 = vmul.f32 %v7830_v59, %v809_v41  ;;  %v7864_v57 = vrot.slane %v5544_v7, 2  ;;  %v5941_v3 = vmul.f32 %v7836_v27, %v809_v41  ;;  %v697_v35 = vpop.permute.xlu1 %696 }
 0x1bf   :  { %v925_v40 = vsel %vm228_vm0, %v7859_v30, %v7857_v14  ;;  %7861 = vst [vmem:[#allocation108_spill] sm:$0xff] %v5927_v18  ;;  %7862 = vst [vmem:[#allocation83_spill] sm:$0xff] %v5930_v31  ;;  %v5944_v33 = vmul.f32 %v7838_v9, %v809_v41  ;;  %v752_v45 = vmul.f32 %v4698_v47, %v725_v48  ;;  %v7868_v13 = vrot.slane %v5740_v1, 2  ;;  %v825_v14 = vpop.permute.xlu0 %824 }
 0x1c0   :  { %7863 = vst [vmem:[#allocation186_spill] sm:$0xff] %v5933_v5  ;;  %v5938_v58 = vsel %vm327_vm1, %v7864_v57, %v1498_v23  ;;  %7866 = vst [vmem:[#allocation188_spill] sm:$0xff] %v5941_v3  ;;  %v960_v12 = vadd.f32 %v925_v40, %v864_v26  ;;  %v5953_v21 = vmul.f32 %v4700_v61, %v725_v48  ;;  %v7870_v57 = vrot.slane %v5562_v51, 3  ;;  %v7902_v5 = vld [vmem:[#allocation58_spill] sm:$0xff] }
 0x1c1   :  { %7865 = vst [vmem:[#allocation187_spill] sm:$0xff] %v5938_v58  ;;  %7867 = vst [vmem:[#allocation189_spill] sm:$0xff] %v5944_v33  ;;  %v5950_v30 = vsel %vm327_vm1, %v1498_v23, %v7868_v13  ;;  %v5956_v7 = vmul.f32 %v4702_v56, %v725_v48  ;;  %v768_v1 = vadd.f32 %v752_v45, %v7872_v22  ;;  %v7873_v26 = vrot.slane %v5743_v29, 3  ;;  %v7878_v13 = vld [vmem:[#allocation92_spill] sm:$0xff] }
 0x1c2   :  { %7869 = vst [vmem:[#allocation190_spill] sm:$0xff] %v5950_v30  ;;  %v5961_v41 = vsel %vm1675_vm2, %v7870_v57, %v1883_v53  ;;  %v5966_v23 = vmul.f32 %v4704_v28, %v725_v48  ;;  %v852_v45 = vmul.f32 %v7826_v62, %v825_v14  ;;  %v5981_v29 = vadd.f32 %v5667_v44, %v960_v12 }
 0x1c3   :  { %7871 = vst [vmem:[#allocation191_spill] sm:$0xff] %v5961_v41  ;;  %v5971_v40 = vsel %vm1675_vm2, %v1883_v53, %v7873_v26  ;;  %v5985_v26 = vmul.f32 %v7709_v39, %v725_v48  ;;  %v7877_v30 = vrot.slane %v5513_v25, 1  ;;  %v7879_v51 = vrot.slane %v7878_v13, 1 }
 0x1c4   :  { %7874 = vst [vmem:[#allocation117_spill] sm:$0xff] %v5971_v40  ;;  %7875 = vst [vmem:[#allocation192_spill] sm:$0xff] %v5981_v29  ;;  %v868_v18 = vadd.f32 %v852_v45, %v768_v1  ;;  %v5993_v22 = vmul.f32 %v7828_v24, %v825_v14  ;;  %v5996_v33 = vmul.f32 %v7830_v59, %v825_v14  ;;  %v7883_v12 = vrot.slane %v5953_v21, 1 }
 0x1c5   :  { %7876 = vst [vmem:[#allocation193_spill] sm:$0xff] %v5985_v26  ;;  %v932_v57 = vsel %vm228_vm0, %v7879_v51, %v7877_v30  ;;  %v5999_v44 = vmul.f32 %v7836_v27, %v825_v14  ;;  %v7884_v48 = vrot.slane %v5614_v46, 1  ;;  %v6009_v40 = vmul.f32 %v7838_v9, %v825_v14 }
 0x1c6   :  { %7880 = vst [vmem:[#allocation194_spill] sm:$0xff] %v5993_v22  ;;  %7881 = vst [vmem:[#allocation195_spill] sm:$0xff] %v5996_v33  ;;  %v745_v30 = vmul.f32 %v4698_v47, %v697_v35  ;;  %v1073_v1 = vmul.f32 %v4700_v61, %v697_v35  ;;  %v7887_v51 = vrot.slane %v5956_v7, 2  ;;  %v7888_v45 = vrot.slane %v5627_v36, 2 }
 0x1c7   :  { %7882 = vst [vmem:[#allocation196_spill] sm:$0xff] %v5999_v44  ;;  %v6006_v53 = vsel %vm228_vm0, %v7884_v48, %v7883_v12  ;;  %7886 = vst [vmem:[#allocation198_spill] sm:$0xff] %v6009_v40  ;;  %v964_v41 = vadd.f32 %v932_v57, %v868_v18  ;;  %v1457_v46 = vmul.f32 %v4702_v56, %v697_v35  ;;  %v797_v48 = vpop.permute.xlu0 %796  ;;  %v7890_v14 = vrot.slane %v5966_v23, 3 }
 0x1c8   :  { %7885 = vst [vmem:[#allocation197_spill] sm:$0xff] %v6006_v53  ;;  %v6018_v29 = vsel %vm327_vm1, %v7888_v45, %v7887_v51  ;;  %v1842_v12 = vmul.f32 %v4704_v28, %v697_v35  ;;  %v7891_v53 = vrot.slane %v5630_v54, 3  ;;  %v761_v36 = vadd.f32 %v745_v30, %v5596_v34  ;;  %v729_v30 = vpop.permute.xlu1 %728  ;;  %v7897_v45 = vld [vmem:[#allocation4_spill] sm:$0xff] }
 0x1c9   :  { %7889 = vst [vmem:[#allocation199_spill] sm:$0xff] %v6018_v29  ;;  %v1109_v13 = vrot.slane %v1073_v1, 1  ;;  %v1060_v51 = vadd.f32 %v5428_v52, %v964_v41  ;;  %v7893_v54 = vrot.slane %v5837_v20, 1  ;;  %v845_v34 = vmul.f32 %v7826_v62, %v797_v48  ;;  %v7895_v1 = vld [vmem:[#allocation57_spill] sm:$0xff] }
 0x1ca   :  { %v6027_v58 = vsel %vm1675_vm2, %v7891_v53, %v7890_v14  ;;  %v6040_v14 = vmul.f32 %v7709_v39, %v697_v35  ;;  %v7896_v52 = vrot.slane %v7895_v1, 1  ;;  %v1493_v3 = vrot.slane %v1457_v46, 2 }
 0x1cb   :  { %7892 = vst [vmem:[#allocation200_spill] sm:$0xff] %v6027_v58  ;;  %v1110_v53 = vsel %vm228_vm0, %v7893_v54, %v1109_v13  ;;  %v1878_v57 = vrot.slane %v1842_v12, 3  ;;  %v7898_v18 = vrot.slane %v7897_v45, 1  ;;  %v7899_v29 = vrot.slane %v7846_v49, 1 }
 0x1cc   :  { %7894 = vst [vmem:[#allocation201_spill] sm:$0xff] %v6040_v14  ;;  %v6046_v41 = vsel %vm228_vm0, %v1109_v13, %v7896_v52  ;;  %v1148_v54 = vadd.f32 %v1110_v53, %v5904_v15  ;;  %v861_v35 = vadd.f32 %v845_v34, %v761_v36  ;;  %v6055_v40 = vmul.f32 %v7828_v24, %v797_v48  ;;  %v829_v52 = vpop.permute.xlu0 %828 }
 0x1cd   :  { %v920_v20 = vsel %vm228_vm0, %v7899_v29, %v7898_v18  ;;  %v6058_v26 = vmul.f32 %v7830_v59, %v797_v48  ;;  %v6061_v13 = vmul.f32 %v7836_v27, %v797_v48  ;;  %v6064_v46 = vmul.f32 %v7838_v9, %v797_v48 }
 0x1ce   :  { %v753_v12 = vmul.f32 %v4698_v47, %v729_v30  ;;  %v1081_v49 = vmul.f32 %v4700_v61, %v729_v30  ;;  %v957_v29 = vadd.f32 %v920_v20, %v861_v35  ;;  %v7482_v15 = vrot.slane %v6055_v40, 1 }
 0x1cf   :  { %7900 = vst [vmem:[#allocation57_spill] sm:$0xff] %v6064_v46  ;;  %v1465_v18 = vmul.f32 %v4702_v56, %v729_v30  ;;  %v7901_v53 = vrot.slane %v5840_v38, 2  ;;  %v7903_v47 = vrot.slane %v7902_v5, 2  ;;  %v7904_v20 = vrot.slane %v5852_v19, 3  ;;  %v7905_v56 = vld [vmem:[#allocation59_spill] sm:$0xff] }
 0x1d0   :  { %v1123_v58 = vrot.slane %v1081_v49, 1  ;;  %v7906_v36 = vrot.slane %v7905_v56, 3  ;;  %v7908_v19 = vrot.slane %v5953_v21, 1  ;;  %v6101_v14 = vadd.f32 %v5619_v0, %v957_v29 }
 0x1d1   :  { %v1494_v34 = vsel %vm327_vm1, %v7901_v53, %v1493_v3  ;;  %v6079_v61 = vsel %vm327_vm1, %v1493_v3, %v7903_v47  ;;  %v6084_v35 = vsel %vm1675_vm2, %v7904_v20, %v1878_v57  ;;  %v7907_v53 = vrot.slane %v5871_v10, 1 }
 0x1d2   :  { %v6089_v38 = vsel %vm1675_vm2, %v1878_v57, %v7906_v36  ;;  %v769_v3 = vadd.f32 %v753_v12, %v5518_v42  ;;  %v1124_v47 = vsel %vm228_vm0, %v7908_v19, %v1123_v58  ;;  %v1507_v20 = vrot.slane %v1465_v18, 2 }
 0x1d3   :  { %v1206_v49 = vsel %vm228_vm0, %v7907_v53, %v7482_v15  ;;  %v7909_v57 = vrot.slane %v6058_v26, 2  ;;  %v7910_v36 = vrot.slane %v5874_v32, 2  ;;  %v7911_v21 = vrot.slane %v6061_v13, 3  ;;  %v777_v53 = vpop.permute.xlu1 %776  ;;  %v7917_v15 = vld [vmem:[#allocation64_spill] sm:$0xff] }
 0x1d4   :  { %v1244_v48 = vadd.f32 %v1206_v49, %v1148_v54  ;;  %v1850_v54 = vmul.f32 %v4704_v28, %v729_v30  ;;  %v7912_v12 = vrot.slane %v5877_v11, 3  ;;  %v6119_v0 = vmul.f32 %v7709_v39, %v729_v30  ;;  %v7914_v49 = vld [vmem:[#allocation63_spill] sm:$0xff] }
 0x1d5   :  { %v1590_v31 = vsel %vm327_vm1, %v7910_v36, %v7909_v57  ;;  %v853_v29 = vmul.f32 %v7826_v62, %v829_v52  ;;  %v7915_v19 = vrot.slane %v7914_v49, 1  ;;  %v1156_v28 = vadd.f32 %v1124_v47, %v1060_v51  ;;  %v7919_v51 = vld [vmem:[#allocation28_spill] sm:$0xff] }
 0x1d6   :  { %v1340_v42 = vadd.f32 %v5303_v63, %v1244_v48  ;;  %v6116_v18 = vsel %vm1675_vm2, %v7912_v12, %v7911_v21  ;;  %7913 = vst [vmem:[#allocation4_spill] sm:$0xff] %v6119_v0  ;;  %v1892_v36 = vrot.slane %v1850_v54, 3  ;;  %v6128_v63 = vmul.f32 %v7828_v24, %v829_v52  ;;  %v7937_v0 = vld [vmem:[#allocation181_spill] sm:$0xff] }
 0x1d7   :  { %v6125_v57 = vsel %vm228_vm0, %v1123_v58, %v7915_v19  ;;  %v7916_v21 = vrot.slane %v5956_v7, 2  ;;  %v869_v39 = vadd.f32 %v853_v29, %v769_v3  ;;  %v6135_v30 = vmul.f32 %v7830_v59, %v829_v52 }
 0x1d8   :  { %v1436_v48 = vadd.f32 %v5624_v16, %v1340_v42  ;;  %v7918_v46 = vrot.slane %v7917_v15, 2  ;;  %v7920_v47 = vrot.slane %v7919_v51, 1  ;;  %v7921_v54 = vrot.slane %v5513_v25, 1  ;;  %v7924_v25 = vld [vmem:[#allocation65_spill] sm:$0xff] }
 0x1d9   :  { %v1508_v12 = vsel %vm327_vm1, %v7916_v21, %v1507_v20  ;;  %v7485_v7 = vrot.slane %v6128_v63, 1  ;;  %v6149_v42 = vmul.f32 %v7836_v27, %v829_v52  ;;  %v6153_v21 = vmul.f32 %v7838_v9, %v829_v52 }
 0x1da   :  { %v6140_v58 = vsel %vm327_vm1, %v1507_v20, %v7918_v46  ;;  %v934_v16 = vsel %vm228_vm0, %v7921_v54, %v7920_v47  ;;  %v1532_v3 = vadd.f32 %v1494_v34, %v1436_v48  ;;  %v7923_v46 = vrot.slane %v5966_v23, 3 }
 0x1db   :  { %v965_v19 = vadd.f32 %v934_v16, %v869_v39  ;;  %7922 = vst [vmem:[#allocation58_spill] sm:$0xff] %v6153_v21  ;;  %v7925_v15 = vrot.slane %v7924_v25, 3  ;;  %v7926_v34 = vrot.slane %v5993_v22, 1  ;;  %v840_v39 = vmul.f32 %v7826_v62, %v777_v53  ;;  %v7936_v16 = vld [vmem:[#allocation17_spill] sm:$0xff] }
 0x1dc   :  { %v6158_v20 = vsel %vm1675_vm2, %v7923_v46, %v1892_v36  ;;  %v1628_v52 = vadd.f32 %v1590_v31, %v1532_v3  ;;  %v6181_v29 = vmul.f32 %v7830_v59, %v777_v53  ;;  %v7930_v3 = vld [vmem:[#allocation72_spill] sm:$0xff]  ;;  %v6196_v46 = vmul.f32 %v7838_v9, %v777_v53 }
 0x1dd   :  { %v6163_v47 = vsel %vm1675_vm2, %v1892_v36, %v7925_v15  ;;  %v1220_v48 = vsel %vm228_vm0, %v7926_v34, %v7485_v7  ;;  %v6172_v54 = vadd.f32 %v5459_v55, %v965_v19  ;;  %v856_v15 = vadd.f32 %v840_v39, %v5489_v37 }
 0x1de   :  { %v1252_v23 = vadd.f32 %v1220_v48, %v1156_v28  ;;  %v6178_v36 = vmul.f32 %v7828_v24, %v777_v53  ;;  %7928 = vst [vmem:[#allocation63_spill] sm:$0xff] %v6181_v29  ;;  %v1725_v34 = vadd.f32 %v5313_v4, %v1628_v52  ;;  %v7929_v55 = vrot.slane %v5372_v6, 1  ;;  %7933 = vst [vmem:[#allocation72_spill] sm:$0xff] %v6196_v46  ;;  %v7934_v4 = vld [vmem:[#allocation101_spill] sm:$0xff]  ;;  %v7952_v46 = vld [vmem:[#allocation94_spill] sm:$0xff] }
 0x1df   :  { %v7931_v28 = vrot.slane %v7930_v3, 1  ;;  %v6191_v48 = vmul.f32 %v7836_v27, %v777_v53  ;;  %v1143_v3 = vadd.f32 %v7937_v0, %v7936_v16  ;;  %v7938_v6 = vrot.slane %v6135_v30, 2  ;;  %v7944_v0 = vld [vmem:[#allocation11_spill] sm:$0xff] }
 0x1e0   :  { %7927 = vst [vmem:[#allocation59_spill] sm:$0xff] %v6178_v36  ;;  %v1348_v31 = vadd.f32 %v5549_v50, %v1252_v23  ;;  %v7494_v7 = vrot.slane %v6178_v36, 1  ;;  %v1821_v52 = vadd.f32 %v7934_v4, %v1725_v34  ;;  %v7935_v50 = vld [vmem:[#allocation147_spill] sm:$0xff]  ;;  %v7939_v37 = vrot.slane %v5996_v33, 2  ;;  %v7942_v4 = vld [vmem:[#allocation134_spill] sm:$0xff] }
 0x1e1   :  { %v911_v19 = vsel %vm228_vm0, %v7931_v28, %v7929_v55  ;;  %7932 = vst [vmem:[#allocation28_spill] sm:$0xff] %v6191_v48  ;;  %v801_v28 = vpop.permute.xlu0 %800  ;;  %v7941_v53 = vrot.slane %v5999_v44, 3  ;;  %v7945_v16 = vrot.slane %v7944_v0, 1  ;;  %v7948_v36 = vld [vmem:[#allocation78_spill] sm:$0xff] }
 0x1e2   :  { %v952_v39 = vadd.f32 %v911_v19, %v856_v15  ;;  %v1444_v23 = vadd.f32 %v7935_v50, %v1348_v31  ;;  %v1604_v15 = vsel %vm327_vm1, %v7939_v37, %v7938_v6  ;;  %v7940_v19 = vrot.slane %v6149_v42, 3  ;;  %v7946_v6 = vld [vmem:[#allocation44_spill] sm:$0xff] }
 0x1e3   :  { %v1197_v50 = vsel %vm228_vm0, %v7945_v16, %v7494_v7  ;;  %v7947_v37 = vld [vmem:[#allocation60_spill] sm:$0xff]  ;;  %v6240_v33 = vmul.f32 %v7836_v27, %v801_v28 }
 0x1e4   :  { %v1989_v34 = vsel %vm1675_vm2, %v7941_v53, %v7940_v19  ;;  %v6214_v31 = vadd.f32 %v7942_v4, %v952_v39  ;;  %v1540_v55 = vadd.f32 %v1508_v12, %v1444_v23  ;;  %v1239_v21 = vadd.f32 %v1197_v50, %v1143_v3  ;;  %v789_v4 = vpop.permute.xlu1 %788  ;;  %v7950_v23 = vld [vmem:[#allocation15_spill] sm:$0xff] }
 0x1e5   :  { %v762_v25 = vadd.f32 %v7947_v37, %v7946_v6  ;;  %v846_v19 = vmul.f32 %v7826_v62, %v801_v28  ;;  %v1170_v39 = vmul.f32 %v7828_v24, %v801_v28  ;;  %v6228_v53 = vmul.f32 %v7830_v59, %v801_v28 }
 0x1e6   :  { %7943 = vst [vmem:[#allocation101_spill] sm:$0xff] %v6214_v31  ;;  %v1636_v0 = vadd.f32 %v1604_v15, %v1540_v55  ;;  %v1335_v16 = vadd.f32 %v7948_v36, %v1239_v21  ;;  %v7949_v12 = vrot.slane %v6181_v29, 2  ;;  %v7951_v3 = vrot.slane %v7950_v23, 2  ;;  %v7953_v15 = vld [vmem:[#allocation111_spill] sm:$0xff]  ;;  %v7955_v29 = vld [vmem:[#allocation56_spill] sm:$0xff] }
 0x1e7   :  { %v1149_v6 = vadd.f32 %v6046_v41, %v6101_v14  ;;  %v1917_v37 = vadd.f32 %v6084_v35, %v1821_v52  ;;  %v862_v44 = vadd.f32 %v846_v19, %v762_v25  ;;  %v1207_v7 = vrot.slane %v1170_v39, 1  ;;  %v7959_v39 = vld [vmem:[#allocation149_spill] sm:$0xff] }
 0x1e8   :  { %v1581_v50 = vsel %vm327_vm1, %v7951_v3, %v7949_v12  ;;  %v1733_v55 = vadd.f32 %v7952_v46, %v1636_v0  ;;  %v1431_v21 = vadd.f32 %v7953_v15, %v1335_v16  ;;  %v7954_v36 = vrot.slane %v6191_v48, 3  ;;  %v7961_v15 = vld [vmem:[#allocation185_spill] sm:$0xff] }
 0x1e9   :  { %v7956_v23 = vrot.slane %v7955_v29, 3  ;;  %v843_v14 = vmul.f32 %v7826_v62, %v789_v4  ;;  %v7957_v41 = vrot.slane %v7897_v45, 1  ;;  %v7958_v25 = vrot.slane %v6055_v40, 1  ;;  %v7960_v29 = vld [vmem:[#allocation182_spill] sm:$0xff]  ;;  %v7964_v40 = vld [vmem:[#allocation76_spill] sm:$0xff] }
 0x1ea   :  { %v1591_v46 = vrot.slane %v6228_v53, 2  ;;  %v6259_v19 = vmul.f32 %v7838_v9, %v801_v28  ;;  %v1829_v0 = vadd.f32 %v7959_v39, %v1733_v55  ;;  %v1527_v16 = vadd.f32 %v7960_v29, %v1431_v21  ;;  %v7968_v55 = vld [vmem:[#allocation127_spill] sm:$0xff] }
 0x1eb   :  { %v6249_v12 = vsel %vm1675_vm2, %v7956_v23, %v7954_v36  ;;  %v958_v35 = vadd.f32 %v7957_v41, %v862_v44  ;;  %v1208_v52 = vsel %vm228_vm0, %v7958_v25, %v1207_v7  ;;  %v859_v36 = vadd.f32 %v843_v14, %v7961_v15  ;;  %v7962_v23 = vld [vmem:[#allocation38_spill] sm:$0xff]  ;;  %v7966_v25 = vld [vmem:[#allocation67_spill] sm:$0xff] }
 0x1ec   :  { %v1245_v3 = vadd.f32 %v1208_v52, %v1149_v6  ;;  %v7963_v48 = vrot.slane %v7962_v23, 1  ;;  %v1976_v44 = vrot.slane %v6240_v33, 3  ;;  %v7965_v41 = vrot.slane %v7964_v40, 1  ;;  %v7969_v6 = vld [vmem:[#allocation96_spill] sm:$0xff]  ;;  %v7971_v14 = vld [vmem:[#allocation110_spill] sm:$0xff] }
 0x1ed   :  { %v7967_v31 = vrot.slane %v7966_v25, 1  ;;  %v1167_v28 = vmul.f32 %v7828_v24, %v789_v4  ;;  %v1623_v22 = vadd.f32 %v1581_v50, %v1527_v16  ;;  %v7970_v52 = vrot.slane %v7969_v6, 1  ;;  %v7975_v50 = vld [vmem:[#allocation162_spill] sm:$0xff] }
 0x1ee   :  { %v1054_v45 = vadd.f32 %v7963_v48, %v958_v35  ;;  %v1341_v39 = vadd.f32 %v7968_v55, %v1245_v3  ;;  %v7972_v29 = vrot.slane %v7971_v14, 1  ;;  %v1925_v35 = vadd.f32 %v6158_v20, %v1829_v0  ;;  %v7977_v0 = vld [vmem:[#allocation113_spill] sm:$0xff] }
 0x1ef   :  { %v916_v53 = vsel %vm228_vm0, %v7967_v31, %v7965_v41  ;;  %v7973_v15 = vrot.slane %v7895_v1, 1  ;;  %v1202_v40 = vrot.slane %v1167_v28, 1  ;;  %v1551_v31 = vmul.f32 %v7830_v59, %v789_v4  ;;  %v7974_v41 = vld [vmem:[#allocation81_spill] sm:$0xff] }
 0x1f0   :  { %v955_v21 = vadd.f32 %v916_v53, %v859_v36  ;;  %v1012_v48 = vsel %vm228_vm0, %v7972_v29, %v7970_v52  ;;  %v1720_v25 = vadd.f32 %v7974_v41, %v1623_v22  ;;  %v1437_v16 = vadd.f32 %v7975_v50, %v1341_v39 }
 0x1f1   :  { %v1150_v23 = vadd.f32 %v7973_v15, %v1054_v45  ;;  %v1936_v36 = vmul.f32 %v7836_v27, %v789_v4  ;;  %v6287_v53 = vadd.f32 %v6116_v18, %v1917_v37  ;;  %v7976_v6 = vrot.slane %v6058_v26, 2  ;;  %v7979_v26 = vld [vmem:[#allocation5_spill] sm:$0xff] }
 0x1f2   :  { %v1051_v3 = vadd.f32 %v1012_v48, %v955_v21  ;;  %v1816_v45 = vadd.f32 %v7977_v0, %v1720_v25  ;;  %v1533_v28 = vadd.f32 %v6079_v61, %v1437_v16  ;;  %v7978_v22 = vrot.slane %v6061_v13, 3  ;;  %v7982_v48 = vld [vmem:[#allocation68_spill] sm:$0xff]  ;;  %v7983_v25 = vld [vmem:[#allocation39_spill] sm:$0xff] }
 0x1f3   :  { %v1246_v55 = vadd.f32 %v1207_v7, %v1150_v23  ;;  %v1592_v20 = vsel %vm327_vm1, %v7976_v6, %v1591_v46  ;;  %v833_v7 = vpop.permute.xlu0 %832  ;;  %v6303_v37 = vadd.f32 %v1989_v34, %v1925_v35  ;;  %v7980_v21 = vrot.slane %v7979_v26, 2  ;;  %v7987_v6 = vld [vmem:[#allocation129_spill] sm:$0xff]  ;;  %v7988_v0 = vld [vmem:[#allocation87_spill] sm:$0xff] }
 0x1f4   :  { %v6300_v39 = vsel %vm1675_vm2, %v7978_v22, %v1976_v44  ;;  %v1147_v18 = vadd.f32 %v5887_v8, %v1051_v3  ;;  %v7981_v14 = vrot.slane %v5871_v10, 1  ;;  %v1586_v61 = vrot.slane %v1551_v31, 2  ;;  %v7985_v8 = vld [vmem:[#allocation35_spill] sm:$0xff]  ;;  %v7986_v3 = vld [vmem:[#allocation69_spill] sm:$0xff] }
 0x1f5   :  { %v1342_v52 = vadd.f32 %v7980_v21, %v1246_v55  ;;  %v1912_v15 = vadd.f32 %v7982_v48, %v1816_v45  ;;  %v1629_v23 = vadd.f32 %v1592_v20, %v1533_v28  ;;  %v1971_v41 = vrot.slane %v1936_v36, 3  ;;  %v7990_v26 = vld [vmem:[#allocation163_spill] sm:$0xff] }
 0x1f6   :  { %v1204_v29 = vsel %vm228_vm0, %v1202_v40, %v7981_v14  ;;  %v7984_v50 = vrot.slane %v7983_v25, 2  ;;  %v770_v34 = vadd.f32 %v7986_v3, %v7985_v8  ;;  %v854_v35 = vmul.f32 %v7826_v62, %v833_v7  ;;  %v805_v8 = vpop.permute.xlu1 %804 }
 0x1f7   :  { %v1243_v13 = vadd.f32 %v1204_v29, %v1147_v18  ;;  %v1178_v55 = vmul.f32 %v7828_v24, %v833_v7  ;;  %v1726_v10 = vadd.f32 %v7987_v6, %v1629_v23  ;;  %v6320_v31 = vmul.f32 %v7838_v9, %v789_v4 }
 0x1f8   :  { %v1438_v16 = vadd.f32 %v7984_v50, %v1342_v52  ;;  %v6323_v20 = vmul.f32 %v7830_v59, %v833_v7  ;;  %v7989_v36 = vrot.slane %v7902_v5, 2  ;;  %v870_v28 = vadd.f32 %v854_v35, %v770_v34  ;;  %v7991_v52 = vld [vmem:[#allocation116_spill] sm:$0xff]  ;;  %v7998_v35 = vld [vmem:[#allocation27_spill] sm:$0xff]  ;;  %v8096_v34 = vld [vmem:[#allocation133_spill] sm:$0xff] }
 0x1f9   :  { %v1339_v40 = vadd.f32 %v7988_v0, %v1243_v13  ;;  %v1221_v22 = vrot.slane %v1178_v55, 1  ;;  %v6328_v18 = vmul.f32 %v7836_v27, %v833_v7  ;;  %v1822_v21 = vadd.f32 %v7990_v26, %v1726_v10 }
 0x1fa   :  { %v1534_v45 = vadd.f32 %v7989_v36, %v1438_v16  ;;  %v7992_v29 = vrot.slane %v5874_v32, 2  ;;  %v1157_v48 = vadd.f32 %v6125_v57, %v6172_v54  ;;  %v7993_v5 = vrot.slane %v7919_v51, 1  ;;  %v7996_v54 = vld [vmem:[#allocation10_spill] sm:$0xff] }
 0x1fb   :  { %v1435_v14 = vadd.f32 %v7991_v52, %v1339_v40  ;;  %v7994_v25 = vrot.slane %v6128_v63, 1  ;;  %v1605_v16 = vrot.slane %v6323_v20, 2  ;;  %v7995_v32 = vrot.slane %v5877_v11, 3  ;;  %v8000_v11 = vld [vmem:[#allocation93_spill] sm:$0xff]  ;;  %v8001_v20 = vld [vmem:[#allocation40_spill] sm:$0xff] }
 0x1fc   :  { %v1588_v4 = vsel %vm327_vm1, %v1586_v61, %v7992_v29  ;;  %v1630_v23 = vadd.f32 %v1591_v46, %v1534_v45  ;;  %v966_v13 = vadd.f32 %v7993_v5, %v870_v28  ;;  %v7997_v46 = vrot.slane %v7996_v54, 3  ;;  %v8006_v29 = vld [vmem:[#allocation71_spill] sm:$0xff] }
 0x1fd   :  { %v1222_v50 = vsel %vm228_vm0, %v7994_v25, %v1221_v22  ;;  %v1531_v3 = vadd.f32 %v5892_v17, %v1435_v14  ;;  %v1973_v61 = vsel %vm1675_vm2, %v1971_v41, %v7995_v32  ;;  %v7999_v55 = vrot.slane %v7998_v35, 1 }
 0x1fe   :  { %v1253_v57 = vadd.f32 %v1222_v50, %v1157_v48  ;;  %v1727_v51 = vadd.f32 %v7997_v46, %v1630_v23  ;;  %v1990_v6 = vrot.slane %v6328_v18, 3  ;;  %v6354_v10 = vmul.f32 %v7838_v9, %v833_v7  ;;  %v8009_v23 = vld [vmem:[#allocation153_spill] sm:$0xff] }
 0x1ff   :  { %v1062_v63 = vadd.f32 %v7999_v55, %v966_v13  ;;  %v1918_v17 = vadd.f32 %v6089_v38, %v1822_v21  ;;  %v1627_v0 = vadd.f32 %v1588_v4, %v1531_v3  ;;  %v847_v41 = vmul.f32 %v7826_v62, %v805_v8  ;;  %v8008_v21 = vld [vmem:[#allocation89_spill] sm:$0xff] }
 0x200   :  { %v1349_v40 = vadd.f32 %v8000_v11, %v1253_v57  ;;  %v8002_v36 = vrot.slane %v8001_v20, 3  ;;  %v8003_v28 = vrot.slane %v7914_v49, 1  ;;  %v8004_v52 = vrot.slane %v6135_v30, 2  ;;  %v8010_v13 = vld [vmem:[#allocation85_spill] sm:$0xff] }
 0x201   :  { %v8005_v7 = vrot.slane %v7858_v43, 1  ;;  %v8007_v48 = vrot.slane %v8006_v29, 1  ;;  %v1724_v4 = vadd.f32 %v8008_v21, %v1627_v0  ;;  %v863_v25 = vadd.f32 %v847_v41, %v8010_v13  ;;  %v8012_v57 = vld [vmem:[#allocation121_spill] sm:$0xff]  ;;  %v8017_v41 = vld [vmem:[#allocation119_spill] sm:$0xff] }
 0x202   :  { %v1823_v45 = vadd.f32 %v8002_v36, %v1727_v51  ;;  %v1158_v26 = vadd.f32 %v8003_v28, %v1062_v63  ;;  %v1606_v14 = vsel %vm327_vm1, %v8004_v52, %v1605_v16  ;;  %v1445_v5 = vadd.f32 %v8009_v23, %v1349_v40  ;;  %v8013_v63 = vld [vmem:[#allocation29_spill] sm:$0xff]  ;;  %v8015_v40 = vld [vmem:[#allocation104_spill] sm:$0xff]  ;;  %v821_v52 = vpop.permute.xlu1 %820  ;;  %v8025_v23 = vld [vmem:[#allocation14_spill] sm:$0xff] }
 0x203   :  { %v923_v38 = vsel %vm228_vm0, %v8007_v48, %v8005_v7  ;;  %v1171_v50 = vmul.f32 %v7828_v24, %v805_v8  ;;  %v8011_v49 = vrot.slane %v7905_v56, 3  ;;  %v1555_v32 = vmul.f32 %v7830_v59, %v805_v8 }
 0x204   :  { %v1254_v30 = vadd.f32 %v1221_v22, %v1158_v26  ;;  %v1940_v43 = vmul.f32 %v7836_v27, %v805_v8  ;;  %v1820_v54 = vadd.f32 %v8012_v57, %v1724_v4  ;;  %v1541_v46 = vadd.f32 %v6140_v58, %v1445_v5  ;;  %v8031_v57 = vld [vmem:[#allocation154_spill] sm:$0xff] }
 0x205   :  { %v1919_v3 = vadd.f32 %v8011_v49, %v1823_v45  ;;  %v959_v51 = vadd.f32 %v923_v38, %v863_v25  ;;  %v1209_v35 = vrot.slane %v1171_v50, 1  ;;  %v8014_v0 = vrot.slane %v8013_v63, 2  ;;  %v8027_v25 = vld [vmem:[#allocation64_spill] sm:$0xff]  ;;  %v8029_v49 = vld [vmem:[#allocation186_spill] sm:$0xff] }
 0x206   :  { %v8016_v56 = vrot.slane %v8015_v40, 1  ;;  %v8018_v22 = vrot.slane %v8017_v41, 1  ;;  %v1593_v36 = vrot.slane %v1555_v32, 2  ;;  %v6391_v45 = vadd.f32 %v6249_v12, %v1912_v15  ;;  %v8022_v15 = vld [vmem:[#allocation77_spill] sm:$0xff]  ;;  %v8034_v41 = vld [vmem:[#allocation92_spill] sm:$0xff]  ;;  %v8103_v12 = vld [vmem:[#allocation139_spill] sm:$0xff] }
 0x207   :  { %v2015_v55 = vadd.f32 %v1976_v44, %v1919_v3  ;;  %v1350_v11 = vadd.f32 %v8014_v0, %v1254_v30  ;;  %v1916_v58 = vadd.f32 %v5901_v2, %v1820_v54  ;;  %v1637_v28 = vadd.f32 %v1606_v14, %v1541_v46  ;;  %v8019_v44 = vld [vmem:[#allocation32_spill] sm:$0xff]  ;;  %v8023_v14 = vld [vmem:[#allocation83_spill] sm:$0xff]  ;;  %v8033_v40 = vld [vmem:[#allocation97_spill] sm:$0xff] }
 0x208   :  { %v1019_v20 = vsel %vm228_vm0, %v8018_v22, %v8016_v56  ;;  %v6395_v33 = vadd.f32 %v6300_v39, %v1918_v17  ;;  %v8020_v7 = vrot.slane %v8019_v44, 2  ;;  %v8021_v48 = vrot.slane %v6149_v42, 3 }
 0x209   :  { %v1055_v26 = vadd.f32 %v1019_v20, %v959_v51  ;;  %v1734_v21 = vadd.f32 %v8022_v15, %v1637_v28  ;;  %v8024_v4 = vrot.slane %v8023_v14, 1  ;;  %v1978_v17 = vrot.slane %v1940_v43, 3  ;;  %v8036_v20 = vld [vmem:[#allocation80_spill] sm:$0xff] }
 0x20a   :  { %v1446_v29 = vadd.f32 %v8020_v7, %v1350_v11  ;;  %v1991_v38 = vsel %vm1675_vm2, %v8021_v48, %v1990_v6  ;;  %v8026_v5 = vrot.slane %v8025_v23, 4  ;;  %v8028_v50 = vrot.slane %v8027_v25, 2  ;;  %v8043_v23 = vld [vmem:[#allocation114_spill] sm:$0xff]  ;;  %v8045_v25 = vld [vmem:[#allocation124_spill] sm:$0xff] }
 0x20b   :  { %v1151_v2 = vadd.f32 %v5914_v60, %v1055_v26  ;;  %v1211_v39 = vsel %vm228_vm0, %v1209_v35, %v8024_v4  ;;  %v8030_v3 = vrot.slane %v8029_v49, 2  ;;  %v851_v32 = vmul.f32 %v7826_v62, %v821_v52  ;;  %v8032_v35 = vld [vmem:[#allocation160_spill] sm:$0xff] }
 0x20c   :  { %v6412_v13 = vadd.f32 %v8026_v5, %v2015_v55  ;;  %v1542_v42 = vadd.f32 %v8028_v50, %v1446_v29  ;;  %v1830_v60 = vadd.f32 %v8031_v57, %v1734_v21  ;;  %v6422_v46 = vmul.f32 %v7838_v9, %v805_v8  ;;  %v8040_v29 = vld [vmem:[#allocation188_spill] sm:$0xff] }
 0x20d   :  { %v1595_v30 = vsel %vm327_vm1, %v1593_v36, %v8030_v3  ;;  %v1247_v54 = vadd.f32 %v1211_v39, %v1151_v2  ;;  %v1175_v43 = vmul.f32 %v7828_v24, %v821_v52  ;;  %v867_v55 = vadd.f32 %v851_v32, %v8032_v35  ;;  %v8042_v2 = vld [vmem:[#allocation125_spill] sm:$0xff]  ;;  %v8050_v35 = vld [vmem:[#allocation194_spill] sm:$0xff] }
 0x20e   :  { %v1638_v51 = vadd.f32 %v1605_v16, %v1542_v42  ;;  %v1559_v63 = vmul.f32 %v7830_v59, %v821_v52  ;;  %v1944_v0 = vmul.f32 %v7836_v27, %v821_v52  ;;  %v1926_v11 = vadd.f32 %v6163_v47, %v1830_v60  ;;  %v8038_v16 = vld [vmem:[#allocation30_spill] sm:$0xff]  ;;  %v781_v47 = vpop.permute.xlu1 %780  ;;  %v8047_v42 = vld [vmem:[#allocation33_spill] sm:$0xff] }
 0x20f   :  { %v1343_v56 = vadd.f32 %v8033_v40, %v1247_v54  ;;  %v8035_v22 = vrot.slane %v8034_v41, 1  ;;  %v8037_v36 = vrot.slane %v8036_v20, 1  ;;  %v1216_v28 = vrot.slane %v1175_v43, 1  ;;  %v8049_v43 = vld [vmem:[#allocation187_spill] sm:$0xff]  ;;  %v8052_v41 = vld [vmem:[#allocation65_spill] sm:$0xff]  ;;  %v8094_v39 = vld [vmem:[#allocation26_spill] sm:$0xff] }
 0x210   :  { %v6435_v26 = vadd.f32 %v1973_v61, %v1916_v58  ;;  %v8039_v44 = vrot.slane %v8038_v16, 3  ;;  %v8041_v48 = vrot.slane %v8040_v29, 3  ;;  %v8044_v5 = vrot.slane %v8043_v23, 1  ;;  %v8054_v20 = vld [vmem:[#allocation197_spill] sm:$0xff] }
 0x211   :  { %v930_v8 = vsel %vm228_vm0, %v8037_v36, %v8035_v22  ;;  %v1439_v4 = vadd.f32 %v8042_v2, %v1343_v56  ;;  %v8046_v50 = vrot.slane %v8045_v25, 1  ;;  %v6450_v58 = vmul.f32 %v7838_v9, %v821_v52 }
 0x212   :  { %v1735_v7 = vadd.f32 %v8039_v44, %v1638_v51  ;;  %v1980_v15 = vsel %vm1675_vm2, %v1978_v17, %v8041_v48  ;;  %v963_v21 = vadd.f32 %v930_v8, %v867_v55  ;;  %v8048_v3 = vrot.slane %v8047_v42, 3 }
 0x213   :  { %v1026_v61 = vsel %vm228_vm0, %v8046_v50, %v8044_v5  ;;  %v1600_v17 = vrot.slane %v1559_v63, 2  ;;  %v1985_v60 = vrot.slane %v1944_v0, 3  ;;  %v6454_v54 = vadd.f32 %v1991_v38, %v1926_v11  ;;  %v8055_v11 = vld [vmem:[#allocation167_spill] sm:$0xff] }
 0x214   :  { %v1831_v32 = vadd.f32 %v8048_v3, %v1735_v7  ;;  %v1059_v57 = vadd.f32 %v1026_v61, %v963_v21  ;;  %v1535_v51 = vadd.f32 %v8049_v43, %v1439_v4  ;;  %v8051_v55 = vrot.slane %v8050_v35, 1  ;;  %v8056_v7 = vld [vmem:[#allocation8_spill] sm:$0xff]  ;;  %v8058_v21 = vld [vmem:[#allocation137_spill] sm:$0xff]  ;;  %v8061_v50 = vld [vmem:[#allocation195_spill] sm:$0xff] }
 0x215   :  { %v841_v56 = vmul.f32 %v7826_v62, %v781_v47  ;;  %v8053_v22 = vrot.slane %v8052_v41, 3  ;;  %v6465_v8 = vmul.f32 %v7828_v24, %v781_v47  ;;  %v6468_v63 = vmul.f32 %v7830_v59, %v781_v47 }
 0x216   :  { %v1218_v40 = vsel %vm228_vm0, %v1216_v28, %v8051_v55  ;;  %v1155_v36 = vadd.f32 %v8054_v20, %v1059_v57  ;;  %v1631_v38 = vadd.f32 %v1595_v30, %v1535_v51  ;;  %v6473_v28 = vmul.f32 %v7836_v27, %v781_v47  ;;  %v8060_v30 = vld [vmem:[#allocation98_spill] sm:$0xff]  ;;  %v8064_v57 = vld [vmem:[#allocation173_spill] sm:$0xff]  ;;  %v813_v51 = vpop.permute.xlu1 %812 }
 0x217   :  { %v1927_v52 = vadd.f32 %v8053_v22, %v1831_v32  ;;  %v857_v16 = vadd.f32 %v841_v56, %v8055_v11  ;;  %v8057_v48 = vrot.slane %v8056_v7, 1  ;;  %v8059_v2 = vrot.slane %v8058_v21, 1  ;;  %v8063_v32 = vld [vmem:[#allocation101_spill] sm:$0xff]  ;;  %v8068_v20 = vld [vmem:[#allocation126_spill] sm:$0xff]  ;;  %v8097_v21 = vld [vmem:[#allocation84_spill] sm:$0xff] }
 0x218   :  { %v1251_v44 = vadd.f32 %v1218_v40, %v1155_v36  ;;  %v1198_v23 = vrot.slane %v6465_v8, 1  ;;  %v6482_v5 = vmul.f32 %v7838_v9, %v781_v47  ;;  %v1728_v25 = vadd.f32 %v8060_v30, %v1631_v38  ;;  %v8065_v55 = vld [vmem:[#allocation105_spill] sm:$0xff]  ;;  %v8066_v47 = vld [vmem:[#allocation59_spill] sm:$0xff]  ;;  %v8109_v8 = vld [vmem:[#allocation18_spill] sm:$0xff] }
 0x219   :  { %v913_v4 = vsel %vm228_vm0, %v8059_v2, %v8057_v48  ;;  %v8062_v61 = vrot.slane %v8061_v50, 2  ;;  %v1144_v43 = vadd.f32 %v8064_v57, %v8063_v32  ;;  %v2023_v35 = vadd.f32 %v1990_v6, %v1927_v52  ;;  %v8069_v36 = vld [vmem:[#allocation135_spill] sm:$0xff]  ;;  %v8070_v48 = vld [vmem:[#allocation132_spill] sm:$0xff] }
 0x21a   :  { %v953_v3 = vadd.f32 %v913_v4, %v857_v16  ;;  %v1347_v40 = vadd.f32 %v8065_v55, %v1251_v44  ;;  %v8067_v56 = vrot.slane %v8066_v47, 1  ;;  %v1582_v22 = vrot.slane %v6468_v63, 2  ;;  %v8071_v6 = vld [vmem:[#allocation196_spill] sm:$0xff]  ;;  %v8073_v4 = vld [vmem:[#allocation191_spill] sm:$0xff] }
 0x21b   :  { %v1602_v42 = vsel %vm327_vm1, %v1600_v17, %v8062_v61  ;;  %v1824_v17 = vadd.f32 %v8068_v20, %v1728_v25  ;;  %v1967_v16 = vrot.slane %v6473_v28, 3  ;;  %v8072_v52 = vrot.slane %v8071_v6, 3  ;;  %v8074_v50 = vld [vmem:[#allocation144_spill] sm:$0xff]  ;;  %v8075_v32 = vld [vmem:[#allocation31_spill] sm:$0xff] }
 0x21c   :  { %v1199_v41 = vsel %vm228_vm0, %v8067_v56, %v1198_v23  ;;  %v1049_v38 = vadd.f32 %v8069_v36, %v953_v3  ;;  %v1443_v18 = vadd.f32 %v8070_v48, %v1347_v40  ;;  %v849_v2 = vmul.f32 %v7826_v62, %v813_v51  ;;  %v8078_v40 = vld [vmem:[#allocation179_spill] sm:$0xff]  ;;  %v8082_v48 = vld [vmem:[#allocation28_spill] sm:$0xff] }
 0x21d   :  { %v1240_v11 = vadd.f32 %v1199_v41, %v1144_v43  ;;  %v6506_v44 = vsel %vm1675_vm2, %v1985_v60, %v8072_v52  ;;  %v1920_v30 = vadd.f32 %v8073_v4, %v1824_v17  ;;  %v6513_v61 = vmul.f32 %v7828_v24, %v813_v51  ;;  %v8077_v60 = vld [vmem:[#allocation199_spill] sm:$0xff]  ;;  %v8079_v41 = vld [vmem:[#allocation136_spill] sm:$0xff] }
 0x21e   :  { %v6516_v3 = vmul.f32 %v7830_v59, %v813_v51  ;;  %v8076_v57 = vrot.slane %v8075_v32, 4  ;;  %v1539_v55 = vadd.f32 %v8077_v60, %v1443_v18  ;;  %v865_v47 = vadd.f32 %v849_v2, %v8078_v40  ;;  %v8080_v17 = vld [vmem:[#allocation63_spill] sm:$0xff]  ;;  %v8084_v2 = vld [vmem:[#allocation20_spill] sm:$0xff] }
 0x21f   :  { %v1336_v25 = vadd.f32 %v8074_v50, %v1240_v11  ;;  %v6525_v56 = vmul.f32 %v7836_v27, %v813_v51  ;;  %v8081_v36 = vrot.slane %v8080_v17, 2  ;;  %v1212_v18 = vrot.slane %v6513_v61, 1  ;;  %v8086_v50 = vld [vmem:[#allocation150_spill] sm:$0xff]  ;;  %v8089_v60 = vld [vmem:[#allocation108_spill] sm:$0xff]  ;;  %v785_v17 = vpop.permute.xlu1 %784 }
 0x220   :  { %v6520_v43 = vadd.f32 %v8076_v57, %v2023_v35  ;;  %v8083_v35 = vrot.slane %v8082_v48, 3  ;;  %v1635_v52 = vadd.f32 %v1602_v42, %v1539_v55  ;;  %v8085_v4 = vrot.slane %v8084_v2, 1  ;;  %v8088_v57 = vld [vmem:[#allocation192_spill] sm:$0xff]  ;;  %v8128_v61 = vld [vmem:[#allocation42_spill] sm:$0xff] }
 0x221   :  { %v1432_v20 = vadd.f32 %v8079_v41, %v1336_v25  ;;  %v1583_v11 = vsel %vm327_vm1, %v8081_v36, %v1582_v22  ;;  %v8087_v25 = vrot.slane %v8086_v50, 1  ;;  %v1152_v40 = vadd.f32 %v8089_v60, %v8088_v57  ;;  %v8091_v48 = vld [vmem:[#allocation176_spill] sm:$0xff] }
 0x222   :  { %v6538_v6 = vsel %vm1675_vm2, %v8083_v35, %v1967_v16  ;;  %v6549_v41 = vmul.f32 %v7838_v9, %v813_v51  ;;  %v6551_v36 = vadd.f32 %v1980_v15, %v1920_v30  ;;  %v8092_v42 = vrot.slane %v8023_v14, 1  ;;  %v8095_v15 = vld [vmem:[#allocation43_spill] sm:$0xff] }
 0x223   :  { %v927_v32 = vsel %vm228_vm0, %v8087_v25, %v8085_v4  ;;  %v1528_v35 = vadd.f32 %v8091_v48, %v1432_v20  ;;  %v7500_v50 = vrot.slane %v6516_v3, 2  ;;  %v8093_v4 = vld [vmem:[#allocation106_spill] sm:$0xff]  ;;  %v1981_v51 = vrot.slane %v6525_v56, 3  ;;  %v6771_v56 = vld [vmem:[%s7281_s8] ss:$0 sm:$0xff] }
 0x224   :  { %8090 = vst [vmem:[#allocation147_spill] sm:$0xff] %v6549_v41  ;;  %v1213_v55 = vsel %vm228_vm0, %v8092_v42, %v1212_v18  ;;  %v1732_v25 = vadd.f32 %v8093_v4, %v1635_v52  ;;  %v961_v0 = vadd.f32 %v927_v32, %v865_v47  ;;  %v758_v30 = vadd.f32 %v8095_v15, %v8094_v39  ;;  %v8098_v47 = vld [vmem:[#allocation146_spill] sm:$0xff]  ;;  %v8099_v39 = vld [vmem:[#allocation200_spill] sm:$0xff]  ;;  %v8100_v4 = vld [vmem:[#allocation107_spill] sm:$0xff] }
 0x225   :  { %v1248_v57 = vadd.f32 %v1213_v55, %v1152_v40  ;;  %v1624_v60 = vadd.f32 %v1583_v11, %v1528_v35  ;;  %v842_v20 = vmul.f32 %v7826_v62, %v785_v17  ;;  %v1166_v48 = vmul.f32 %v7828_v24, %v785_v17 }
 0x226   :  { %v1828_v14 = vadd.f32 %v8096_v34, %v1732_v25  ;;  %v6570_v52 = vmul.f32 %v7830_v59, %v785_v17  ;;  %v6574_v35 = vmul.f32 %v7836_v27, %v785_v17  ;;  %v8101_v34 = vrot.slane %v8029_v49, 2  ;;  %v8102_v25 = vld [vmem:[#allocation174_spill] sm:$0xff] }
 0x227   :  { %v1344_v42 = vadd.f32 %v8097_v21, %v1248_v57  ;;  %v1721_v32 = vadd.f32 %v8098_v47, %v1624_v60  ;;  %v858_v40 = vadd.f32 %v842_v20, %v758_v30  ;;  %v1200_v11 = vrot.slane %v1166_v48, 1  ;;  %v8106_v49 = vld [vmem:[#allocation190_spill] sm:$0xff] }
 0x228   :  { %v1924_v55 = vadd.f32 %v8099_v39, %v1828_v14  ;;  %v1597_v21 = vsel %vm327_vm1, %v8101_v34, %v7500_v50  ;;  %v1145_v57 = vadd.f32 %v8102_v25, %v1049_v38  ;;  %v8104_v60 = vrot.slane %v8056_v7, 1  ;;  %v817_v14 = vpop.permute.xlu1 %816  ;;  %v8114_v50 = vld [vmem:[#allocation36_spill] sm:$0xff] }
 0x229   :  { %v1440_v15 = vadd.f32 %v8100_v4, %v1344_v42  ;;  %v1817_v1 = vadd.f32 %v8103_v12, %v1721_v32  ;;  %v1201_v20 = vsel %vm228_vm0, %v1198_v23, %v1200_v11  ;;  %v6591_v48 = vmul.f32 %v7838_v9, %v785_v17  ;;  %v8105_v42 = vld [vmem:[#allocation169_spill] sm:$0xff]  ;;  %v8108_v32 = vld [vmem:[#allocation175_spill] sm:$0xff] }
 0x22a   :  { %v954_v30 = vadd.f32 %v8104_v60, %v858_v40  ;;  %v1057_v47 = vadd.f32 %v8105_v42, %v961_v0  ;;  %v8107_v38 = vrot.slane %v8040_v29, 3  ;;  %v1241_v7 = vadd.f32 %v1201_v20, %v1145_v57  ;;  %v8111_v0 = vld [vmem:[#allocation145_spill] sm:$0xff]  ;;  %v8113_v42 = vld [vmem:[#allocation50_spill] sm:$0xff] }
 0x22b   :  { %v1536_v39 = vadd.f32 %v8106_v49, %v1440_v15  ;;  %v1913_v40 = vadd.f32 %v8108_v32, %v1817_v1  ;;  %v8110_v4 = vrot.slane %v8109_v8, 1  ;;  %v1584_v17 = vrot.slane %v6570_v52, 2  ;;  %v8112_v15 = vld [vmem:[#allocation53_spill] sm:$0xff] }
 0x22c   :  { %v1982_v12 = vsel %vm1675_vm2, %v8107_v38, %v1981_v51  ;;  %v1969_v34 = vrot.slane %v6574_v35, 3  ;;  %v1337_v60 = vadd.f32 %v8111_v0, %v1241_v7  ;;  %v766_v49 = vadd.f32 %v8113_v42, %v8112_v15  ;;  %v8117_v7 = vld [vmem:[#allocation138_spill] sm:$0xff]  ;;  %v8119_v15 = vld [vmem:[#allocation165_spill] sm:$0xff]  ;;  %v8192_v35 = vld [vmem:[#allocation184_spill] sm:$0xff] }
 0x22d   :  { %v1050_v23 = vadd.f32 %v8110_v4, %v954_v30  ;;  %v1632_v25 = vadd.f32 %v1597_v21, %v1536_v39  ;;  %v850_v29 = vmul.f32 %v7826_v62, %v817_v14  ;;  %v8115_v38 = vrot.slane %v8114_v50, 1  ;;  %v8116_v21 = vld [vmem:[#allocation74_spill] sm:$0xff]  ;;  %v8118_v62 = vld [vmem:[#allocation115_spill] sm:$0xff]  ;;  %v8120_v42 = vld [vmem:[#allocation177_spill] sm:$0xff] }
 0x22e   :  { %v1174_v20 = vmul.f32 %v7828_v24, %v817_v14  ;;  %v6614_v30 = vmul.f32 %v7830_v59, %v817_v14  ;;  %v6617_v52 = vadd.f32 %v6506_v44, %v1924_v55  ;;  %v1433_v32 = vadd.f32 %v8117_v7, %v1337_v60 }
 0x22f   :  { %v1146_v57 = vadd.f32 %v8115_v38, %v1050_v23  ;;  %v1729_v39 = vadd.f32 %v8116_v21, %v1632_v25  ;;  %v866_v8 = vadd.f32 %v850_v29, %v766_v49  ;;  %v1153_v0 = vadd.f32 %v8118_v62, %v1057_v47  ;;  %v8122_v25 = vld [vmem:[#allocation9_spill] sm:$0xff]  ;;  %v8124_v29 = vld [vmem:[#allocation46_spill] sm:$0xff]  ;;  %v8133_v62 = vld [vmem:[#allocation156_spill] sm:$0xff] }
 0x230   :  { %v1214_v50 = vrot.slane %v1174_v20, 1  ;;  %v6623_v23 = vmul.f32 %v7836_v27, %v817_v14  ;;  %v1529_v59 = vadd.f32 %v8120_v42, %v1433_v32  ;;  %v8121_v38 = vrot.slane %v8084_v2, 1  ;;  %v8130_v32 = vld [vmem:[#allocation148_spill] sm:$0xff] }
 0x231   :  { %v1242_v4 = vadd.f32 %v1200_v11, %v1146_v57  ;;  %v1825_v24 = vadd.f32 %v8119_v15, %v1729_v39  ;;  %v1598_v55 = vrot.slane %v6614_v30, 2  ;;  %v8123_v21 = vrot.slane %v8122_v25, 2  ;;  %v8138_v25 = vld [vmem:[#allocation61_spill] sm:$0xff] }
 0x232   :  { %v962_v44 = vadd.f32 %v8121_v38, %v866_v8  ;;  %v1585_v11 = vsel %vm327_vm1, %v1582_v22, %v1584_v17  ;;  %v6640_v27 = vsel %vm1675_vm2, %v1967_v16, %v1969_v34  ;;  %v1215_v2 = vsel %vm228_vm0, %v1212_v18, %v1214_v50  ;;  %v8126_v22 = vld [vmem:[#allocation19_spill] sm:$0xff]  ;;  %vm7076_vm0 = vmpackc.low %vm2755_vm15, %vm4125_vm8 }
 0x233   :  { %v1338_v60 = vadd.f32 %v8123_v21, %v1242_v4  ;;  %v6646_v47 = vadd.f32 %v6538_v6, %v1913_v40  ;;  %v1625_v49 = vadd.f32 %v1585_v11, %v1529_v59  ;;  %v8125_v57 = vrot.slane %v8124_v29, 1  ;;  %v8131_v40 = vld [vmem:[#allocation51_spill] sm:$0xff]  ;;  %v8135_v59 = vld [vmem:[#allocation117_spill] sm:$0xff] }
 0x234   :  { %v1249_v20 = vadd.f32 %v1215_v2, %v1153_v0  ;;  %v8127_v30 = vrot.slane %v8126_v22, 2  ;;  %v7501_v28 = vrot.slane %v6623_v23, 3  ;;  %v6654_v16 = vmul.f32 %v7838_v9, %v817_v14  ;;  %v8142_v2 = vld [vmem:[#allocation62_spill] sm:$0xff] }
 0x235   :  { %v1058_v63 = vadd.f32 %v8125_v57, %v962_v44  ;;  %v8129_v7 = vrot.slane %v8128_v61, 4  ;;  %v1722_v6 = vadd.f32 %v8130_v32, %v1625_v49  ;;  %v8132_v8 = vrot.slane %v8131_v40, 1  ;;  %v8136_v44 = vld [vmem:[#allocation37_spill] sm:$0xff]  ;;  %v8149_v32 = vld [vmem:[#allocation91_spill] sm:$0xff] }
 0x236   :  { %v1434_v39 = vadd.f32 %v8127_v30, %v1338_v60  ;;  %v1345_v15 = vadd.f32 %v8133_v62, %v1249_v20  ;;  %v8134_v0 = vrot.slane %v6516_v3, 2  ;;  %v1921_v38 = vadd.f32 %v8135_v59, %v1825_v24  ;;  %v8144_v57 = vld [vmem:[#allocation141_spill] sm:$0xff]  ;;  %v8145_v3 = vld [vmem:[#allocation170_spill] sm:$0xff] }
 0x237   :  { %v2208_v18 = vadd.f32 %v8129_v7, %v6412_v13  ;;  %v1154_v4 = vadd.f32 %v8132_v8, %v1058_v63  ;;  %v8137_v9 = vrot.slane %v8136_v44, 2  ;;  %v8139_v21 = vrot.slane %v8138_v25, 4  ;;  %v8140_v13 = vld [vmem:[#allocation73_spill] sm:$0xff]  ;;  %v8147_v7 = vld [vmem:[#allocation103_spill] sm:$0xff]  ;;  %v8151_v62 = vld [vmem:[#allocation6_spill] sm:$0xff] }
 0x238   :  { %v1599_v42 = vsel %vm327_vm1, %v8134_v0, %v1598_v55  ;;  %v8141_v11 = vrot.slane %v8140_v13, 4  ;;  %v8143_v49 = vrot.slane %v8142_v2, 4  ;;  %v1818_v63 = vadd.f32 %v8144_v57, %v1722_v6  ;;  %v8153_v59 = vld [vmem:[#allocation90_spill] sm:$0xff]  ;;  %v8159_v2 = vld [vmem:[#allocation12_spill] sm:$0xff] }
 0x239   :  { %v1530_v14 = vadd.f32 %v8137_v9, %v1434_v39  ;;  %v2304_v60 = vadd.f32 %v8139_v21, %v2208_v18  ;;  %v1250_v20 = vadd.f32 %v1214_v50, %v1154_v4  ;;  %v1441_v22 = vadd.f32 %v8145_v3, %v1345_v15  ;;  %v8155_v4 = vld [vmem:[#allocation180_spill] sm:$0xff]  ;;  %v8158_v9 = vld [vmem:[#allocation183_spill] sm:$0xff]  ;;  %v6700_v21 = vld [vmem:[%s7279_s6] ss:$0 sm:$0xff] }
 0x23a   :  { %v2063_v29 = vsel %vm2060_vm3, %v8143_v49, %v8141_v11  ;;  %v8146_v39 = vrot.slane %v6259_v19, 4  ;;  %v8148_v18 = vrot.slane %v8147_v7, 4  ;;  %v8150_v40 = vrot.slane %v8149_v32, 4 }
 0x23b   :  { %v2105_v24 = vadd.f32 %v2063_v29, %v6391_v45  ;;  %v1626_v30 = vadd.f32 %v1584_v17, %v1530_v14  ;;  %v8152_v0 = vrot.slane %v8151_v62, 4  ;;  %v8154_v6 = vrot.slane %v8153_v59, 4  ;;  %v8156_v45 = vld [vmem:[#allocation21_spill] sm:$0xff] }
 0x23c   :  { %v2400_v61 = vadd.f32 %v8146_v39, %v2304_v60  ;;  %v2159_v8 = vsel %vm2060_vm3, %v8150_v40, %v8148_v18  ;;  %v6692_v15 = vadd.f32 %v8155_v4, %v1818_v63  ;;  %v8157_v17 = vrot.slane %v8156_v45, 2  ;;  %v8161_v63 = vld [vmem:[#allocation130_spill] sm:$0xff]  ;;  %v8162_v39 = vld [vmem:[#allocation47_spill] sm:$0xff]  ;;  %v8170_v59 = vld [vmem:[#allocation161_spill] sm:$0xff] }
 0x23d   :  { %v2255_v50 = vsel %vm2060_vm3, %v8154_v6, %v8152_v0  ;;  %v1537_v14 = vadd.f32 %v8158_v9, %v1441_v22  ;;  %v2201_v60 = vadd.f32 %v2159_v8, %v2105_v24  ;;  %v2017_v11 = vadd.f32 %v1982_v12, %v1921_v38  ;;  %v6712_v22 = vld [vmem:[%s7280_s7] ss:$0 sm:$0xff]  ;;  %v8164_v24 = vld [vmem:[#allocation72_spill] sm:$0xff] }
 0x23e   :  { %v1346_v44 = vadd.f32 %v8157_v17, %v1250_v20  ;;  %v8160_v49 = vrot.slane %v8159_v2, 3  ;;  %v2423_v57 = vmul.f32 %v6700_v21, %v2400_v61  ;;  %v2110_v3 = vadd.f32 %v8161_v63, %v6287_v53  ;;  %v8166_v38 = vld [vmem:[#allocation16_spill] sm:$0xff]  ;;  %v8168_v61 = vld [vmem:[#allocation23_spill] sm:$0xff]  ;;  %v8178_v63 = vld [vmem:[#allocation57_spill] sm:$0xff] }
 0x23f   :  { %v8163_v7 = vrot.slane %v8162_v39, 2  ;;  %v1633_v18 = vadd.f32 %v1599_v42, %v1537_v14  ;;  %v2297_v32 = vadd.f32 %v2255_v50, %v2201_v60  ;;  %v8165_v12 = vrot.slane %v8164_v24, 4  ;;  %v8171_v42 = vld [vmem:[#allocation201_spill] sm:$0xff]  ;;  %v8173_v45 = vld [vmem:[#allocation88_spill] sm:$0xff]  ;;  %v8177_v60 = vld [vmem:[#allocation123_spill] sm:$0xff] }
 0x240   :  { %v1723_v29 = vadd.f32 %v8160_v49, %v1626_v30  ;;  %v8167_v40 = vrot.slane %v8166_v38, 4  ;;  %v8169_v8 = vrot.slane %v8168_v61, 3  ;;  %v2446_v53 = vadd.f32 %v6712_v22, %v2423_v57  ;;  %v8175_v50 = vld [vmem:[#allocation52_spill] sm:$0xff] }
 0x241   :  { %v1442_v20 = vadd.f32 %v8163_v7, %v1346_v44  ;;  %v2206_v6 = vadd.f32 %v8170_v59, %v2110_v3  ;;  %v8172_v4 = vrot.slane %v8171_v42, 4  ;;  %v8174_v17 = vrot.slane %v8173_v45, 4  ;;  %v8180_v7 = vld [vmem:[#allocation100_spill] sm:$0xff] }
 0x242   :  { %v2351_v30 = vsel %vm2060_vm3, %v8167_v40, %v8165_v12  ;;  %v1819_v0 = vadd.f32 %v8169_v8, %v1723_v29  ;;  %v8176_v9 = vrot.slane %v8175_v50, 2  ;;  %v1730_v2 = vadd.f32 %v8177_v60, %v1633_v18  ;;  %v8182_v12 = vld [vmem:[#allocation41_spill] sm:$0xff]  ;;  %v8184_v8 = vld [vmem:[#allocation151_spill] sm:$0xff] }
 0x243   :  { %v2264_v44 = vsel %vm2060_vm3, %v8174_v17, %v8172_v4  ;;  %v2393_v49 = vadd.f32 %v2351_v30, %v2297_v32  ;;  %v8179_v39 = vrot.slane %v8178_v63, 4  ;;  %v8181_v29 = vrot.slane %v8180_v7, 4  ;;  %v8186_v4 = vld [vmem:[#allocation86_spill] sm:$0xff]  ;;  %v8188_v18 = vld [vmem:[#allocation171_spill] sm:$0xff]  ;;  %v6747_v30 = vld [vmem:[%s7281_s8 + $0x1] ss:$0 sm:$0xff] }
 0x244   :  { %v1538_v14 = vadd.f32 %v8176_v9, %v1442_v20  ;;  %v8183_v3 = vrot.slane %v8182_v12, 3  ;;  %v2462_v40 = vmax.f32 %v2446_v53, 0.0  ;;  %v2302_v61 = vadd.f32 %v2264_v44, %v2206_v6  ;;  %v8189_v44 = vld [vmem:[#allocation22_spill] sm:$0xff] }
 0x245   :  { %v2360_v57 = vsel %vm2060_vm3, %v8181_v29, %v8179_v39  ;;  %v8185_v59 = vrot.slane %v8184_v8, 4  ;;  %v8187_v17 = vrot.slane %v8186_v4, 4  ;;  %v1826_v32 = vadd.f32 %v8188_v18, %v1730_v2 }
 0x246   :  { %v1915_v38 = vadd.f32 %v8183_v3, %v1819_v0  ;;  %v1634_v50 = vadd.f32 %v1598_v55, %v1538_v14  ;;  %v2416_v9 = vmul.f32 %v6700_v21, %v2393_v49  ;;  %v6757_v53 = vsel %vm1675_vm2, %v1981_v51, %v7501_v28  ;;  %v8195_v3 = vld [vmem:[#allocation122_spill] sm:$0xff] }
 0x247   :  { %v2079_v20 = vsel %vm2060_vm3, %v8187_v17, %v8185_v59  ;;  %v2506_v55 = vmul.f32 %v6747_v30, %v2462_v40  ;;  %v2398_v6 = vadd.f32 %v2360_v57, %v2302_v61  ;;  %v8190_v14 = vrot.slane %v8189_v44, 3  ;;  %v8193_v57 = vld [vmem:[#allocation178_spill] sm:$0xff]  ;;  %v8197_v61 = vld [vmem:[#allocation13_spill] sm:$0xff] }
 0x248   :  { %v2114_v60 = vadd.f32 %v2079_v20, %v2017_v11  ;;  %v2011_v0 = vadd.f32 %v1969_v34, %v1915_v38  ;;  %v2439_v39 = vadd.f32 %v6712_v22, %v2416_v9  ;;  %v8191_v11 = vld [vmem:[#allocation166_spill] sm:$0xff]  ;;  %v6765_v34 = vadd.f32 %v8192_v35, %v1826_v32  ;;  %v8199_v20 = vld [vmem:[#allocation48_spill] sm:$0xff] }
 0x249   :  { %v1731_v2 = vadd.f32 %v8190_v14, %v1634_v50  ;;  %v2538_v29 = vsel %vm2525_vm4, %v2506_v55, 0.0  ;;  %v2421_v51 = vmul.f32 %v6700_v21, %v2398_v6  ;;  %v8194_v12 = vrot.slane %v8193_v57, 4  ;;  %v8202_v6 = vld [vmem:[#allocation189_spill] sm:$0xff]  ;;  %v8213_v28 = vld [vmem:[#allocation58_spill] sm:$0xff] }
 0x24a   :  { %v2210_v49 = vadd.f32 %v8191_v11, %v2114_v60  ;;  %v8196_v38 = vrot.slane %v8195_v3, 4  ;;  %v8198_v59 = vrot.slane %v8197_v61, 4  ;;  %v8200_v50 = vrot.slane %v8199_v20, 3  ;;  %2539 = vadd.xlane.f32.xlu1 %v2538_v29  ;;  %v8204_v11 = vld [vmem:[#allocation158_spill] sm:$0xff]  ;;  %v8211_v20 = vld [vmem:[#allocation131_spill] sm:$0xff] }
 0x24b   :  { %v2455_v32 = vmax.f32 %v2439_v39, 0.0  ;;  %v2444_v60 = vadd.f32 %v6712_v22, %v2421_v51  ;;  %v8201_v55 = vrot.slane %v6549_v41, 4  ;;  %v8203_v44 = vrot.slane %v8202_v6, 4  ;;  %v8209_v29 = vld [vmem:[#allocation54_spill] sm:$0xff] }
 0x24c   :  { %v2271_v40 = vsel %vm2060_vm3, %v8196_v38, %v8194_v12  ;;  %v2108_v17 = vadd.f32 %v8198_v59, %v2011_v0  ;;  %v1827_v18 = vadd.f32 %v8200_v50, %v1731_v2  ;;  %v2118_v35 = vadd.f32 %v8204_v11, %v6303_v37  ;;  %v8205_v12 = vld [vmem:[#allocation4_spill] sm:$0xff]  ;;  %v8207_v0 = vld [vmem:[#allocation193_spill] sm:$0xff]  ;;  %v8215_v11 = vld [vmem:[#allocation198_spill] sm:$0xff] }
 0x24d   :  { %v2306_v9 = vadd.f32 %v2271_v40, %v2210_v49  ;;  %v2367_v14 = vsel %vm2060_vm3, %v8203_v44, %v8201_v55  ;;  %v8206_v38 = vrot.slane %v8205_v12, 4  ;;  %v8208_v59 = vrot.slane %v8207_v0, 4  ;;  %v8212_v55 = vld [vmem:[#allocation152_spill] sm:$0xff] }
 0x24e   :  { %v8210_v39 = vrot.slane %v8209_v29, 3  ;;  %v2499_v51 = vmul.f32 %v6771_v56, %v2455_v32  ;;  %v2111_v50 = vadd.f32 %v8211_v20, %v6395_v33  ;;  %v2460_v1 = vmax.f32 %v2444_v60, 0.0  ;;  %v8219_v33 = vld [vmem:[#allocation164_spill] sm:$0xff] }
 0x24f   :  { %v2278_v2 = vsel %vm2060_vm3, %v8208_v59, %v8206_v38  ;;  %v2402_v40 = vadd.f32 %v2367_v14, %v2306_v9  ;;  %v2214_v44 = vadd.f32 %v8212_v55, %v2118_v35  ;;  %v8214_v37 = vrot.slane %v8213_v28, 4  ;;  %v8224_v55 = vld [vmem:[#allocation159_spill] sm:$0xff] }
 0x250   :  { %v1923_v49 = vadd.f32 %v8210_v39, %v1827_v18  ;;  %v8216_v41 = vrot.slane %v8215_v11, 4  ;;  %v8217_v38 = vrot.slane %v8138_v25, 4  ;;  %v8218_v59 = vrot.slane %v8171_v42, 4  ;;  %v8222_v39 = vld [vmem:[#allocation24_spill] sm:$0xff] }
 0x251   :  { %v2516_v32 = vsel %vm2515_vm5, %v2499_v51, 0.0  ;;  %v2425_v9 = vmul.f32 %v6700_v21, %v2402_v40  ;;  %v2207_v60 = vadd.f32 %v8219_v33, %v2111_v50  ;;  %v8220_v14 = vrot.slane %v6259_v19, 4 }
 0x252   :  { %v2374_v57 = vsel %vm2060_vm3, %v8216_v41, %v8214_v37  ;;  %v2266_v18 = vsel %vm2060_vm3, %v8218_v59, %v8217_v38  ;;  %v8221_v35 = vrot.slane %v8178_v63, 4  ;;  %2517 = vadd.xlane.f32.xlu1 %v2516_v32  ;;  %v2504_v41 = vmul.f32 %v6747_v30, %v2460_v1  ;;  %v8226_v63 = vld [vmem:[#allocation66_spill] sm:$0xff] }
 0x253   :  { %v2310_v25 = vadd.f32 %v2278_v2, %v2214_v44  ;;  %v8223_v42 = vrot.slane %v8222_v39, 4  ;;  %v2119_v51 = vadd.f32 %v8224_v55, %v6454_v54  ;;  %v8225_v40 = vrot.slane %v6623_v23, 3  ;;  %v8231_v54 = vld [vmem:[#allocation155_spill] sm:$0xff] }
 0x254   :  { %v2362_v29 = vsel %vm2060_vm3, %v8221_v35, %v8220_v14  ;;  %v2448_v19 = vadd.f32 %v6712_v22, %v2425_v9  ;;  %v2303_v50 = vadd.f32 %v2266_v18, %v2207_v60  ;;  %v8227_v38 = vrot.slane %v8226_v63, 4  ;;  %v8234_v60 = vld [vmem:[#allocation140_spill] sm:$0xff] }
 0x255   :  { %v2204_v20 = vadd.f32 %v8223_v42, %v2108_v17  ;;  %v6827_v37 = vadd.f32 %v8225_v40, %v1923_v49  ;;  %v8228_v59 = vrot.slane %v8205_v12, 4  ;;  %v2532_v2 = vsel %vm2515_vm5, %v2504_v41, 0.0  ;;  %v8229_v17 = vld [vmem:[#allocation45_spill] sm:$0xff] }
 0x256   :  { %v2406_v44 = vadd.f32 %v2374_v57, %v2310_v25  ;;  %v8230_v32 = vrot.slane %v8229_v17, 4  ;;  %v2215_v14 = vadd.f32 %v8231_v54, %v2119_v51  ;;  %v2464_v23 = vmax.f32 %v2448_v19, 0.0  ;;  %2533 = vadd.xlane.f32.xlu1 %v2532_v2  ;;  %v6852_v57 = vld [vmem:[%s7281_s8 + $0x2] ss:$0 sm:$0xff]  ;;  %v8238_v51 = vld [vmem:[#allocation168_spill] sm:$0xff] }
 0x257   :  { %v2280_v1 = vsel %vm2060_vm3, %v8228_v59, %v8227_v38  ;;  %v2399_v49 = vadd.f32 %v2362_v29, %v2303_v50  ;;  %v8232_v35 = vrot.slane %v6354_v10, 4  ;;  %v8233_v18 = vrot.slane %v8213_v28, 4 }
 0x258   :  { %v2300_v33 = vadd.f32 %v8230_v32, %v2204_v20  ;;  %v8235_v12 = vrot.slane %v8234_v60, 4  ;;  %v8236_v39 = vrot.slane %v8140_v13, 4  ;;  %v2429_v29 = vmul.f32 %v6700_v21, %v2406_v44  ;;  %v8243_v32 = vld [vmem:[#allocation142_spill] sm:$0xff] }
 0x259   :  { %v2376_v9 = vsel %vm2060_vm3, %v8233_v18, %v8232_v35  ;;  %v8237_v25 = vrot.slane %v6591_v48, 4  ;;  %v2311_v28 = vadd.f32 %v2280_v1, %v2215_v14  ;;  %v2508_v55 = vmul.f32 %v6852_v57, %v2464_v23  ;;  %v8246_v35 = vld [vmem:[#allocation79_spill] sm:$0xff] }
 0x25a   :  { %v2065_v41 = vsel %vm2060_vm3, %v8236_v39, %v8235_v12  ;;  %v2422_v13 = vmul.f32 %v6700_v21, %v2399_v49  ;;  %v8239_v40 = vrot.slane %v8238_v51, 4  ;;  %v8240_v19 = vrot.slane %v8151_v62, 4  ;;  %v6877_v62 = vld [vmem:[%s7281_s8 + $0x3] ss:$0 sm:$0xff]  ;;  %v8248_v12 = vld [vmem:[#allocation70_spill] sm:$0xff]  ;;  %s4129_s8 = smov 47  }
 0x25b   :  { %v2396_v42 = vadd.f32 %v8237_v25, %v2300_v33  ;;  %v2106_v20 = vadd.f32 %v2065_v41, %v6646_v47  ;;  %v8241_v38 = vrot.slane %v6482_v5, 4  ;;  %v8242_v59 = vrot.slane %v8164_v24, 4  ;;  %v8244_v24 = vld [vmem:[#allocation34_spill] sm:$0xff] }
 0x25c   :  { %v2257_v50 = vsel %vm2060_vm3, %v8240_v19, %v8239_v40  ;;  %v2452_v1 = vadd.f32 %v6712_v22, %v2429_v29  ;;  %v2407_v44 = vadd.f32 %v2376_v9, %v2311_v28  ;;  %v2544_v54 = vsel %vm2515_vm5, %v2508_v55, 0.0  ;;  %v8253_v19 = vld [vmem:[#allocation112_spill] sm:$0xff] }
 0x25d   :  { %v2353_v2 = vsel %vm2060_vm3, %v8242_v59, %v8241_v38  ;;  %v2419_v47 = vmul.f32 %v6700_v21, %v2396_v42  ;;  %v2202_v33 = vadd.f32 %v8243_v32, %v2106_v20  ;;  %v2445_v14 = vadd.f32 %v6712_v22, %v2422_v13  ;;  %2545 = vadd.xlane.f32.xlu1 %v2544_v54 }
 0x25e   :  { %v8245_v23 = vrot.slane %v8244_v24, 4  ;;  %v8247_v18 = vrot.slane %v8246_v35, 4  ;;  %v8249_v39 = vrot.slane %v8248_v12, 4  ;;  %v2468_v41 = vmax.f32 %v2452_v1, 0.0 }
 0x25f   :  { %v2442_v29 = vadd.f32 %v6712_v22, %v2419_v47  ;;  %v2430_v25 = vmul.f32 %v6700_v21, %v2407_v44  ;;  %v2298_v42 = vadd.f32 %v2257_v50, %v2202_v33  ;;  %v2461_v28 = vmax.f32 %v2445_v14, 0.0  ;;  %v8257_v14 = vld [vmem:[#allocation7_spill] sm:$0xff] }
 0x260   :  { %v2216_v49 = vadd.f32 %v8245_v23, %v6520_v43  ;;  %v2070_v9 = vsel %vm2060_vm3, %v8249_v39, %v8247_v18  ;;  %v8250_v20 = vrot.slane %v8226_v63, 4  ;;  %v8251_v43 = vld [vmem:[#allocation102_spill] sm:$0xff]  ;;  %v8254_v38 = vrot.slane %v8253_v19, 4 }
 0x261   :  { %v2109_v13 = vadd.f32 %v2070_v9, %v6435_v26  ;;  %v8252_v40 = vrot.slane %v8251_v43, 4  ;;  %v2512_v32 = vmul.f32 %v6877_v62, %v2468_v41  ;;  %v2458_v1 = vmax.f32 %v2442_v29, 0.0  ;;  %v8264_v43 = vld [vmem:[#allocation25_spill] sm:$0xff] }
 0x262   :  { %v2312_v55 = vadd.f32 %v8250_v20, %v2216_v49  ;;  %v2453_v47 = vadd.f32 %v6712_v22, %v2430_v25  ;;  %v2394_v54 = vadd.f32 %v2353_v2, %v2298_v42  ;;  %v2505_v50 = vmul.f32 %v6747_v30, %v2461_v28  ;;  %v8262_v20 = vld [vmem:[#allocation75_spill] sm:$0xff] }
 0x263   :  { %v2166_v59 = vsel %vm2060_vm3, %v8254_v38, %v8252_v40  ;;  %v8255_v44 = vrot.slane %v6354_v10, 4  ;;  %v8256_v26 = vrot.slane %v8173_v45, 4  ;;  %v8258_v24 = vrot.slane %v8257_v14, 4 }
 0x264   :  { %v2205_v33 = vadd.f32 %v2166_v59, %v2109_v13  ;;  %v2556_v49 = vsel %vm2515_vm5, %v2512_v32, 0.0  ;;  %v2502_v35 = vmul.f32 %v6771_v56, %v2458_v1  ;;  %v2469_v18 = vmax.f32 %v2453_v47, 0.0  ;;  %v8266_v59 = vld [vmem:[#allocation109_spill] sm:$0xff]  ;;  %v8268_v1 = vld [vmem:[#allocation120_spill] sm:$0xff] }
 0x265   :  { %v2408_v63 = vadd.f32 %v8255_v44, %v2312_v55  ;;  %v2262_v23 = vsel %vm2060_vm3, %v8258_v24, %v8256_v26  ;;  %v2417_v12 = vmul.f32 %v6700_v21, %v2394_v54  ;;  %v2010_v2 = vadd.f32 %v6640_v27, %v6692_v15  ;;  %2557 = vadd.xlane.f32.xlu1 %v2556_v49 }
 0x266   :  { %v2301_v39 = vadd.f32 %v2262_v23, %v2205_v33  ;;  %v8259_v45 = vrot.slane %v8180_v7, 4  ;;  %v8260_v9 = vrot.slane %v6320_v31, 4  ;;  %v2526_v29 = vsel %vm2525_vm4, %v2502_v35, 0.0  ;;  %v8272_v33 = vld [vmem:[#allocation82_spill] sm:$0xff]  ;;  %v8275_v23 = vld [vmem:[#allocation157_spill] sm:$0xff] }
 0x267   :  { %v2431_v10 = vmul.f32 %v6700_v21, %v2408_v63  ;;  %v2513_v25 = vmul.f32 %v6877_v62, %v2469_v18  ;;  %v2440_v42 = vadd.f32 %v6712_v22, %v2417_v12  ;;  %v8261_v28 = vrot.slane %v8186_v4, 4  ;;  %2527 = vadd.xlane.f32.xlu0 %v2526_v29  ;;  %v8270_v63 = vld [vmem:[#allocation95_spill] sm:$0xff] }
 0x268   :  { %v2358_v41 = vsel %vm2060_vm3, %v8260_v9, %v8259_v45  ;;  %v8263_v27 = vrot.slane %v8262_v20, 4  ;;  %v2018_v55 = vadd.f32 %v6757_v53, %v6765_v34  ;;  %v8265_v40 = vrot.slane %v8264_v43, 4 }
 0x269   :  { %v2454_v31 = vadd.f32 %v6712_v22, %v2431_v10  ;;  %v2397_v7 = vadd.f32 %v2358_v41, %v2301_v39  ;;  %v2535_v38 = vsel %vm2515_vm5, %v2505_v50, 0.0  ;;  %v2456_v4 = vmax.f32 %v2440_v42, 0.0  ;;  %v8279_v41 = vld [vmem:[#allocation118_spill] sm:$0xff] }
 0x26a   :  { %v2077_v15 = vsel %vm2060_vm3, %v8263_v27, %v8261_v28  ;;  %v2116_v19 = vadd.f32 %v8265_v40, %v6827_v37  ;;  %v8267_v32 = vrot.slane %v8266_v59, 4  ;;  %v8269_v47 = vrot.slane %v8268_v1, 4  ;;  %2536 = vadd.xlane.f32.xlu1 %v2535_v38 }
 0x26b   :  { %v2113_v13 = vadd.f32 %v2077_v15, %v6551_v36  ;;  %v2470_v53 = vmax.f32 %v2454_v31, 0.0  ;;  %v2420_v34 = vmul.f32 %v6700_v21, %v2397_v7  ;;  %v8271_v36 = vrot.slane %v8270_v63, 4 }
 0x26c   :  { %v2173_v54 = vsel %vm2060_vm3, %v8269_v47, %v8267_v32  ;;  %v8273_v26 = vrot.slane %v8272_v33, 4  ;;  %v2559_v50 = vsel %vm2515_vm5, %v2513_v25, 0.0  ;;  %v2500_v14 = vmul.f32 %v6771_v56, %v2456_v4  ;;  %v8281_v25 = vld [vmem:[#allocation128_spill] sm:$0xff]  ;;  %v8295_v33 = vld [vmem:[#allocation49_spill] sm:$0xff] }
 0x26d   :  { %v2209_v44 = vadd.f32 %v2173_v54, %v2113_v13  ;;  %v8274_v24 = vrot.slane %v8195_v3, 4  ;;  %v8276_v49 = vrot.slane %v8275_v23, 4  ;;  %v2443_v12 = vadd.f32 %v6712_v22, %v2420_v34  ;;  %v8286_v13 = vld [vmem:[#allocation99_spill] sm:$0xff] }
 0x26e   :  { %v2084_v37 = vsel %vm2060_vm3, %v8273_v26, %v8271_v36  ;;  %v8277_v39 = vrot.slane %v8202_v6, 4  ;;  %v8278_v45 = vrot.slane %v6422_v46, 4  ;;  %v8280_v29 = vrot.slane %v8279_v41, 4  ;;  %2560 = vadd.xlane.f32.xlu1 %v2559_v50 }
 0x26f   :  { %v2269_v35 = vsel %vm2060_vm3, %v8276_v49, %v8274_v24  ;;  %v2117_v18 = vadd.f32 %v2084_v37, %v6617_v52  ;;  %v8282_v42 = vrot.slane %v8281_v25, 4  ;;  %v2519_v28 = vsel %vm2515_vm5, %v2500_v14, 0.0  ;;  %v8297_v14 = vld [vmem:[#allocation172_spill] sm:$0xff]  ;;  %v8300_v49 = vld [vmem:[#allocation55_spill] sm:$0xff] }
 0x270   :  { %v2305_v10 = vadd.f32 %v2269_v35, %v2209_v44  ;;  %v2365_v9 = vsel %vm2060_vm3, %v8278_v45, %v8277_v39  ;;  %v2514_v20 = vmul.f32 %v6877_v62, %v2470_v53  ;;  %v8283_v27 = vrot.slane %v8197_v61, 4  ;;  %2520 = vadd.xlane.f32.xlu0 %v2519_v28  ;;  %v8305_v25 = vld [vmem:[#allocation147_spill] sm:$0xff] }
 0x271   :  { %v2180_v3 = vsel %vm2060_vm3, %v8282_v42, %v8280_v29  ;;  %v8284_v15 = vrot.slane %v8234_v60, 4  ;;  %v2459_v46 = vmax.f32 %v2443_v12, 0.0  ;;  %v8285_v7 = vrot.slane %v8207_v0, 4 }
 0x272   :  { %v2213_v52 = vadd.f32 %v2180_v3, %v2117_v18  ;;  %v2401_v31 = vadd.f32 %v2365_v9, %v2305_v10  ;;  %v8287_v40 = vrot.slane %v8286_v13, 4  ;;  %v2368_v59 = vrot.slane %v6654_v16, 4 }
 0x273   :  { %v2067_v6 = vsel %vm2060_vm3, %v8284_v15, %v8283_v27  ;;  %v8288_v61 = vrot.slane %v8215_v11, 4  ;;  %v8289_v60 = vrot.slane %v6450_v58, 4  ;;  %v8290_v47 = vrot.slane %v8264_v43, 4 }
 0x274   :  { %v2276_v38 = vsel %vm2060_vm3, %v8287_v40, %v8285_v7  ;;  %v2107_v4 = vadd.f32 %v2067_v6, %v2010_v2  ;;  %v8291_v54 = vrot.slane %v8184_v8, 4  ;;  %v2503_v53 = vmul.f32 %v6747_v30, %v2459_v46  ;;  %v8292_v2 = vld [vmem:[#allocation143_spill] sm:$0xff] }
 0x275   :  { %v2309_v32 = vadd.f32 %v2276_v38, %v2213_v52  ;;  %v2372_v1 = vsel %vm2060_vm3, %v8289_v60, %v8288_v61  ;;  %v2424_v34 = vmul.f32 %v6700_v21, %v2401_v31  ;;  %v2562_v63 = vsel %vm2525_vm4, %v2514_v20, 0.0 }
 0x276   :  { %v2081_v0 = vsel %vm2060_vm3, %v8291_v54, %v8290_v47  ;;  %v2203_v44 = vadd.f32 %v8292_v2, %v2107_v4  ;;  %v8293_v58 = vrot.slane %v8229_v17, 4  ;;  %v8294_v36 = vrot.slane %v8238_v51, 4  ;;  %2563 = vadd.xlane.f32.xlu1 %v2562_v63  ;;  %v2747_v2 = vld [vmem:[%s7283_s12] sm:$0xff] }
 0x277   :  { %v2115_v16 = vadd.f32 %v2081_v0, %v2018_v55  ;;  %v2405_v11 = vadd.f32 %v2372_v1, %v2309_v32  ;;  %v8296_v8 = vrot.slane %v8295_v33, 4  ;;  %v2529_v30 = vsel %vm2515_vm5, %v2503_v53, 0.0  ;;  %v2576_v0 = vld [vmem:[%s7282_s9 + $0x18] sm:$0x3] }
 0x278   :  { %v2259_v43 = vsel %vm2060_vm3, %v8294_v36, %v8293_v58  ;;  %v2447_v37 = vadd.f32 %v6712_v22, %v2424_v34  ;;  %2530 = vadd.xlane.f32.xlu0 %v2529_v30  ;;  %v8298_v17 = vrot.slane %v6591_v48, 4  ;;  %v8299_v51 = vrot.slane %v6482_v5, 4 }
 0x279   :  { %v2212_v26 = vadd.f32 %v8296_v8, %v2116_v19  ;;  %v2299_v50 = vadd.f32 %v2259_v43, %v2203_v44  ;;  %v2211_v55 = vadd.f32 %v8297_v14, %v2115_v16  ;;  %v2428_v24 = vmul.f32 %v6700_v21, %v2405_v11  ;;  %v8302_v19 = vld [vmem:[#allocation178_spill] sm:$0xff] }
 0x27a   :  { %v2355_v23 = vsel %vm2060_vm3, %v8299_v51, %v8298_v17  ;;  %v8301_v35 = vrot.slane %v8300_v49, 4  ;;  %v8303_v18 = vrot.slane %v8302_v19, 4  ;;  %v2463_v45 = vmax.f32 %v2447_v37, 0.0  ;;  %v2748_v44 = vld [vmem:[%s7283_s12 + $0x8] sm:$0xff] }
 0x27b   :  { %v2395_v9 = vadd.f32 %v2355_v23, %v2299_v50  ;;  %v2451_v29 = vadd.f32 %v6712_v22, %v2428_v24  ;;  %v8306_v48 = vrot.slane %v8305_v25, 4  ;;  %v4122_v47 = vmov 0.0|0.0  }
 0x27c   :  { %v2273_v12 = vsel %vm2060_vm3, %v8303_v18, %v8301_v35  ;;  %v8304_v10 = vmov %v8301_v35  ;;  %v2507_v3 = vmul.f32 %v6852_v57, %v2463_v45  ;;  %3945 = vmatprep.subr.bf16.mxu0 %v4122_v47  ;;  %3952 = vmatprep.subr.bf16.mxu1 %v4122_v47  ;;  %v4124_v34 = vmov 0.0   ;;  %v8308_v35 = vld [vmem:[#allocation3_spill] sm:$0xff] }
 0x27d   :  { %v2308_v39 = vadd.f32 %v8304_v10, %v2212_v26  ;;  %v2307_v41 = vadd.f32 %v2273_v12, %v2211_v55  ;;  %v2369_v5 = vsel %vm2060_vm3, %v8306_v48, %v2368_v59  ;;  %v2418_v28 = vmul.f32 %v6700_v21, %v2395_v9  ;;  %3843 = vmatprep.mubr.msk.f32.mxu0 %vm4123_vm7, %v4124_v34 }
 0x27e   :  { %v2467_v52 = vmax.f32 %v2451_v29, 0.0  ;;  %v2541_v27 = vsel %vm2515_vm5, %v2507_v3, 0.0  ;;  %3854 = vmatprep.mubr.msk.f32.mxu1 %vm4123_vm7, %v4124_v34  ;;  %v7061_v16 = vpack.c.bf16 %v2748_v44, %v2747_v2  ;;  %v8307_v50 = vlaneseq }
 0x27f   :  { %v2404_v42 = vadd.f32 %v2368_v59, %v2308_v39  ;;  %v2403_v20 = vadd.f32 %v2369_v5, %v2307_v41  ;;  %v2441_v15 = vadd.f32 %v6712_v22, %v2418_v28  ;;  %2542 = vadd.xlane.f32.xlu0 %v2541_v27  ;;  %vm2751_vm1 = vcmask 220160  }
 0x280   :  { %v2511_v31 = vmul.f32 %v6877_v62, %v2467_v52  ;;  %3954 = vmatpush3.bf16.msra.mxu1 %v7061_v16  ;;  %v2593_v14 = vand.u32 127, %v8307_v50  ;;  %vm2861_vm2 = vcmask 214016   ;;  %vm2970_vm3 = vcmask 216066  }
 0x281   :  { %v2426_v6 = vmul.f32 %v6700_v21, %v2403_v20  ;;  %v2427_v46 = vmul.f32 %v6700_v21, %v2404_v42  ;;  %v2457_v7 = vmax.f32 %v2441_v15, 0.0  ;;  %3955 = vmatprep.subr.bf16.mxu1 %v4122_v47 }
 0x282   :  { %v2553_v40 = vsel %vm2515_vm5, %v2511_v31, 0.0  ;;  %v2598_v24 = vadd.s32 4294967288, %v2593_v14  ;;  %v2605_v23 = vadd.s32 4294967280, %v2593_v14  ;;  %v2596_v12 = vsub.s32 %v2593_v14, %v8308_v35 }
 0x283   :  { %v2449_v13 = vadd.f32 %v6712_v22, %v2426_v6  ;;  %v2501_v38 = vmul.f32 %v6771_v56, %v2457_v7  ;;  %v2450_v59 = vadd.f32 %v6712_v22, %v2427_v46  ;;  %2554 = vadd.xlane.f32.xlu0 %v2553_v40  ;;  %v2573_v22 = vld [vmem:[%s7282_s9] sm:$0xff]  ;;  %v2574_v56 = vld [vmem:[%s7282_s9 + $0x8] sm:$0xff]  ;;  %v2612_v10 = vadd.s32 4294967272, %v2593_v14 }
 0x284   :  { %v3946_v54 = vpack.c.bf16 %v2574_v56, %v2573_v22  ;;  %v2601_v19 = vsub.s32 %v2598_v24, %v8308_v35  ;;  %v2608_v9 = vsub.s32 %v2605_v23, %v8308_v35  ;;  %v2717_v22 = vld [vmem:[%s7284_s1] sm:$0xff] }
 0x285   :  { %v2465_v4 = vmax.f32 %v2449_v13, 0.0  ;;  %v2522_v32 = vsel %vm2515_vm5, %v2501_v38, 0.0  ;;  %v2466_v60 = vmax.f32 %v2450_v59, 0.0  ;;  %v2615_v3 = vsub.s32 %v2612_v10, %v8308_v35  ;;  %v3751_v56 = vld [vmem:[%s7285_s10] ss:$0 sm:$0xff] }
 0x286   :  { %3947 = vmatpush3.bf16.msra.mxu0 %v3946_v54 }
 0x287   :  { %v2509_v61 = vmul.f32 %v6852_v57, %v2465_v4  ;;  %2523 = vadd.xlane.f32.xlu0 %v2522_v32  ;;  %v2510_v62 = vmul.f32 %v6852_v57, %v2466_v60  ;;  %v2575_v57 = vld [vmem:[%s7282_s9 + $0x10] sm:$0xff]  ;;  %3948 = vmatprep.subr.bf16.mxu0 %v4122_v47  ;;  %v3780_v60 = vld [vmem:[%s7289_s15] ss:$0 sm:$0xff] }
 0x288   :  { %v3949_v53 = vpack.c.bf16 %v2576_v0, %v2575_v57 }
 0x289   :  { %v2547_v21 = vsel %vm2515_vm5, %v2509_v61, 0.0  ;;  %v2550_v1 = vsel %vm2525_vm4, %v2510_v62, 0.0  ;;  %v2750_v62 = vld [vmem:[%s7283_s12 + $0x18] sm:$0x7]  ;;  %vm3194_vm4 = vcmask 220166   ;;  %vm3082_vm5 = vcmask 218116  }
 0x28a   :  { %3951 = vmatpush3.bf16.msk.msra.mxu0 %vm3950_vm9, %v3949_v53  ;;  %v7114_v53 = vld [vmem:[%s7286_s11] ss:$0 sm:$0xff]  ;;  %s4127_s11 = smov 27  }
 0x28b   :  { %2548 = vadd.xlane.f32.xlu0 %v2547_v21  ;;  %3959 = vmatprep.subr.bf16.mxu0 %v4122_v47  ;;  %v2749_v21 = vld [vmem:[%s7283_s12 + $0x10] sm:$0xff] }
 0x28f   :  { %2551 = vadd.xlane.f32.xlu0 %v2550_v1  ;;  %v7086_v1 = vpack.c.bf16 %v2750_v62, %v2749_v21 }
 0x291   :  { %3958 = vmatpush3.bf16.msk.msra.mxu1 %vm7076_vm0, %v7086_v1 }
 0x292   :  { %3966 = vmatprep.subr.bf16.mxu1 %v4122_v47 }
 0x2a5   :  { %2722 = vperm.xlu0 %4048, %v2717_v22  }
 0x2d7   :  { %v2540_v63 = vpop.xlane.xlu1 %2539 }
 0x2df   :  { %v2518_v11 = vpop.xlane.xlu1 %2517 }
 0x2e3   :  { %v2534_v36 = vpop.xlane.xlu1 %2533 }
 0x2ea   :  { %v2546_v43 = vpop.xlane.xlu1 %2545 }
 0x2f2   :  { %v2558_v8 = vpop.xlane.xlu1 %2557 }
 0x2f3   :  { %v2570_v18 = vadd.f32 %v2558_v8, %v2534_v36 }
 0x2f4   :  { %v2528_v58 = vpop.xlane.xlu0 %2527 }
 0x2f5   :  { %v2626_v48 = vrot.slane %v2570_v18, %v2601_v19 }
 0x2f7   :  { %v2537_v30 = vpop.xlane.xlu1 %2536 }
 0x2fb   :  { %v2561_v17 = vpop.xlane.xlu1 %2560 }
 0x2fc   :  { %v2571_v41 = vadd.f32 %v2561_v17, %v2537_v30 }
 0x2fd   :  { %v2521_v33 = vpop.xlane.xlu0 %2520 }
 0x2fe   :  { %v2566_v5 = vadd.f32 %v2546_v43, %v2521_v33  ;;  %v2631_v27 = vrot.slane %v2571_v41, %v2608_v9 }
 0x300   :  { %v2602_v46 = vrot.slane %v2566_v5, %v2601_v19 }
 0x303   :  { %v2564_v29 = vpop.xlane.xlu1 %2563 }
 0x304   :  { %v2572_v28 = vadd.f32 %v2564_v29, %v2540_v63  ;;  %v7120_v63 = vld [vmem:[%s7287_s13] ss:$0 sm:$0xff]  ;;  %s4128_s13 = smov 54  }
 0x305   :  { %v2531_v26 = vpop.xlane.xlu0 %2530 }
 0x306   :  { %v2636_v13 = vrot.slane %v2572_v28, %v2615_v3 }
 0x30c   :  { %v2543_v37 = vpop.xlane.xlu0 %2542 }
 0x30d   :  { %v2565_v39 = vadd.f32 %v2543_v37, %v2518_v11 }
 0x30f   :  { %v2597_v20 = vrot.slane %v2565_v39, %v2596_v12 }
 0x310   :  { %v2555_v55 = vpop.xlane.xlu0 %2554 }
 0x311   :  { %v2569_v51 = vadd.f32 %v2555_v55, %v2531_v26  ;;  %v2604_v40 = vsel %vm2603_vm10, %v2602_v46, %v2597_v20 }
 0x313   :  { %v2622_v45 = vrot.slane %v2569_v51, %v2596_v12 }
 0x314   :  { %v2524_v49 = vpop.xlane.xlu0 %2523 }
 0x315   :  { %v2627_v52 = vsel %vm2603_vm10, %v2626_v48, %v2622_v45 }
 0x316   :  { %v2632_v7 = vsel %vm2610_vm11, %v2631_v27, %v2627_v52 }
 0x317   :  { %v2637_v32 = vsel %vm2617_vm12, %v2636_v13, %v2632_v7 }
 0x318   :  { %v2549_v25 = vpop.xlane.xlu0 %2548 }
 0x319   :  { %v2567_v42 = vadd.f32 %v2549_v25, %v2524_v49 }
 0x31b   :  { %v2609_v15 = vrot.slane %v2567_v42, %v2608_v9 }
 0x31c   :  { %v2552_v6 = vpop.xlane.xlu0 %2551 }
 0x31d   :  { %v2568_v31 = vadd.f32 %v2552_v6, %v2528_v58  ;;  %v2611_v4 = vsel %vm2610_vm11, %v2609_v15, %v2604_v40 }
 0x31f   :  { %v2616_v38 = vrot.slane %v2568_v31, %v2615_v3 }
 0x321   :  { %v2618_v59 = vsel %vm2617_vm12, %v2616_v38, %v2611_v4 }
 0x322   :  { %v2639_v61 = vsel %vm2638_vm13, %v2637_v32, %v2618_v59 }
 0x323   :  { %3844 = vmatmul.mubr.msk.f32.vlgmr.msra.gmra.mrb[0].mxu0 %vm2640_vm14, %v2639_v61 }
 0x324   :  { %3961 = vmatpush3.bf16.msra.mxu0 %v7061_v16  ;;  %3865 = vmatprep.mubr.msk.f32.mxu0 %vm4123_vm7, %v4124_v34  ;;  %v2723_v2 = vpop.permute.xlu0 %2722 }
 0x325   :  { %3962 = vmatprep.subr.bf16.mxu0 %v4122_v47  ;;  %v2736_v44 = vmul.f32 %v7114_v53, %v2723_v2 }
 0x327   :  { %v7123_v11 = vadd.f32 %v7120_v63, %v2736_v44 }
 0x328   :  { %3965 = vmatpush3.bf16.msk.msra.mxu0 %vm7076_vm0, %v7086_v1 }
 0x329   :  { %3973 = vmatprep.subr.bf16.mxu0 %v4122_v47 }
 0x3f6   :  { %v2713_v54 = vpop.f32.mrb[0].mxu0 }
 0x3f7   :  { %v2714_v57 = vadd.f32 %v3751_v56, %v2713_v54  ;;  %v3845_v0 = vpop.f32.mrb[1].mxu0 }
 0x3f9   :  { %3855 = vmatmul.mubr.msk.f32.vlgmr.msra.gmra.mrb[0].mxu1 %vm2751_vm1, %v2714_v57 }
 0x3fa   :  { %3968 = vmatpush3.bf16.msra.mxu1 %v7061_v16  ;;  %3876 = vmatprep.mubr.msk.f32.mxu1 %vm4123_vm7, %v4124_v34 }
 0x3fb   :  { %3969 = vmatprep.subr.bf16.mxu1 %v4122_v47 }
 0x3fe   :  { %3972 = vmatpush3.bf16.msk.msra.mxu1 %vm7076_vm0, %v7086_v1 }
 0x3ff   :  { %3980 = vmatprep.subr.bf16.mxu1 %v4122_v47 }
 0x4cc   :  { %v2825_v58 = vpop.f32.mrb[0].mxu1 }
 0x4cd   :  { %v2829_v36 = vadd.f32 %v2825_v58, %v7123_v11  ;;  %v3856_v43 = vpop.f32.mrb[1].mxu1 }
 0x4cf   :  { %4050 = vtanh.f32 %v2829_v36  ;;  %v3758_v8 = vmul.f32 -1.442695, %v2829_v36 }
 0x4d1   :  { %4052 = vpow2.f32 %v3758_v8 }
 0x4d9   :  { %v4051_v33 = vpop.eup %4050 }
 0x4da   :  { %2842 = vrot.lane.b32.xlu1 %v4051_v33, %s4126_s4 }
 0x4db   :  { %v4053_v26 = vpop.eup %4052 }
 0x4dc   :  { %v2833_v30 = vadd.f32 1.0, %v4053_v26 }
 0x4de   :  { %2837 = vrot.lane.b32.xlu1 %v2714_v57, %s4127_s11  ;;  %4054 = vrcp.f32 %v2833_v30 }
 0x4e8   :  { %v4055_v37 = vpop.eup %4054 }
 0x54c   :  { %v2843_v50 = vpop.permute.xlu1 %2842 }
 0x54d   :  { %v2845_v14 = vmul.f32 %v4055_v37, %v2843_v50 }
 0x54f   :  { %2847 = vrot.lane.b32.xlu1 %v2845_v14, %s4127_s11 }
 0x550   :  { %v2838_v55 = vpop.permute.xlu1 %2837 }
 0x551   :  { %v2840_v24 = vmul.f32 %v4055_v37, %v2838_v55 }
 0x5c1   :  { %v2848_v17 = vpop.permute.xlu1 %2847 }
 0x5c2   :  { %v2850_v51 = vadd.f32 %v2848_v17, %v2840_v24 }
 0x5c4   :  { %4056 = vtanh.f32 %v2850_v51  ;;  %v2947_v42 = vrot.slane %v2850_v51, 6 }
 0x5ce   :  { %v4057_v23 = vpop.eup %4056 }
 0x5cf   :  { %2853 = vrot.lane.b32.xlu1 %v4057_v23, %s4128_s13 }
 0x641   :  { %v2854_v49 = vpop.permute.xlu1 %2853 }
 0x642   :  { %v2856_v35 = vmul.f32 %v4055_v37, %v2854_v49 }
 0x644   :  { %2858 = vrot.lane.b32.xlu1 %v2856_v35, %s4129_s8 }
 0x6b6   :  { %v2859_v19 = vpop.permute.xlu1 %2858 }
 0x6b7   :  { %2862 = vst.msk [vmem:[#allocation2] sm:$0x3] %vm2861_vm2, %v2859_v19  ;;  %3866 = vmatmul.mubr.msk.f32.vlgmr.msra.gmra.mrb[2].mxu0 %vm2751_vm1, %v2859_v19  ;;  %v2718_v19 = vld [vmem:[%s7284_s1 + $0x8] sm:$0xff] }
 0x6b8   :  { %3975 = vmatpush3.bf16.msra.mxu0 %v7061_v16  ;;  %3887 = vmatprep.mubr.msk.f32.mxu0 %vm4123_vm7, %v4124_v34 }
 0x6b9   :  { %3976 = vmatprep.subr.bf16.mxu0 %v4122_v47 }
 0x6bc   :  { %3979 = vmatpush3.bf16.msk.msra.mxu0 %vm7076_vm0, %v7086_v1 }
 0x6bd   :  { %3987 = vmatprep.subr.bf16.mxu0 %v4122_v47 }
 0x78a   :  { %v2931_v18 = vpop.f32.mrb[2].mxu0 }
 0x78b   :  { %v2936_v12 = vrot.slane %v2931_v18, 6  ;;  %v3867_v10 = vpop.f32.mrb[3].mxu0 }
 0x78d   :  { %v2938_v39 = vadd.f32 %v2936_v12, %v7123_v11 }
 0x78f   :  { %4058 = vtanh.f32 %v2938_v39  ;;  %v3761_v9 = vmul.f32 -1.442695, %v2938_v39 }
 0x791   :  { %4060 = vpow2.f32 %v3761_v9 }
 0x799   :  { %v4059_v45 = vpop.eup %4058 }
 0x79a   :  { %2951 = vrot.lane.b32.xlu1 %v4059_v45, %s4126_s4 }
 0x79b   :  { %v4061_v41 = vpop.eup %4060 }
 0x79c   :  { %v2942_v29 = vadd.f32 1.0, %v4061_v41 }
 0x79e   :  { %4062 = vrcp.f32 %v2942_v29 }
 0x7a8   :  { %v4063_v25 = vpop.eup %4062 }
 0x7a9   :  { %v2949_v3 = vmul.f32 %v4063_v25, %v2947_v42 }
 0x80c   :  { %v2952_v48 = vpop.permute.xlu1 %2951 }
 0x80d   :  { %v2954_v5 = vmul.f32 %v4063_v25, %v2952_v48 }
 0x80f   :  { %2956 = vrot.lane.b32.xlu1 %v2954_v5, %s4127_s11 }
 0x881   :  { %v2957_v28 = vpop.permute.xlu1 %2956 }
 0x882   :  { %v2959_v20 = vadd.f32 %v2957_v28, %v2949_v3 }
 0x884   :  { %4064 = vtanh.f32 %v2959_v20  ;;  %v3059_v22 = vrot.slane %v2959_v20, 6 }
 0x88e   :  { %v4065_v52 = vpop.eup %4064 }
 0x88f   :  { %2962 = vrot.lane.b32.xlu1 %v4065_v52, %s4128_s13 }
 0x901   :  { %v2963_v27 = vpop.permute.xlu1 %2962 }
 0x902   :  { %v7145_v15 = vmul.f32 %v4063_v25, %v2963_v27 }
 0x904   :  { %v2972_v6 = vrot.slane %v7145_v15, 2 }
 0x906   :  { %2973 = vrot.lane.b32.xlu0 %v2972_v6, %s4129_s8 }
 0x978   :  { %v2974_v46 = vpop.permute.xlu0 %2973 }
 0x979   :  { %3877 = vmatmul.mubr.msk.f32.vlgmr.msra.gmra.mrb[2].mxu1 %vm2751_vm1, %v2974_v46 }
 0x97a   :  { %3982 = vmatpush3.bf16.msra.mxu1 %v7061_v16  ;;  %3898 = vmatprep.mubr.msk.f32.mxu1 %vm4123_vm7, %v4124_v34 }
 0x97b   :  { %3983 = vmatprep.subr.bf16.mxu1 %v4122_v47 }
 0x97e   :  { %3986 = vmatpush3.bf16.msk.msra.mxu1 %vm7076_vm0, %v7086_v1 }
 0x97f   :  { %3994 = vmatprep.subr.bf16.mxu1 %v4122_v47 }
 0xa4c   :  { %v3043_v31 = vpop.f32.mrb[2].mxu1 }
 0xa4d   :  { %v3048_v7 = vrot.slane %v3043_v31, 4  ;;  %v3878_v13 = vpop.f32.mrb[3].mxu1 }
 0xa4f   :  { %v3050_v40 = vadd.f32 %v3048_v7, %v7123_v11 }
 0xa51   :  { %4066 = vtanh.f32 %v3050_v40  ;;  %v3764_v4 = vmul.f32 -1.442695, %v3050_v40 }
 0xa53   :  { %4068 = vpow2.f32 %v3764_v4 }
 0xa5b   :  { %v4067_v38 = vpop.eup %4066 }
 0xa5c   :  { %3063 = vrot.lane.b32.xlu1 %v4067_v38, %s4126_s4 }
 0xa5d   :  { %v4069_v59 = vpop.eup %4068 }
 0xa5e   :  { %v3054_v32 = vadd.f32 1.0, %v4069_v59 }
 0xa60   :  { %4070 = vrcp.f32 %v3054_v32 }
 0xa6a   :  { %v4071_v61 = vpop.eup %4070 }
 0xa6b   :  { %v3061_v56 = vmul.f32 %v4071_v61, %v3059_v22 }
 0xace   :  { %v3064_v21 = vpop.permute.xlu1 %3063 }
 0xacf   :  { %v3066_v62 = vmul.f32 %v4071_v61, %v3064_v21 }
 0xad1   :  { %3068 = vrot.lane.b32.xlu0 %v3066_v62, %s4127_s11 }
 0xb43   :  { %v3069_v54 = vpop.permute.xlu0 %3068 }
 0xb44   :  { %v3071_v57 = vadd.f32 %v3069_v54, %v3061_v56 }
 0xb46   :  { %4072 = vtanh.f32 %v3071_v57  ;;  %v3171_v51 = vrot.slane %v3071_v57, 6 }
 0xb50   :  { %v4073_v0 = vpop.eup %4072 }
 0xb51   :  { %3074 = vrot.lane.b32.xlu1 %v4073_v0, %s4128_s13 }
 0xbc3   :  { %v3075_v2 = vpop.permute.xlu1 %3074 }
 0xbc4   :  { %v7162_v44 = vmul.f32 %v4071_v61, %v3075_v2 }
 0xbc6   :  { %v3084_v58 = vrot.slane %v7162_v44, 4 }
 0xbc8   :  { %3085 = vrot.lane.b32.xlu0 %v3084_v58, %s4129_s8 }
 0xc3a   :  { %v3086_v36 = vpop.permute.xlu0 %3085 }
 0xc3b   :  { %3888 = vmatmul.mubr.msk.f32.vlgmr.msra.gmra.mrb[4].mxu0 %vm2751_vm1, %v3086_v36 }
 0xc3c   :  { %3989 = vmatpush3.bf16.msra.mxu0 %v7061_v16  ;;  %3909 = vmatprep.mubr.msk.f32.mxu0 %vm4123_vm7, %v4124_v34 }
 0xc3d   :  { %3990 = vmatprep.subr.bf16.mxu0 %v4122_v47 }
 0xc40   :  { %3993 = vmatpush3.bf16.msk.msra.mxu0 %vm7076_vm0, %v7086_v1 }
 0xc41   :  { %4001 = vmatprep.subr.bf16.mxu0 %v4122_v47 }
 0xd0e   :  { %v3155_v43 = vpop.f32.mrb[4].mxu0 }
 0xd0f   :  { %v3160_v33 = vrot.slane %v3155_v43, 2  ;;  %v3889_v8 = vpop.f32.mrb[5].mxu0 }
 0xd11   :  { %v3162_v26 = vadd.f32 %v3160_v33, %v7123_v11 }
 0xd13   :  { %4074 = vtanh.f32 %v3162_v26  ;;  %v3767_v37 = vmul.f32 -1.442695, %v3162_v26 }
 0xd15   :  { %4076 = vpow2.f32 %v3767_v37 }
 0xd1d   :  { %v4075_v30 = vpop.eup %4074 }
 0xd1e   :  { %3175 = vrot.lane.b32.xlu1 %v4075_v30, %s4126_s4 }
 0xd1f   :  { %v4077_v50 = vpop.eup %4076 }
 0xd20   :  { %v3166_v14 = vadd.f32 1.0, %v4077_v50 }
 0xd22   :  { %4078 = vrcp.f32 %v3166_v14 }
 0xd2c   :  { %v4079_v55 = vpop.eup %4078 }
 0xd2d   :  { %v3173_v23 = vmul.f32 %v4079_v55, %v3171_v51 }
 0xd90   :  { %v3176_v24 = vpop.permute.xlu1 %3175 }
 0xd91   :  { %v3178_v17 = vmul.f32 %v4079_v55, %v3176_v24 }
 0xd93   :  { %3180 = vrot.lane.b32.xlu0 %v3178_v17, %s4127_s11 }
 0xe05   :  { %v3181_v49 = vpop.permute.xlu0 %3180 }
 0xe06   :  { %v3183_v35 = vadd.f32 %v3181_v49, %v3173_v23 }
 0xe08   :  { %4080 = vtanh.f32 %v3183_v35 }
 0xe12   :  { %v4081_v11 = vpop.eup %4080 }
 0xe13   :  { %3186 = vrot.lane.b32.xlu1 %v4081_v11, %s4128_s13 }
 0xe17   :  { %2727 = vperm.xlu1 %4049, %v2718_v19  }
 0xe85   :  { %v3187_v18 = vpop.permute.xlu1 %3186 }
 0xe86   :  { %v7182_v12 = vmul.f32 %v4079_v55, %v3187_v18 }
 0xe88   :  { %v3196_v10 = vrot.slane %v7182_v12, 6 }
 0xe8a   :  { %3197 = vrot.lane.b32.xlu0 %v3196_v10, %s4129_s8 }
 0xe96   :  { %v2728_v45 = vpop.permute.xlu1 %2727 }
 0xe97   :  { %v2737_v9 = vmul.f32 %v7114_v53, %v2728_v45  ;;  %v3280_v53 = vrot.slane %v3183_v35, 6 }
 0xe99   :  { %v7196_v41 = vadd.f32 %v7120_v63, %v2737_v9 }
 0xefc   :  { %v3198_v39 = vpop.permute.xlu0 %3197 }
 0xefd   :  { %3899 = vmatmul.mubr.msk.f32.vlgmr.msra.gmra.mrb[4].mxu1 %vm2751_vm1, %v3198_v39 }
 0xefe   :  { %3996 = vmatpush3.bf16.msra.mxu1 %v7061_v16  ;;  %3920 = vmatprep.mubr.msk.f32.mxu1 %vm4123_vm7, %v4124_v34 }
 0xeff   :  { %3997 = vmatprep.subr.bf16.mxu1 %v4122_v47 }
 0xf02   :  { %4000 = vmatpush3.bf16.msk.msra.mxu1 %vm7076_vm0, %v7086_v1 }
 0xfd0   :  { %v3267_v29 = vpop.f32.mrb[4].mxu1 }
 0xfd1   :  { %v3271_v25 = vadd.f32 %v3267_v29, %v7196_v41  ;;  %v3900_v48 = vpop.f32.mrb[5].mxu1 }
 0xfd3   :  { %4082 = vtanh.f32 %v3271_v25  ;;  %v3770_v42 = vmul.f32 -1.442695, %v3271_v25 }
 0xfd5   :  { %4084 = vpow2.f32 %v3770_v42 }
 0xfdd   :  { %v4083_v5 = vpop.eup %4082 }
 0xfde   :  { %3284 = vrot.lane.b32.xlu0 %v4083_v5, %s4126_s4 }
 0xfdf   :  { %v4085_v3 = vpop.eup %4084 }
 0xfe0   :  { %v3275_v28 = vadd.f32 1.0, %v4085_v3 }
 0xfe2   :  { %4086 = vrcp.f32 %v3275_v28 }
 0xfec   :  { %v4087_v20 = vpop.eup %4086 }
 0xfed   :  { %v3282_v63 = vmul.f32 %v4087_v20, %v3280_v53 }
0x1050   :  { %v3285_v52 = vpop.permute.xlu0 %3284 }
0x1051   :  { %v3287_v27 = vmul.f32 %v4087_v20, %v3285_v52 }
0x1053   :  { %3289 = vrot.lane.b32.xlu1 %v3287_v27, %s4127_s11 }
0x10c5   :  { %v3290_v6 = vpop.permute.xlu1 %3289 }
0x10c6   :  { %v3292_v46 = vadd.f32 %v3290_v6, %v3282_v63 }
0x10c8   :  { %4088 = vtanh.f32 %v3292_v46 }
0x10d2   :  { %v4089_v31 = vpop.eup %4088 }
0x10d3   :  { %3295 = vrot.lane.b32.xlu0 %v4089_v31, %s4128_s13 }
0x1145   :  { %v3296_v7 = vpop.permute.xlu0 %3295 }
0x1146   :  { %v3298_v13 = vmul.f32 %v4087_v20, %v3296_v7 }
0x1148   :  { %3300 = vrot.lane.b32.xlu1 %v3298_v13, %s4129_s8  ;;  %v3639_v13 = vld [vmem:[%s7288_s14 + $0x8] sm:$0xff] }
0x11ba   :  { %v3301_v40 = vpop.permute.xlu1 %3300 }
0x11bb   :  { %3303 = vst.msk [vmem:[#allocation2 + $0x8] sm:$0x3] %vm2861_vm2, %v3301_v40  ;;  %3910 = vmatmul.mubr.msk.f32.vlgmr.msra.gmra.mrb[6].mxu0 %vm2751_vm1, %v3301_v40  ;;  %v3640_v40 = vld [vmem:[%s7288_s14 + $0x10] sm:$0xff] }
0x11bc   :  { %4003 = vmatpush3.bf16.msra.mxu0 %v7061_v16  ;;  %3931 = vmatprep.mubr.msk.f32.mxu0 %vm4123_vm7, %v4124_v34 }
0x11bd   :  { %4004 = vmatprep.subr.bf16.mxu0 %v4122_v47 }
0x11c0   :  { %4007 = vmatpush3.bf16.msk.msra.mxu0 %vm7076_vm0, %v7086_v1  ;;  %v3388_v1 = vrot.slane %v3292_v46, 6 }
0x128e   :  { %v3372_v38 = vpop.f32.mrb[6].mxu0 }
0x128f   :  { %v3377_v4 = vrot.slane %v3372_v38, 6  ;;  %v3911_v59 = vpop.f32.mrb[7].mxu0 }
0x1291   :  { %v3379_v32 = vadd.f32 %v3377_v4, %v7196_v41 }
0x1293   :  { %4090 = vtanh.f32 %v3379_v32  ;;  %v3773_v21 = vmul.f32 -1.442695, %v3379_v32 }
0x1295   :  { %4092 = vpow2.f32 %v3773_v21 }
0x129d   :  { %v4091_v61 = vpop.eup %4090 }
0x129e   :  { %3392 = vrot.lane.b32.xlu0 %v4091_v61, %s4126_s4 }
0x129f   :  { %v4093_v16 = vpop.eup %4092 }
0x12a0   :  { %v3383_v62 = vadd.f32 1.0, %v4093_v16 }
0x12a2   :  { %4094 = vrcp.f32 %v3383_v62 }
0x12ac   :  { %v4095_v34 = vpop.eup %4094 }
0x12ad   :  { %v3390_v56 = vmul.f32 %v4095_v34, %v3388_v1 }
0x1310   :  { %v3393_v47 = vpop.permute.xlu0 %3392 }
0x1311   :  { %v3395_v22 = vmul.f32 %v4095_v34, %v3393_v47 }
0x1313   :  { %3397 = vrot.lane.b32.xlu1 %v3395_v22, %s4127_s11 }
0x1385   :  { %v3398_v54 = vpop.permute.xlu1 %3397 }
0x1386   :  { %v3400_v57 = vadd.f32 %v3398_v54, %v3390_v56 }
0x1388   :  { %4096 = vtanh.f32 %v3400_v57  ;;  %v3499_v23 = vrot.slane %v3400_v57, 6 }
0x1392   :  { %v4097_v0 = vpop.eup %4096 }
0x1393   :  { %3403 = vrot.lane.b32.xlu0 %v4097_v0, %s4128_s13 }
0x1405   :  { %v3404_v2 = vpop.permute.xlu0 %3403 }
0x1406   :  { %v7216_v58 = vmul.f32 %v4095_v34, %v3404_v2 }
0x1408   :  { %v3412_v36 = vrot.slane %v7216_v58, 2 }
0x140a   :  { %3413 = vrot.lane.b32.xlu1 %v3412_v36, %s4129_s8 }
0x147c   :  { %v3414_v43 = vpop.permute.xlu1 %3413 }
0x147d   :  { %3921 = vmatmul.mubr.msk.f32.vlgmr.msra.gmra.mrb[6].mxu1 %vm2751_vm1, %v3414_v43 }
0x1550   :  { %v3483_v33 = vpop.f32.mrb[6].mxu1 }
0x1551   :  { %v3488_v8 = vrot.slane %v3483_v33, 4  ;;  %v3922_v26 = vpop.f32.mrb[7].mxu1 }
0x1553   :  { %v3490_v30 = vadd.f32 %v3488_v8, %v7196_v41 }
0x1555   :  { %4098 = vtanh.f32 %v3490_v30  ;;  %v3776_v50 = vmul.f32 -1.442695, %v3490_v30 }
0x1557   :  { %4100 = vpow2.f32 %v3776_v50 }
0x155f   :  { %v4099_v37 = vpop.eup %4098 }
0x1560   :  { %3503 = vrot.lane.b32.xlu0 %v4099_v37, %s4126_s4 }
0x1561   :  { %v4101_v14 = vpop.eup %4100 }
0x1562   :  { %v3494_v55 = vadd.f32 1.0, %v4101_v14 }
0x1564   :  { %4102 = vrcp.f32 %v3494_v55 }
0x156e   :  { %v4103_v24 = vpop.eup %4102 }
0x156f   :  { %v3501_v49 = vmul.f32 %v4103_v24, %v3499_v23 }
0x15d2   :  { %v3504_v17 = vpop.permute.xlu0 %3503 }
0x15d3   :  { %v3506_v51 = vmul.f32 %v4103_v24, %v3504_v17 }
0x15d5   :  { %3508 = vrot.lane.b32.xlu1 %v3506_v51, %s4127_s11 }
0x1647   :  { %v3509_v35 = vpop.permute.xlu1 %3508 }
0x1648   :  { %v3511_v11 = vadd.f32 %v3509_v35, %v3501_v49 }
0x164a   :  { %4104 = vtanh.f32 %v3511_v11 }
0x1654   :  { %v4105_v19 = vpop.eup %4104 }
0x1655   :  { %3514 = vrot.lane.b32.xlu0 %v4105_v19, %s4128_s13 }
0x16c7   :  { %v3515_v18 = vpop.permute.xlu0 %3514 }
0x16c8   :  { %v3517_v10 = vmul.f32 %v4103_v24, %v3515_v18 }
0x16ca   :  { %v3523_v39 = vrot.slane %v3517_v10, 4 }
0x16cc   :  { %3524 = vrot.lane.b32.xlu1 %v3523_v39, %s4129_s8 }
0x173e   :  { %v3525_v45 = vpop.permute.xlu1 %3524 }
0x173f   :  { %3932 = vmatmul.mubr.msk.f32.vlgmr.msra.gmra.mrb[8].mxu0 %vm2751_vm1, %v3525_v45 }
0x1812   :  { %v3594_v9 = vpop.f32.mrb[8].mxu0 }
0x1813   :  { %v3599_v29 = vrot.slane %v3594_v9, 2  ;;  %v3933_v25 = vpop.f32.mrb[9].mxu0 }
0x1815   :  { %v3601_v48 = vadd.f32 %v3599_v29, %v7196_v41  ;;  %v3610_v41 = vrot.slane %v3511_v11, 6 }
0x1817   :  { %4106 = vtanh.f32 %v3601_v48  ;;  %v3779_v42 = vmul.f32 -1.442695, %v3601_v48 }
0x1819   :  { %4108 = vpow2.f32 %v3779_v42 }
0x1821   :  { %v4107_v5 = vpop.eup %4106 }
0x1822   :  { %3614 = vrot.lane.b32.xlu0 %v4107_v5, %s4126_s4 }
0x1823   :  { %v4109_v3 = vpop.eup %4108 }
0x1824   :  { %v3605_v28 = vadd.f32 1.0, %v4109_v3 }
0x1826   :  { %4110 = vrcp.f32 %v3605_v28 }
0x1830   :  { %v4111_v20 = vpop.eup %4110 }
0x1831   :  { %v3612_v53 = vmul.f32 %v4111_v20, %v3610_v41 }
0x1894   :  { %v3615_v52 = vpop.permute.xlu0 %3614 }
0x1895   :  { %v3617_v27 = vmul.f32 %v4111_v20, %v3615_v52 }
0x1897   :  { %3619 = vrot.lane.b32.xlu1 %v3617_v27, %s4127_s11 }
0x189b   :  { %2967 = vrot.lane.b32.xlu1 %v7145_v15, %s4129_s8 }
0x189f   :  { %3191 = vrot.lane.b32.xlu1 %v7182_v12, %s4129_s8  ;;  %v3638_v12 = vld [vmem:[%s7288_s14] sm:$0xff] }
0x18a0   :  { %v4008_v4 = vpack.c.bf16 %v3639_v13, %v3638_v12 }
0x18a2   :  { %4009 = vmatprep.subr.bf16.mxu1 %v4008_v4 }
0x18a3   :  { %3519 = vrot.lane.b32.xlu1 %v3517_v10, %s4129_s8  ;;  %4011 = vmatpush3.bf16.msra.mxu1 %v4008_v4 }
0x1909   :  { %v3620_v63 = vpop.permute.xlu1 %3619 }
0x190a   :  { %v3622_v6 = vadd.f32 %v3620_v63, %v3612_v53 }
0x190c   :  { %4112 = vtanh.f32 %v3622_v6 }
0x190d   :  { %v2968_v46 = vpop.permute.xlu1 %2967 }
0x190e   :  { %2971 = vst.msk [vmem:[#allocation2] sm:$0xc] %vm2970_vm3, %v2968_v46 }
0x1911   :  { %v3192_v31 = vpop.permute.xlu1 %3191 }
0x1912   :  { %3195 = vst.msk [vmem:[#allocation2] sm:$0xc0] %vm3194_vm4, %v3192_v31 }
0x1915   :  { %v3520_v15 = vpop.permute.xlu1 %3519 }
0x1916   :  { %v4113_v7 = vpop.eup %4112  ;;  %3522 = vst.msk [vmem:[#allocation2 + $0x8] sm:$0x30] %vm3082_vm5, %v3520_v15 }
0x1917   :  { %3625 = vrot.lane.b32.xlu0 %v4113_v7, %s4128_s13 }
0x191b   :  { %3079 = vrot.lane.b32.xlu0 %v7162_v44, %s4129_s8  ;;  %v3641_v44 = vld [vmem:[%s7288_s14 + $0x18] sm:$0x7] }
0x191c   :  { %v4012_v32 = vpack.c.bf16 %v3641_v44, %v3640_v40 }
0x191e   :  { %4014 = vmatprep.subr.msk.bf16.mxu1 %vm7076_vm0, %v4012_v32 }
0x191f   :  { %3408 = vrot.lane.b32.xlu0 %v7216_v58, %s4129_s8  ;;  %4017 = vmatpush3.bf16.msk.msra.mxu1 %vm7076_vm0, %v4012_v32 }
0x1989   :  { %v3626_v38 = vpop.permute.xlu0 %3625 }
0x198a   :  { %v3628_v59 = vmul.f32 %v4111_v20, %v3626_v38 }
0x198c   :  { %3630 = vrot.lane.b32.xlu0 %v3628_v59, %s4129_s8 }
0x198d   :  { %v3080_v61 = vpop.permute.xlu0 %3079 }
0x198e   :  { %3083 = vst.msk [vmem:[#allocation2] sm:$0x30] %vm3082_vm5, %v3080_v61 }
0x1991   :  { %v3409_v21 = vpop.permute.xlu0 %3408 }
0x1992   :  { %3411 = vst.msk [vmem:[#allocation2 + $0x8] sm:$0xc] %vm2970_vm3, %v3409_v21 }
0x1995   :  { %v3634_v16 = vld [vmem:[#allocation2] sm:$0xff] }
0x1996   :  { %4114 = vtanh.f32 %v3634_v16 }
0x19a0   :  { %v4115_v62 = vpop.eup %4114 }
0x19a1   :  { %3942 = vmatprep.mubr.msk.f32.mxu1 %vm2751_vm1, %v4115_v62 }
0x19fe   :  { %v3631_v34 = vpop.permute.xlu0 %3630 }
0x19ff   :  { %3633 = vst.msk [vmem:[#allocation2 + $0x8] sm:$0xc0] %vm3194_vm4, %v3631_v34 }
0x1a06   :  { %v3635_v47 = vld [vmem:[#allocation2 + $0x8] sm:$0xff] }
0x1a07   :  { %4116 = vtanh.f32 %v3635_v47 }
0x1a11   :  { %v4117_v22 = vpop.eup %4116 }
0x1a12   :  { %3943 = vmatmul.mubr.msk.f32.vlgmr.msra.gmra.mrb[8].mxu1 %vm2751_vm1, %v4117_v22 }
0x1ae5   :  { %v3944_v1 = vpop.f32.mrb[8].mxu1 }
0x1ae6   :  { %v3730_v56 = vadd.f32 %v3944_v1, %v3780_v60  ;;  %v3724_v54 = vpop.f32.mrb[9].mxu1 }
0x1ae7   :  { %v3725_v57 = vadd.f32 %v3780_v60, %v3724_v54 }
0x1ae8   :  { %3735 = vst.msk [vmem:[%s7290_s16 + $0x8] sm:$0xff] %vm3733_vm6, %v3730_v56 }
0x1ae9   :  { %3734 = vst.msk [vmem:[%s7290_s16] sm:$0xff] %vm3733_vm6, %v3725_v57 }

</bundles_post_ra>
